<compile_context>
chip_gen: v7x
topology: tpu7x:2x2x1
jax: 0.10.0
libtpu: 0.0.40
codegen_flags: <defaults>
</compile_context>

<pallas_src>
import functools

import jax
import jax.numpy as jnp
from jax import lax
from jax.experimental import pallas as pl
from jax.experimental.pallas import tpu as pltpu

DOWNSAMPLE_FACTOR = 2
LANE = 128
SUBLANE = 8
MAX_TIME_TILE = 512
BF16 = jnp.bfloat16


# ------------------------------ small helpers -------------------------------

def _round_up(x, m):
    return ((x + m - 1) // m) * m


def _pad_axis(x, axis, new_size):
    pad = new_size - x.shape[axis]
    if pad == 0:
        return x
    cfg = [(0, 0)] * x.ndim
    cfg[axis] = (0, pad)
    return jnp.pad(x, cfg)


@functools.lru_cache(maxsize=1)
def _vmem_limit_bytes():
    cap = 64 * 1024 * 1024
    try:
        cap = int(pltpu.get_tpu_info().vmem_capacity_bytes)
    except Exception:
        pass
    # ~48 MiB on v7x (64 MiB physical), ~100 MiB on v5e/v6e (128 MiB physical)
    return int(min(max(cap - 16 * 1024 * 1024, 32 * 1024 * 1024),
                   100 * 1024 * 1024))


def _cparams(*sem):
    return pltpu.CompilerParams(dimension_semantics=sem,
                                vmem_limit_bytes=_vmem_limit_bytes())


# ----------------------------- Pallas kernels -------------------------------

def _style_kernel(x_ref, m_ref, inv_ref, w1_ref, b1_ref, w2_ref, b2_ref,
                  o_ref, acc_ref):
    """relu(x @ w1 + b1) -> masked mean over time -> @ w2 + b2."""
    t = pl.program_id(1)

    @pl.when(t == 0)
    def _():
        acc_ref[...] = jnp.zeros_like(acc_ref)

    x = x_ref[0]                                    # (TT, Cin) bf16 at rest
    m = m_ref[0]                                    # (TT, 1)  f32
    h = jnp.dot(x, w1_ref[...], preferred_element_type=jnp.float32) + b1_ref[...]
    h = jnp.maximum(h, 0.0)
    acc_ref[...] += jnp.sum(h * m, axis=0, keepdims=True)      # (1, D)

    @pl.when(t == pl.num_programs(1) - 1)
    def _():
        pooled = acc_ref[...] * inv_ref[0]                      # (1, D)
        y = jnp.dot(pooled.astype(BF16), w2_ref[...],
                    preferred_element_type=jnp.float32) + b2_ref[...]
        o_ref[0] = y.astype(o_ref.dtype)


def _enc_kernel(x_ref, s_ref, m_ref, w1_ref, b1_ref, w2_ref, b2_ref, o_ref):
    """((relu(x @ w1 + b1 + style)) @ w2 + b2) * mask, one row-tile per step."""
    x = x_ref[0]                                    # (TT, Cin) bf16
    h = jnp.dot(x, w1_ref[...], preferred_element_type=jnp.float32) + b1_ref[...]
    h = jnp.maximum(h + s_ref[0], 0.0)
    y = jnp.dot(h.astype(BF16), w2_ref[...],
                preferred_element_type=jnp.float32) + b2_ref[...]
    o_ref[0] = (y * m_ref[0]).astype(o_ref.dtype)


def _dec_mel_kernel(x_ref, s_ref, m_ref, w1_ref, b1_ref, w2_ref, b2_ref,
                    w3_ref, b3_ref, o_ref):
    """Decoder + mel-linear fused: 3 chained matmuls, one row-tile per step."""
    x = x_ref[0]                                    # (TT, D) bf16
    h = jnp.dot(x, w1_ref[...], preferred_element_type=jnp.float32) + b1_ref[...]
    h = jnp.maximum(h + s_ref[0], 0.0)
    d = jnp.dot(h.astype(BF16), w2_ref[...],
                preferred_element_type=jnp.float32) + b2_ref[...]
    d = d * m_ref[0]
    y = jnp.dot(d.astype(BF16), w3_ref[...],
                preferred_element_type=jnp.float32) + b3_ref[...]
    o_ref[0] = y.astype(o_ref.dtype)


def _attn_kernel(alpha_ref, kmask_all_ref, kmask_blk_ref, v_ref,
                 attn_ref, out_ref, inv_ref, ctx_ref,
                 *, q_tile, k_tile, num_k, factor, down):
    """Blocked-K fused attention: distance logits -> masked softmax -> @ values.

    Logits are always <= 0 so exp() needs no running max; the full-row softmax
    denominator only needs the (tiny) key mask, so it is computed once per
    q-tile at k-block 0 and cached in scratch; each k-block then writes its
    normalized attn slab and accumulates ctx in a VMEM scratch.
    """
    kb = pl.program_id(2)
    q0 = (pl.program_id(1) * q_tile).astype(jnp.float32)
    alpha = alpha_ref[0].astype(jnp.float32)                    # (1, 1)
    q_idx = (lax.broadcasted_iota(jnp.int32, (q_tile, k_tile), 0)
             .astype(jnp.float32) + q0)
    k_base = lax.broadcasted_iota(jnp.int32, (q_tile, k_tile), 1).astype(jnp.float32)

    def logits(k_idx):
        if down:
            centers = (q_idx + alpha) * factor
            return -((k_idx - centers) ** 2) / factor
        return -((q_idx / factor - (k_idx + alpha)) ** 2)

    @pl.when(kb == 0)
    def _():
        acc = jnp.zeros((q_tile, 1), jnp.float32)
        for j in range(num_k):                                   # static unroll
            m_j = kmask_all_ref[0, :, j * k_tile:(j + 1) * k_tile]   # (1, k_tile)
            e_j = jnp.exp(logits(k_base + float(j * k_tile))) * m_j
            acc = acc + jnp.sum(e_j, axis=-1, keepdims=True)
        inv_ref[...] = 1.0 / jnp.maximum(acc, 1e-9)              # exact division
        ctx_ref[...] = jnp.zeros_like(ctx_ref)

    m = kmask_blk_ref[0]                                         # (1, k_tile)
    e = jnp.exp(logits(k_base + (kb * k_tile).astype(jnp.float32))) * m
    attn = e * inv_ref[...]
    attn_ref[0] = attn.astype(attn_ref.dtype)
    ctx_ref[...] += jnp.dot(attn.astype(BF16), v_ref[0],
                            preferred_element_type=jnp.float32)

    @pl.when(kb == pl.num_programs(2) - 1)
    def _():
        out_ref[0] = ctx_ref[...].astype(out_ref.dtype)


def _cls_kernel(x_ref, m_ref, inv_ref, w_ref, b_ref, o_ref, acc_ref):
    """Masked mean over down-time tiles -> linear classifier."""
    t = pl.program_id(1)

    @pl.when(t == 0)
    def _():
        acc_ref[...] = jnp.zeros_like(acc_ref)

    x = x_ref[0].astype(jnp.float32)                # (JT, D) from bf16
    m = m_ref[0]                                    # (JT, 1) f32
    acc_ref[...] += jnp.sum(x * m, axis=0, keepdims=True)

    @pl.when(t == pl.num_programs(1) - 1)
    def _():
        pooled = acc_ref[...] * inv_ref[0]
        y = jnp.dot(pooled.astype(BF16), w_ref[...],
                    preferred_element_type=jnp.float32) + b_ref[...]
        o_ref[0] = y.astype(o_ref.dtype)


def _postnet_kernel(x_ref, w1_ref, b1_ref, w2_ref, b2_ref, w3_ref, b3_ref,
                    o_ref, *, k, t_tile, t_valid):
    """3 fused 'same' conv layers (k-tap accumulated matmuls) + tanh + residual.

    x_ref holds an overlapped time window of length t_tile + 6*(k//2); after
    each layer, rows whose GLOBAL time index lies outside [0, T) are zeroed so
    the result matches per-layer zero padding exactly.
    """
    pad = k // 2
    t0 = pl.program_id(1) * t_tile                  # global start of this tile

    def zero_outside(h, start):
        idx = lax.broadcasted_iota(jnp.int32, (h.shape[0], 1), 0) + start
        return jnp.where((idx >= 0) & (idx < t_valid), h, 0.0)

    def conv(xin, w_ref_, b_ref_, out_len):
        cout = w_ref_.shape[2]
        acc = jnp.zeros((out_len, cout), jnp.float32) + b_ref_[...]
        for i in range(k):      # k-tap loop of MXU pushes, f32 accumulation
            acc = acc + jnp.dot(xin[i:i + out_len, :].astype(BF16), w_ref_[i],
                                preferred_element_type=jnp.float32)
        return acc

    x = x_ref[0, 0].astype(jnp.float32)             # (t_tile + 6*pad, Cin)
    # zero decoder padding rows (>= T) so layer-1 sees true zero conv padding
    x = zero_outside(x, t0 - 3 * pad)

    l1 = t_tile + 4 * pad
    h = jnp.tanh(conv(x, w1_ref, b1_ref, l1))
    h = zero_outside(h, t0 - 2 * pad)

    l2 = t_tile + 2 * pad
    h = jnp.tanh(conv(h, w2_ref, b2_ref, l2))
    h = zero_outside(h, t0 - pad)

    p = conv(h, w3_ref, b3_ref, t_tile)
    o_ref[0] = (x[3 * pad:3 * pad + t_tile, :] + p).astype(o_ref.dtype)


# ---------------------------- kernel wrappers --------------------------------

def _style_encoder(x, mask3, inv_len, w1, b1, w2, b2, *, time_tile):
    B, Tp, Cin = x.shape
    D = w1.shape[1]
    return pl.pallas_call(
        _style_kernel,
        out_shape=jax.ShapeDtypeStruct((B, 1, D), jnp.float32),
        grid=(B, Tp // time_tile),
        in_specs=[
            pl.BlockSpec((1, time_tile, Cin), lambda b, t: (b, t, 0)),
            pl.BlockSpec((1, time_tile, 1), lambda b, t: (b, t, 0)),
            pl.BlockSpec((1, 1, 1), lambda b, t: (b, 0, 0)),
            pl.BlockSpec((Cin, D), lambda b, t: (0, 0)),
            pl.BlockSpec((1, D), lambda b, t: (0, 0)),
            pl.BlockSpec((D, D), lambda b, t: (0, 0)),
            pl.BlockSpec((1, D), lambda b, t: (0, 0)),
        ],
        out_specs=pl.BlockSpec((1, 1, D), lambda b, t: (b, 0, 0)),
        scratch_shapes=[pltpu.VMEM((1, D), jnp.float32)],
        compiler_params=_cparams("parallel", "arbitrary"),
    )(x, mask3, inv_len, w1, b1, w2, b2)


def _content_encoder(x, style, mask3, w1, b1, w2, b2, *, time_tile):
    B, Tp, Cin = x.shape
    D = w1.shape[1]
    return pl.pallas_call(
        _enc_kernel,
        out_shape=jax.ShapeDtypeStruct((B, Tp, D), BF16),
        grid=(B, Tp // time_tile),
        in_specs=[
            pl.BlockSpec((1, time_tile, Cin), lambda b, t: (b, t, 0)),
            pl.BlockSpec((1, 1, D), lambda b, t: (b, 0, 0)),
            pl.BlockSpec((1, time_tile, 1), lambda b, t: (b, t, 0)),
            pl.BlockSpec((Cin, D), lambda b, t: (0, 0)),
            pl.BlockSpec((1, D), lambda b, t: (0, 0)),
            pl.BlockSpec((D, D), lambda b, t: (0, 0)),
            pl.BlockSpec((1, D), lambda b, t: (0, 0)),
        ],
        out_specs=pl.BlockSpec((1, time_tile, D), lambda b, t: (b, t, 0)),
        compiler_params=_cparams("parallel", "parallel"),
    )(x, style, mask3, w1, b1, w2, b2)


def _decoder_mel(x, style, mask3, w1, b1, w2, b2, w3, b3, *, time_tile):
    B, Tp, D = x.shape
    M = w3.shape[1]
    return pl.pallas_call(
        _dec_mel_kernel,
        out_shape=jax.ShapeDtypeStruct((B, Tp, M), BF16),
        grid=(B, Tp // time_tile),
        in_specs=[
            pl.BlockSpec((1, time_tile, D), lambda b, t: (b, t, 0)),
            pl.BlockSpec((1, 1, D), lambda b, t: (b, 0, 0)),
            pl.BlockSpec((1, time_tile, 1), lambda b, t: (b, t, 0)),
            pl.BlockSpec((D, D), lambda b, t: (0, 0)),
            pl.BlockSpec((1, D), lambda b, t: (0, 0)),
            pl.BlockSpec((D, D), lambda b, t: (0, 0)),
            pl.BlockSpec((1, D), lambda b, t: (0, 0)),
            pl.BlockSpec((D, M), lambda b, t: (0, 0)),
            pl.BlockSpec((1, M), lambda b, t: (0, 0)),
        ],
        out_specs=pl.BlockSpec((1, time_tile, M), lambda b, t: (b, t, 0)),
        compiler_params=_cparams("parallel", "parallel"),
    )(x, style, mask3, w1, b1, w2, b2, w3, b3)


def _attention(alpha3, kmask, values, *, q_len, q_tile, k_tile, down):
    B, _, Tk = kmask.shape
    D = values.shape[2]
    num_k = Tk // k_tile
    kernel = functools.partial(_attn_kernel, q_tile=q_tile, k_tile=k_tile,
                               num_k=num_k, factor=float(DOWNSAMPLE_FACTOR),
                               down=down)
    return pl.pallas_call(
        kernel,
        out_shape=(jax.ShapeDtypeStruct((B, q_len, Tk), BF16),
                   jax.ShapeDtypeStruct((B, q_len, D), BF16)),
        grid=(B, q_len // q_tile, num_k),
        in_specs=[
            pl.BlockSpec((1, 1, 1), lambda b, q, k: (b, 0, 0)),
            pl.BlockSpec((1, 1, Tk), lambda b, q, k: (b, 0, 0)),
            pl.BlockSpec((1, 1, k_tile), lambda b, q, k: (b, 0, k)),
            pl.BlockSpec((1, k_tile, D), lambda b, q, k: (b, k, 0)),
        ],
        out_specs=(
            pl.BlockSpec((1, q_tile, k_tile), lambda b, q, k: (b, q, k)),
            pl.BlockSpec((1, q_tile, D), lambda b, q, k: (b, q, 0)),
        ),
        scratch_shapes=[pltpu.VMEM((q_tile, 1), jnp.float32),
                        pltpu.VMEM((q_tile, D), jnp.float32)],
        compiler_params=_cparams("parallel", "parallel", "arbitrary"),
    )(alpha3, kmask, kmask, values)


def _classifier(content, mask3, inv_len, w, b, *, time_tile):
    B, Tdp, D = content.shape
    S = w.shape[1]
    return pl.pallas_call(
        _cls_kernel,
        out_shape=jax.ShapeDtypeStruct((B, 1, S), jnp.float32),
        grid=(B, Tdp // time_tile),
        in_specs=[
            pl.BlockSpec((1, time_tile, D), lambda b, t: (b, t, 0)),
            pl.BlockSpec((1, time_tile, 1), lambda b, t: (b, t, 0)),
            pl.BlockSpec((1, 1, 1), lambda b, t: (b, 0, 0)),
            pl.BlockSpec((D, S), lambda b, t: (0, 0)),
            pl.BlockSpec((1, S), lambda b, t: (0, 0)),
        ],
        out_specs=pl.BlockSpec((1, 1, S), lambda b, t: (b, 0, 0)),
        scratch_shapes=[pltpu.VMEM((1, D), jnp.float32)],
        compiler_params=_cparams("parallel", "arbitrary"),
    )(content, mask3, inv_len, w, b)


def _postnet(mel_out, w1, b1, w2, b2, w3, b3, *, t_valid, time_tile):
    B, Tp, C = mel_out.shape
    k = w1.shape[0]
    pad = k // 2
    halo = 3 * pad
    n_tiles = Tp // time_tile
    win_len = time_tile + 2 * halo
    xp = jnp.pad(mel_out, ((0, 0), (halo, halo), (0, 0)))
    # overlapped windows: [B, n_tiles, win_len, C] (halo duplication is tiny)
    windows = jnp.stack(
        [xp[:, i * time_tile:i * time_tile + win_len, :] for i in range(n_tiles)],
        axis=1)
    Cp1 = w1.shape[2]
    kernel = functools.partial(_postnet_kernel, k=k, t_tile=time_tile,
                               t_valid=t_valid)
    return pl.pallas_call(
        kernel,
        out_shape=jax.ShapeDtypeStruct((B, Tp, C), jnp.float32),
        grid=(B, n_tiles),
        in_specs=[
            pl.BlockSpec((1, 1, win_len, C), lambda b, t: (b, t, 0, 0)),
            pl.BlockSpec((k, C, Cp1), lambda b, t: (0, 0, 0)),
            pl.BlockSpec((1, Cp1), lambda b, t: (0, 0)),
            pl.BlockSpec((k, Cp1, Cp1), lambda b, t: (0, 0, 0)),
            pl.BlockSpec((1, Cp1), lambda b, t: (0, 0)),
            pl.BlockSpec((k, Cp1, C), lambda b, t: (0, 0, 0)),
            pl.BlockSpec((1, C), lambda b, t: (0, 0)),
        ],
        out_specs=pl.BlockSpec((1, time_tile, C), lambda b, t: (b, t, 0)),
        compiler_params=_cparams("parallel", "parallel"),
    )(windows, w1, b1, w2, b2, w3, b3)


# ------------------------------ parameters -----------------------------------

def init_params(key, mel_dim, model_dim, n_speakers, pn_ch, ksz):
    """Logical-shape f32 parameters."""
    def w(k, shape, scale=0.1):
        return scale * jax.random.normal(k, shape, jnp.float32)

    ks = jax.random.split(key, 12)
    return {
        "w_se1": w(ks[0], (mel_dim, model_dim)), "b_se1": jnp.zeros((model_dim,)),
        "w_se2": w(ks[1], (model_dim, model_dim)), "b_se2": jnp.zeros((model_dim,)),
        "w_ce1": w(ks[2], (mel_dim, model_dim)), "b_ce1": jnp.zeros((model_dim,)),
        "w_ce2": w(ks[3], (model_dim, model_dim)), "b_ce2": jnp.zeros((model_dim,)),
        "w_cls": w(ks[4], (model_dim, n_speakers)), "b_cls": jnp.zeros((n_speakers,)),
        "w_dec1": w(ks[5], (model_dim, model_dim)), "b_dec1": jnp.zeros((model_dim,)),
        "w_dec2": w(ks[6], (model_dim, model_dim)), "b_dec2": jnp.zeros((model_dim,)),
        "w_mel": w(ks[7], (model_dim, mel_dim)), "b_mel": jnp.zeros((mel_dim,)),
        "pw1": w(ks[8], (ksz, mel_dim, pn_ch)), "pb1": jnp.zeros((pn_ch,)),
        "pw2": w(ks[9], (ksz, pn_ch, pn_ch)), "pb2": jnp.zeros((pn_ch,)),
        "pw3": w(ks[10], (ksz, pn_ch, mel_dim)), "pb3": jnp.zeros((mel_dim,)),
    }


def prepare_params(p, mel_dim, model_dim, n_speakers, pn_ch):
    """Lane-pad channel dims to 128, cast matmul/conv weights to bf16,
    keep conv weights in [K, Cin, Cout] (k-tap) form, biases as [1, C] f32."""
    MP = _round_up(mel_dim, LANE)
    DP = _round_up(model_dim, LANE)
    SP = _round_up(n_speakers, LANE)
    PP = _round_up(pn_ch, LANE)

    def mat(w, r, c):
        return _pad_axis(_pad_axis(w, 0, r), 1, c).astype(BF16)

    def vec(b, c):
        return _pad_axis(b, 0, c).reshape(1, c).astype(jnp.float32)

    def conv(w, cin_p, cout_p):
        return _pad_axis(_pad_axis(w, 1, cin_p), 2, cout_p).astype(BF16)

    return {
        "w_se1": mat(p["w_se1"], MP, DP), "b_se1": vec(p["b_se1"], DP),
        "w_se2": mat(p["w_se2"], DP, DP), "b_se2": vec(p["b_se2"], DP),
        "w_ce1": mat(p["w_ce1"], MP, DP), "b_ce1": vec(p["b_ce1"], DP),
        "w_ce2": mat(p["w_ce2"], DP, DP), "b_ce2": vec(p["b_ce2"], DP),
        "w_cls": mat(p["w_cls"], DP, SP), "b_cls": vec(p["b_cls"], SP),
        "w_dec1": mat(p["w_dec1"], DP, DP), "b_dec1": vec(p["b_dec1"], DP),
        "w_dec2": mat(p["w_dec2"], DP, DP), "b_dec2": vec(p["b_dec2"], DP),
        "w_mel": mat(p["w_mel"], DP, MP), "b_mel": vec(p["b_mel"], MP),
        "pw1": conv(p["pw1"], MP, PP), "pb1": vec(p["pb1"], PP),
        "pw2": conv(p["pw2"], PP, PP), "pb2": vec(p["pb2"], PP),
        "pw3": conv(p["pw3"], PP, MP), "pb3": vec(p["pb3"], MP),
    }


# ------------------------------ forward pass ---------------------------------

def forward(pp, mel, mel_len, rhythm, *, mel_dim, model_dim, n_speakers):
    B, T, _ = mel.shape
    MP = pp["w_se1"].shape[0]                      # lane-padded mel dim
    Td = T // DOWNSAMPLE_FACTOR

    # time tiling: min(512, T) rows per step, sublane-aligned, padded time axes
    TT = MAX_TIME_TILE if T >= MAX_TIME_TILE else _round_up(T, SUBLANE)
    Tp = _round_up(T, TT)
    JT = MAX_TIME_TILE if Td >= MAX_TIME_TILE else _round_up(max(Td, 1), SUBLANE)
    Tdp = _round_up(max(Td, 1), JT)

    # bf16 at rest: read twice (style + content encoder)
    x = _pad_axis(_pad_axis(mel, 1, Tp), 2, MP).astype(BF16)          # [B,Tp,MP]

    t_ids = jnp.arange(Tp)
    valid = (t_ids[None, :] < mel_len[:, None]).astype(jnp.float32)   # [B,Tp]
    mask3 = valid[:, :, None]
    kmask_t = valid[:, None, :]
    inv_len = (1.0 / jnp.maximum(mel_len.astype(jnp.float32), 1.0)).reshape(B, 1, 1)

    # --- StyleEncoder (fused proj -> masked mean -> proj) --------------------
    # TODO(synk): reference StyleEncoder (conv/GRU stack) simplified to
    # linear -> masked mean -> linear.
    style = _style_encoder(x, mask3, inv_len,
                           pp["w_se1"], pp["b_se1"], pp["w_se2"], pp["b_se2"],
                           time_tile=TT)                              # [B,1,DP] f32

    # --- ContentEncoder (fused, style-conditioned) ---------------------------
    enc = _content_encoder(x, style, mask3,
                           pp["w_ce1"], pp["b_ce1"], pp["w_ce2"], pp["b_ce2"],
                           time_tile=TT)                              # [B,Tp,DP] bf16

    # --- shared rhythm alpha (hoisted; used by both down & up sampling) ------
    alpha = jax.nn.sigmoid(jnp.mean(rhythm, axis=1))                  # [B]
    alpha3 = alpha.reshape(B, 1, 1).astype(jnp.float32)

    # --- Downsampling: blocked-K fused logits+softmax+bmm --------------------
    attn_down, content = _attention(alpha3, kmask_t, enc,
                                    q_len=Tdp, q_tile=JT, k_tile=TT, down=True)
    # attn_down: [B,Tdp,Tp] bf16   content: [B,Tdp,DP] bf16

    j_ids = jnp.arange(Tdp)
    down_len = (mel_len + DOWNSAMPLE_FACTOR - 1) // DOWNSAMPLE_FACTOR
    down_valid = (j_ids[None, :] < down_len[:, None]).astype(jnp.float32)
    dmask3 = down_valid[:, :, None]
    kmask_j = down_valid[:, None, :]
    inv_dlen = (1.0 / jnp.maximum(down_len.astype(jnp.float32), 1.0)).reshape(B, 1, 1)

    # --- Adversarial classifier (grad_reverse == identity in forward) --------
    adv = _classifier(content, dmask3, inv_dlen, pp["w_cls"], pp["b_cls"],
                      time_tile=JT)

    # --- Upsampling: blocked-K fused logits+softmax+bmm ----------------------
    attn_up, up_rep = _attention(alpha3, kmask_j, content,
                                 q_len=Tp, q_tile=TT, k_tile=JT, down=False)
    # attn_up: [B,Tp,Tdp] bf16   up_rep: [B,Tp,DP] bf16

    # --- Decoder + mel linear (fused) ----------------------------------------
    mel_out = _decoder_mel(up_rep, style, mask3,
                           pp["w_dec1"], pp["b_dec1"], pp["w_dec2"], pp["b_dec2"],
                           pp["w_mel"], pp["b_mel"], time_tile=TT)    # [B,Tp,MP] bf16

    # --- Postnet (time-tiled with halo, 3 fused convs + residual) ------------
    # TODO(synk): postnet BatchNorm1d omitted (stats-free synthetic params).
    mel_post = _postnet(mel_out, pp["pw1"], pp["pb1"], pp["pw2"], pp["pb2"],
                        pp["pw3"], pp["pb3"], t_valid=T, time_tile=TT)  # [B,Tp,MP] f32

    return {
        "style_embedding": style[:, 0, :model_dim],
        "content_embedding": content[:, :Td, :model_dim].astype(jnp.float32),
        # attention maps kept bf16 to avoid an extra O(T^2) HBM copy
        "downsampled_attn": attn_down[:, :Td, :T],
        "upsampled_attn": attn_up[:, :T, :Td],
        "alpha_A": alpha,
        "alpha_B": alpha,
        "upsampled_mel_len": mel_len,
        "mel_outputs": mel_out[:, :T, :mel_dim].astype(jnp.float32),
        "mel_outputs_postnet": mel_post[:, :T, :mel_dim],
        "adv_content_speaker_logits": adv[:, 0, :n_speakers],
        "upsampled_mel_mask": valid[:, :T],
    }


# --------------------------------- main ---------------------------------------

if __name__ == "__main__":
    B, T = 2, 16
    MEL_DIM, MODEL_DIM = 8, 32
    N_SPEAKERS, PN_CH, KSZ = 4, 32, 5

    raw_params = init_params(jax.random.PRNGKey(42), MEL_DIM, MODEL_DIM,
                             N_SPEAKERS, PN_CH, KSZ)
    pp = prepare_params(raw_params, MEL_DIM, MODEL_DIM, N_SPEAKERS, PN_CH)

    key = jax.random.PRNGKey(0)
    k1, k2 = jax.random.split(key)
    mel_A = jax.random.normal(k1, (B, T, MEL_DIM), jnp.float32)
    rhythm_A = jax.random.uniform(k2, (B, T), jnp.float32)
    mel_len_A = jnp.array([16, 12], jnp.int32)

    @jax.jit
    def run(params, mel, mel_len, rhythm):
        return forward(params, mel, mel_len, rhythm,
                       mel_dim=MEL_DIM, model_dim=MODEL_DIM,
                       n_speakers=N_SPEAKERS)

    outputs = run(pp, mel_A, mel_len_A, rhythm_A)
    outputs = jax.block_until_ready(outputs)

    # sanity-check a few shapes
    assert outputs["mel_outputs_postnet"].shape == (B, T, MEL_DIM)
    assert outputs["mel_outputs"].shape == (B, T, MEL_DIM)
    assert outputs["content_embedding"].shape == (B, T // DOWNSAMPLE_FACTOR, MODEL_DIM)
    assert outputs["downsampled_attn"].shape == (B, T // DOWNSAMPLE_FACTOR, T)
    assert outputs["upsampled_attn"].shape == (B, T, T // DOWNSAMPLE_FACTOR)
    assert outputs["adv_content_speaker_logits"].shape == (B, N_SPEAKERS)
    assert outputs["style_embedding"].shape == (B, MODEL_DIM)
    print("KERNEL_OK")
</pallas_src>

<mosaic_0001>
module attributes {stable_mosaic.version = 11 : i64} {
  func.func @_style_kernel(%arg0: i32, %arg1: i32, %arg2: memref<1x16x128xbf16, #tpu.memory_space<vmem>>, %arg3: memref<1x16x1xf32, #tpu.memory_space<vmem>>, %arg4: memref<1x1x1xf32, #tpu.memory_space<vmem>>, %arg5: memref<128x128xbf16, #tpu.memory_space<vmem>>, %arg6: memref<1x128xf32, #tpu.memory_space<vmem>>, %arg7: memref<128x128xbf16, #tpu.memory_space<vmem>>, %arg8: memref<1x128xf32, #tpu.memory_space<vmem>>, %arg9: memref<1x1x128xf32, #tpu.memory_space<vmem>>, %arg10: memref<1x128xf32, #tpu.memory_space<vmem>>) attributes {dimension_semantics = [#tpu.dimension_semantics<parallel>, #tpu.dimension_semantics<arbitrary>], iteration_bounds = array<i64: 2, 1>, scalar_prefetch = 0 : i64, scratch_operands = 1 : i64, tpu.core_type = #tpu.core_type<tc>, window_params = [{transform_indices = @transform_0, window_bounds = array<i64: 1, 16, 128>}, {transform_indices = @transform_1, window_bounds = array<i64: 1, 16, 1>}, {transform_indices = @transform_2, window_bounds = array<i64: 1, 1, 1>}, {pipeline_mode = #tpu.pipeline_mode<synchronous>, transform_indices = @transform_3, window_bounds = array<i64: 128, 128>}, {pipeline_mode = #tpu.pipeline_mode<synchronous>, transform_indices = @transform_4, window_bounds = array<i64: 1, 128>}, {pipeline_mode = #tpu.pipeline_mode<synchronous>, transform_indices = @transform_5, window_bounds = array<i64: 128, 128>}, {pipeline_mode = #tpu.pipeline_mode<synchronous>, transform_indices = @transform_6, window_bounds = array<i64: 1, 128>}, {transform_indices = @transform_7, window_bounds = array<i64: 1, 1, 128>}]} {
    %c0_i32 = arith.constant 0 : i32
    %0 = arith.cmpi eq, %arg1, %c0_i32 : i32
    %1 = arith.extui %0 : i1 to i32
    %c0_i32_0 = arith.constant 0 : i32
    %2 = arith.cmpi ne, %1, %c0_i32_0 : i32
    scf.if %2 {
      %cst_18 = arith.constant 0.000000e+00 : f32
      %24 = vector.broadcast %cst_18 : f32 to vector<1x128xf32>
      %c0_19 = arith.constant 0 : index
      %c0_20 = arith.constant 0 : index
      %25 = vector.load %arg10[%c0_19, %c0_20] : memref<1x128xf32, #tpu.memory_space<vmem>>, vector<1x128xf32>
      tpu.vector_store %arg10[%c0_19, %c0_20], %24 {strides = array<i32>} : memref<1x128xf32, #tpu.memory_space<vmem>>, vector<1x128xf32>,
    } else {
    }
    %c0 = arith.constant 0 : index
    %c0_1 = arith.constant 0 : index
    %c0_2 = arith.constant 0 : index
    %3 = vector.load %arg2[%c0, %c0_1, %c0_2] : memref<1x16x128xbf16, #tpu.memory_space<vmem>>, vector<1x16x128xbf16>
    %4 = vector.shape_cast %3 : vector<1x16x128xbf16> to vector<16x128xbf16>
    %c0_3 = arith.constant 0 : index
    %c0_4 = arith.constant 0 : index
    %c0_5 = arith.constant 0 : index
    %5 = vector.load %arg3[%c0_3, %c0_4, %c0_5] : memref<1x16x1xf32, #tpu.memory_space<vmem>>, vector<1x16x1xf32>
    %6 = vector.shape_cast %5 : vector<1x16x1xf32> to vector<16x1xf32>
    %c0_6 = arith.constant 0 : index
    %c0_7 = arith.constant 0 : index
    %7 = vector.load %arg5[%c0_6, %c0_7] : memref<128x128xbf16, #tpu.memory_space<vmem>>, vector<128x128xbf16>
    %cst = arith.constant dense<0.000000e+00> : vector<16x128xf32>
    %8 = tpu.matmul %4, %7, %cst {dimension_numbers = #tpu.dot_dimension_numbers<[1], [0], [0], [1], [0, 0, 1, 1], [], []>} : vector<16x128xbf16>, vector<128x128xbf16>, vector<16x128xf32> -> vector<16x128xf32>
    %c0_8 = arith.constant 0 : index
    %c0_9 = arith.constant 0 : index
    %9 = vector.load %arg6[%c0_8, %c0_9] : memref<1x128xf32, #tpu.memory_space<vmem>>, vector<1x128xf32>
    %10 = vector.broadcast %9 : vector<1x128xf32> to vector<16x128xf32>
    %11 = arith.addf %8, %10 : vector<16x128xf32>
    %cst_10 = arith.constant 0.000000e+00 : f32
    %12 = vector.broadcast %cst_10 : f32 to vector<16x128xf32>
    %13 = arith.maximumf %11, %12 : vector<16x128xf32>
    %c0_11 = arith.constant 0 : index
    %c0_12 = arith.constant 0 : index
    %14 = vector.load %arg10[%c0_11, %c0_12] : memref<1x128xf32, #tpu.memory_space<vmem>>, vector<1x128xf32>
    %15 = vector.broadcast %6 : vector<16x1xf32> to vector<16x128xf32>
    %16 = arith.mulf %13, %15 : vector<16x128xf32>
    %cst_13 = arith.constant dense<0.000000e+00> : vector<128xf32>
    %17 = vector.multi_reduction <add>, %16, %cst_13 [0] : vector<16x128xf32> to vector<128xf32>
    %18 = vector.shape_cast %17 : vector<128xf32> to vector<1x128xf32>
    %19 = arith.addf %14, %18 : vector<1x128xf32>
    %c0_14 = arith.constant 0 : index
    %c0_15 = arith.constant 0 : index
    %20 = vector.load %arg10[%c0_14, %c0_15] : memref<1x128xf32, #tpu.memory_space<vmem>>, vector<1x128xf32>
    tpu.vector_store %arg10[%c0_14, %c0_15], %19 {strides = array<i32>} : memref<1x128xf32, #tpu.memory_space<vmem>>, vector<1x128xf32>,
    %c0_i32_16 = arith.constant 0 : i32
    %21 = arith.cmpi eq, %arg1, %c0_i32_16 : i32
    %22 = arith.extui %21 : i1 to i32
    %c0_i32_17 = arith.constant 0 : i32
    %23 = arith.cmpi ne, %22, %c0_i32_17 : i32
    scf.if %23 {
      %c0_18 = arith.constant 0 : index
      %c0_19 = arith.constant 0 : index
      %24 = vector.load %arg10[%c0_18, %c0_19] : memref<1x128xf32, #tpu.memory_space<vmem>>, vector<1x128xf32>
      %c0_20 = arith.constant 0 : index
      %c0_21 = arith.constant 0 : index
      %c0_22 = arith.constant 0 : index
      %25 = vector.load %arg4[%c0_20, %c0_21, %c0_22] : memref<1x1x1xf32, #tpu.memory_space<vmem>>, vector<1x1x1xf32>
      %26 = vector.shape_cast %25 : vector<1x1x1xf32> to vector<1x1xf32>
      %27 = vector.broadcast %26 : vector<1x1xf32> to vector<1x128xf32>
      %28 = arith.mulf %24, %27 : vector<1x128xf32>
      %29 = arith.truncf %28 : vector<1x128xf32> to vector<1x128xbf16>
      %c0_23 = arith.constant 0 : index
      %c0_24 = arith.constant 0 : index
      %30 = vector.load %arg7[%c0_23, %c0_24] : memref<128x128xbf16, #tpu.memory_space<vmem>>, vector<128x128xbf16>
      %cst_25 = arith.constant dense<0.000000e+00> : vector<1x128xf32>
      %31 = tpu.matmul %29, %30, %cst_25 {dimension_numbers = #tpu.dot_dimension_numbers<[1], [0], [0], [1], [0, 0, 1, 1], [], []>} : vector<1x128xbf16>, vector<128x128xbf16>, vector<1x128xf32> -> vector<1x128xf32>
      %c0_26 = arith.constant 0 : index
      %c0_27 = arith.constant 0 : index
      %32 = vector.load %arg8[%c0_26, %c0_27] : memref<1x128xf32, #tpu.memory_space<vmem>>, vector<1x128xf32>
      %33 = arith.addf %31, %32 : vector<1x128xf32>
      %c0_28 = arith.constant 0 : index
      %c0_29 = arith.constant 0 : index
      %c0_30 = arith.constant 0 : index
      %34 = vector.load %arg9[%c0_28, %c0_29, %c0_30] : memref<1x1x128xf32, #tpu.memory_space<vmem>>, vector<1x1x128xf32>
      %35 = vector.shape_cast %34 : vector<1x1x128xf32> to vector<1x128xf32>
      %36 = vector.shape_cast %33 : vector<1x128xf32> to vector<1x1x128xf32>
      tpu.vector_store %arg9[%c0_28, %c0_29, %c0_30], %36 {strides = array<i32>} : memref<1x1x128xf32, #tpu.memory_space<vmem>>, vector<1x1x128xf32>,
    } else {
    }
    return
  }
  func.func @transform_0(%arg0: i32, %arg1: i32) -> (i32, i32, i32) {
    %c0_i32 = arith.constant 0 : i32
    %c0_i32_0 = arith.constant 0 : i32
    return %arg0, %arg1, %c0_i32 : i32, i32, i32
  }
  func.func @transform_1(%arg0: i32, %arg1: i32) -> (i32, i32, i32) {
    %c0_i32 = arith.constant 0 : i32
    %c0_i32_0 = arith.constant 0 : i32
    return %arg0, %arg1, %c0_i32 : i32, i32, i32
  }
  func.func @transform_2(%arg0: i32, %arg1: i32) -> (i32, i32, i32) {
    %c0_i32 = arith.constant 0 : i32
    %c0_i32_0 = arith.constant 0 : i32
    %c0_i32_1 = arith.constant 0 : i32
    return %arg0, %c0_i32, %c0_i32_0 : i32, i32, i32
  }
  func.func @transform_3(%arg0: i32, %arg1: i32) -> (i32, i32) {
    %c0_i32 = arith.constant 0 : i32
    %c0_i32_0 = arith.constant 0 : i32
    %c0_i32_1 = arith.constant 0 : i32
    return %c0_i32, %c0_i32_0 : i32, i32
  }
  func.func @transform_4(%arg0: i32, %arg1: i32) -> (i32, i32) {
    %c0_i32 = arith.constant 0 : i32
    %c0_i32_0 = arith.constant 0 : i32
    %c0_i32_1 = arith.constant 0 : i32
    return %c0_i32, %c0_i32_0 : i32, i32
  }
  func.func @transform_5(%arg0: i32, %arg1: i32) -> (i32, i32) {
    %c0_i32 = arith.constant 0 : i32
    %c0_i32_0 = arith.constant 0 : i32
    %c0_i32_1 = arith.constant 0 : i32
    return %c0_i32, %c0_i32_0 : i32, i32
  }
  func.func @transform_6(%arg0: i32, %arg1: i32) -> (i32, i32) {
    %c0_i32 = arith.constant 0 : i32
    %c0_i32_0 = arith.constant 0 : i32
    %c0_i32_1 = arith.constant 0 : i32
    return %c0_i32, %c0_i32_0 : i32, i32
  }
  func.func @transform_7(%arg0: i32, %arg1: i32) -> (i32, i32, i32) {
    %c0_i32 = arith.constant 0 : i32
    %c0_i32_0 = arith.constant 0 : i32
    %c0_i32_1 = arith.constant 0 : i32
    return %arg0, %c0_i32, %c0_i32_0 : i32, i32, i32
  }
}

module attributes {stable_mosaic.version = 11 : i64} {
  func.func @_attn_kernel(%arg0: i32, %arg1: i32, %arg2: i32, %arg3: memref<1x1x1xf32, #tpu.memory_space<vmem>>, %arg4: memref<1x1x16xf32, #tpu.memory_space<vmem>>, %arg5: memref<1x1x16xf32, #tpu.memory_space<vmem>>, %arg6: memref<1x16x128xbf16, #tpu.memory_space<vmem>>, %arg7: memref<1x8x16xbf16, #tpu.memory_space<vmem>>, %arg8: memref<1x8x128xbf16, #tpu.memory_space<vmem>>, %arg9: memref<8x1xf32, #tpu.memory_space<vmem>>, %arg10: memref<8x128xf32, #tpu.memory_space<vmem>>) attributes {dimension_semantics = [#tpu.dimension_semantics<parallel>, #tpu.dimension_semantics<parallel>, #tpu.dimension_semantics<arbitrary>], iteration_bounds = array<i64: 2, 1, 1>, scalar_prefetch = 0 : i64, scratch_operands = 2 : i64, tpu.core_type = #tpu.core_type<tc>, window_params = [{transform_indices = @transform_0, window_bounds = array<i64: 1, 1, 1>}, {transform_indices = @transform_1, window_bounds = array<i64: 1, 1, 16>}, {transform_indices = @transform_2, window_bounds = array<i64: 1, 1, 16>}, {transform_indices = @transform_3, window_bounds = array<i64: 1, 16, 128>}, {transform_indices = @transform_4, window_bounds = array<i64: 1, 8, 16>}, {transform_indices = @transform_5, window_bounds = array<i64: 1, 8, 128>}]} {
    %c8_i32 = arith.constant 8 : i32
    %0 = arith.muli %arg1, %c8_i32 : i32
    %1 = arith.sitofp %0 : i32 to f32
    %c0 = arith.constant 0 : index
    %c0_0 = arith.constant 0 : index
    %c0_1 = arith.constant 0 : index
    %2 = vector.load %arg3[%c0, %c0_0, %c0_1] : memref<1x1x1xf32, #tpu.memory_space<vmem>>, vector<1x1x1xf32>
    %3 = vector.shape_cast %2 : vector<1x1x1xf32> to vector<1x1xf32>
    %4 = tpu.iota {dimensions = array<i32: 0>} : vector<8x16xi32>
    %5 = arith.sitofp %4 : vector<8x16xi32> to vector<8x16xf32>
    %6 = vector.broadcast %1 : f32 to vector<8x16xf32>
    %7 = arith.addf %5, %6 : vector<8x16xf32>
    %8 = tpu.iota {dimensions = array<i32: 1>} : vector<8x16xi32>
    %9 = arith.sitofp %8 : vector<8x16xi32> to vector<8x16xf32>
    %c0_i32 = arith.constant 0 : i32
    %10 = arith.cmpi eq, %arg2, %c0_i32 : i32
    %11 = arith.extui %10 : i1 to i32
    %c0_i32_2 = arith.constant 0 : i32
    %12 = arith.cmpi ne, %11, %c0_i32_2 : i32
    scf.if %12 {
      %cst_23 = arith.constant 0.000000e+00 : f32
      %49 = vector.broadcast %cst_23 : f32 to vector<8x1xf32>
      %c0_24 = arith.constant 0 : index
      %c0_25 = arith.constant 0 : index
      %c0_26 = arith.constant 0 : index
      %50 = vector.load %arg4[%c0_24, %c0_25, %c0_26] : memref<1x1x16xf32, #tpu.memory_space<vmem>>, vector<1x1x16xf32>
      %51 = vector.shape_cast %50 : vector<1x1x16xf32> to vector<1x16xf32>
      %cst_27 = arith.constant 0.000000e+00 : f32
      %52 = vector.broadcast %cst_27 : f32 to vector<8x16xf32>
      %53 = arith.addf %9, %52 : vector<8x16xf32>
      %54 = vector.broadcast %3 : vector<1x1xf32> to vector<8x16xf32>
      %55 = arith.addf %7, %54 : vector<8x16xf32>
      %cst_28 = arith.constant 2.000000e+00 : f32
      %56 = vector.broadcast %cst_28 : f32 to vector<8x16xf32>
      %57 = arith.mulf %55, %56 : vector<8x16xf32>
      %58 = arith.subf %53, %57 : vector<8x16xf32>
      %59 = arith.mulf %58, %58 : vector<8x16xf32>
      %cst_29 = arith.constant 0.000000e+00 : f32
      %60 = vector.broadcast %cst_29 : f32 to vector<8x16xf32>
      %61 = arith.subf %60, %59 : vector<8x16xf32>
      %cst_30 = arith.constant 2.000000e+00 : f32
      %62 = vector.broadcast %cst_30 : f32 to vector<8x16xf32>
      %63 = arith.divf %61, %62 : vector<8x16xf32>
      %64 = math.exp %63 : vector<8x16xf32>
      %65 = vector.broadcast %51 : vector<1x16xf32> to vector<8x16xf32>
      %66 = arith.mulf %64, %65 : vector<8x16xf32>
      %cst_31 = arith.constant dense<0.000000e+00> : vector<8xf32>
      %67 = vector.multi_reduction <add>, %66, %cst_31 [1] : vector<8x16xf32> to vector<8xf32>
      %68 = vector.shape_cast %67 : vector<8xf32> to vector<8x1xf32>
      %69 = arith.addf %49, %68 : vector<8x1xf32>
      %cst_32 = arith.constant 9.99999971E-10 : f32
      %70 = vector.broadcast %cst_32 : f32 to vector<8x1xf32>
      %71 = arith.maximumf %69, %70 : vector<8x1xf32>
      %cst_33 = arith.constant 1.000000e+00 : f32
      %72 = vector.broadcast %cst_33 : f32 to vector<8x1xf32>
      %73 = arith.divf %72, %71 : vector<8x1xf32>
      %c0_34 = arith.constant 0 : index
      %c0_35 = arith.constant 0 : index
      %74 = vector.load %arg9[%c0_34, %c0_35] : memref<8x1xf32, #tpu.memory_space<vmem>>, vector<8x1xf32>
      tpu.vector_store %arg9[%c0_34, %c0_35], %73 {strides = array<i32>} : memref<8x1xf32, #tpu.memory_space<vmem>>, vector<8x1xf32>,
      %cst_36 = arith.constant 0.000000e+00 : f32
      %75 = vector.broadcast %cst_36 : f32 to vector<8x128xf32>
      %c0_37 = arith.constant 0 : index
      %c0_38 = arith.constant 0 : index
      %76 = vector.load %arg10[%c0_37, %c0_38] : memref<8x128xf32, #tpu.memory_space<vmem>>, vector<8x128xf32>
      tpu.vector_store %arg10[%c0_37, %c0_38], %75 {strides = array<i32>} : memref<8x128xf32, #tpu.memory_space<vmem>>, vector<8x128xf32>,
    } else {
    }
    %c0_3 = arith.constant 0 : index
    %c0_4 = arith.constant 0 : index
    %c0_5 = arith.constant 0 : index
    %13 = vector.load %arg5[%c0_3, %c0_4, %c0_5] : memref<1x1x16xf32, #tpu.memory_space<vmem>>, vector<1x1x16xf32>
    %14 = vector.shape_cast %13 : vector<1x1x16xf32> to vector<1x16xf32>
    %c16_i32 = arith.constant 16 : i32
    %15 = arith.muli %arg2, %c16_i32 : i32
    %16 = arith.sitofp %15 : i32 to f32
    %17 = vector.broadcast %16 : f32 to vector<8x16xf32>
    %18 = arith.addf %9, %17 : vector<8x16xf32>
    %19 = vector.broadcast %3 : vector<1x1xf32> to vector<8x16xf32>
    %20 = arith.addf %7, %19 : vector<8x16xf32>
    %cst = arith.constant 2.000000e+00 : f32
    %21 = vector.broadcast %cst : f32 to vector<8x16xf32>
    %22 = arith.mulf %20, %21 : vector<8x16xf32>
    %23 = arith.subf %18, %22 : vector<8x16xf32>
    %24 = arith.mulf %23, %23 : vector<8x16xf32>
    %cst_6 = arith.constant 0.000000e+00 : f32
    %25 = vector.broadcast %cst_6 : f32 to vector<8x16xf32>
    %26 = arith.subf %25, %24 : vector<8x16xf32>
    %cst_7 = arith.constant 2.000000e+00 : f32
    %27 = vector.broadcast %cst_7 : f32 to vector<8x16xf32>
    %28 = arith.divf %26, %27 : vector<8x16xf32>
    %29 = math.exp %28 : vector<8x16xf32>
    %30 = vector.broadcast %14 : vector<1x16xf32> to vector<8x16xf32>
    %31 = arith.mulf %29, %30 : vector<8x16xf32>
    %c0_8 = arith.constant 0 : index
    %c0_9 = arith.constant 0 : index
    %32 = vector.load %arg9[%c0_8, %c0_9] : memref<8x1xf32, #tpu.memory_space<vmem>>, vector<8x1xf32>
    %33 = vector.broadcast %32 : vector<8x1xf32> to vector<8x16xf32>
    %34 = arith.mulf %31, %33 : vector<8x16xf32>
    %35 = arith.truncf %34 : vector<8x16xf32> to vector<8x16xbf16>
    %c0_10 = arith.constant 0 : index
    %c0_11 = arith.constant 0 : index
    %c0_12 = arith.constant 0 : index
    %36 = vector.load %arg7[%c0_10, %c0_11, %c0_12] : memref<1x8x16xbf16, #tpu.memory_space<vmem>>, vector<1x8x16xbf16>
    %37 = vector.shape_cast %36 : vector<1x8x16xbf16> to vector<8x16xbf16>
    %38 = vector.shape_cast %35 : vector<8x16xbf16> to vector<1x8x16xbf16>
    tpu.vector_store %arg7[%c0_10, %c0_11, %c0_12], %38 {strides = array<i32>} : memref<1x8x16xbf16, #tpu.memory_space<vmem>>, vector<1x8x16xbf16>,
    %c0_13 = arith.constant 0 : index
    %c0_14 = arith.constant 0 : index
    %39 = vector.load %arg10[%c0_13, %c0_14] : memref<8x128xf32, #tpu.memory_space<vmem>>, vector<8x128xf32>
    %40 = arith.truncf %34 : vector<8x16xf32> to vector<8x16xbf16>
    %c0_15 = arith.constant 0 : index
    %c0_16 = arith.constant 0 : index
    %c0_17 = arith.constant 0 : index
    %41 = vector.load %arg6[%c0_15, %c0_16, %c0_17] : memref<1x16x128xbf16, #tpu.memory_space<vmem>>, vector<1x16x128xbf16>
    %42 = vector.shape_cast %41 : vector<1x16x128xbf16> to vector<16x128xbf16>
    %cst_18 = arith.constant dense<0.000000e+00> : vector<8x128xf32>
    %43 = tpu.matmul %40, %42, %cst_18 {dimension_numbers = #tpu.dot_dimension_numbers<[1], [0], [0], [1], [0, 0, 1, 1], [], []>} : vector<8x16xbf16>, vector<16x128xbf16>, vector<8x128xf32> -> vector<8x128xf32>
    %44 = arith.addf %39, %43 : vector<8x128xf32>
    %c0_19 = arith.constant 0 : index
    %c0_20 = arith.constant 0 : index
    %45 = vector.load %arg10[%c0_19, %c0_20] : memref<8x128xf32, #tpu.memory_space<vmem>>, vector<8x128xf32>
    tpu.vector_store %arg10[%c0_19, %c0_20], %44 {strides = array<i32>} : memref<8x128xf32, #tpu.memory_space<vmem>>, vector<8x128xf32>,
    %c0_i32_21 = arith.constant 0 : i32
    %46 = arith.cmpi eq, %arg2, %c0_i32_21 : i32
    %47 = arith.extui %46 : i1 to i32
    %c0_i32_22 = arith.constant 0 : i32
    %48 = arith.cmpi ne, %47, %c0_i32_22 : i32
    scf.if %48 {
      %c0_23 = arith.constant 0 : index
      %c0_24 = arith.constant 0 : index
      %49 = vector.load %arg10[%c0_23, %c0_24] : memref<8x128xf32, #tpu.memory_space<vmem>>, vector<8x128xf32>
      %50 = arith.truncf %49 : vector<8x128xf32> to vector<8x128xbf16>
      %c0_25 = arith.constant 0 : index
      %c0_26 = arith.constant 0 : index
      %c0_27 = arith.constant 0 : index
      %51 = vector.load %arg8[%c0_25, %c0_26, %c0_27] : memref<1x8x128xbf16, #tpu.memory_space<vmem>>, vector<1x8x128xbf16>
      %52 = vector.shape_cast %51 : vector<1x8x128xbf16> to vector<8x128xbf16>
      %53 = vector.shape_cast %50 : vector<8x128xbf16> to vector<1x8x128xbf16>
      tpu.vector_store %arg8[%c0_25, %c0_26, %c0_27], %53 {strides = array<i32>} : memref<1x8x128xbf16, #tpu.memory_space<vmem>>, vector<1x8x128xbf16>,
    } else {
    }
    return
  }
  func.func @transform_0(%arg0: i32, %arg1: i32, %arg2: i32) -> (i32, i32, i32) {
    %c0_i32 = arith.constant 0 : i32
    %c0_i32_0 = arith.constant 0 : i32
    %c0_i32_1 = arith.constant 0 : i32
    return %arg0, %c0_i32, %c0_i32_0 : i32, i32, i32
  }
  func.func @transform_1(%arg0: i32, %arg1: i32, %arg2: i32) -> (i32, i32, i32) {
    %c0_i32 = arith.constant 0 : i32
    %c0_i32_0 = arith.constant 0 : i32
    %c0_i32_1 = arith.constant 0 : i32
    return %arg0, %c0_i32, %c0_i32_0 : i32, i32, i32
  }
  func.func @transform_2(%arg0: i32, %arg1: i32, %arg2: i32) -> (i32, i32, i32) {
    %c0_i32 = arith.constant 0 : i32
    %c0_i32_0 = arith.constant 0 : i32
    return %arg0, %c0_i32, %arg2 : i32, i32, i32
  }
  func.func @transform_3(%arg0: i32, %arg1: i32, %arg2: i32) -> (i32, i32, i32) {
    %c0_i32 = arith.constant 0 : i32
    %c0_i32_0 = arith.constant 0 : i32
    return %arg0, %arg2, %c0_i32 : i32, i32, i32
  }
  func.func @transform_4(%arg0: i32, %arg1: i32, %arg2: i32) -> (i32, i32, i32) {
    %c0_i32 = arith.constant 0 : i32
    return %arg0, %arg1, %arg2 : i32, i32, i32
  }
  func.func @transform_5(%arg0: i32, %arg1: i32, %arg2: i32) -> (i32, i32, i32) {
    %c0_i32 = arith.constant 0 : i32
    %c0_i32_0 = arith.constant 0 : i32
    return %arg0, %arg1, %c0_i32 : i32, i32, i32
  }
}

module attributes {stable_mosaic.version = 11 : i64} {
  func.func @_attn_kernel(%arg0: i32, %arg1: i32, %arg2: i32, %arg3: memref<1x1x1xf32, #tpu.memory_space<vmem>>, %arg4: memref<1x1x8xf32, #tpu.memory_space<vmem>>, %arg5: memref<1x1x8xf32, #tpu.memory_space<vmem>>, %arg6: memref<1x8x128xbf16, #tpu.memory_space<vmem>>, %arg7: memref<1x16x8xbf16, #tpu.memory_space<vmem>>, %arg8: memref<1x16x128xbf16, #tpu.memory_space<vmem>>, %arg9: memref<16x1xf32, #tpu.memory_space<vmem>>, %arg10: memref<16x128xf32, #tpu.memory_space<vmem>>) attributes {dimension_semantics = [#tpu.dimension_semantics<parallel>, #tpu.dimension_semantics<parallel>, #tpu.dimension_semantics<arbitrary>], iteration_bounds = array<i64: 2, 1, 1>, scalar_prefetch = 0 : i64, scratch_operands = 2 : i64, tpu.core_type = #tpu.core_type<tc>, window_params = [{transform_indices = @transform_0, window_bounds = array<i64: 1, 1, 1>}, {transform_indices = @transform_1, window_bounds = array<i64: 1, 1, 8>}, {transform_indices = @transform_2, window_bounds = array<i64: 1, 1, 8>}, {transform_indices = @transform_3, window_bounds = array<i64: 1, 8, 128>}, {transform_indices = @transform_4, window_bounds = array<i64: 1, 16, 8>}, {transform_indices = @transform_5, window_bounds = array<i64: 1, 16, 128>}]} {
    %c16_i32 = arith.constant 16 : i32
    %0 = arith.muli %arg1, %c16_i32 : i32
    %1 = arith.sitofp %0 : i32 to f32
    %c0 = arith.constant 0 : index
    %c0_0 = arith.constant 0 : index
    %c0_1 = arith.constant 0 : index
    %2 = vector.load %arg3[%c0, %c0_0, %c0_1] : memref<1x1x1xf32, #tpu.memory_space<vmem>>, vector<1x1x1xf32>
    %3 = vector.shape_cast %2 : vector<1x1x1xf32> to vector<1x1xf32>
    %4 = tpu.iota {dimensions = array<i32: 0>} : vector<16x8xi32>
    %5 = arith.sitofp %4 : vector<16x8xi32> to vector<16x8xf32>
    %6 = vector.broadcast %1 : f32 to vector<16x8xf32>
    %7 = arith.addf %5, %6 : vector<16x8xf32>
    %8 = tpu.iota {dimensions = array<i32: 1>} : vector<16x8xi32>
    %9 = arith.sitofp %8 : vector<16x8xi32> to vector<16x8xf32>
    %c0_i32 = arith.constant 0 : i32
    %10 = arith.cmpi eq, %arg2, %c0_i32 : i32
    %11 = arith.extui %10 : i1 to i32
    %c0_i32_2 = arith.constant 0 : i32
    %12 = arith.cmpi ne, %11, %c0_i32_2 : i32
    scf.if %12 {
      %cst_22 = arith.constant 0.000000e+00 : f32
      %47 = vector.broadcast %cst_22 : f32 to vector<16x1xf32>
      %c0_23 = arith.constant 0 : index
      %c0_24 = arith.constant 0 : index
      %c0_25 = arith.constant 0 : index
      %48 = vector.load %arg4[%c0_23, %c0_24, %c0_25] : memref<1x1x8xf32, #tpu.memory_space<vmem>>, vector<1x1x8xf32>
      %49 = vector.shape_cast %48 : vector<1x1x8xf32> to vector<1x8xf32>
      %cst_26 = arith.constant 0.000000e+00 : f32
      %50 = vector.broadcast %cst_26 : f32 to vector<16x8xf32>
      %51 = arith.addf %9, %50 : vector<16x8xf32>
      %cst_27 = arith.constant 2.000000e+00 : f32
      %52 = vector.broadcast %cst_27 : f32 to vector<16x8xf32>
      %53 = arith.divf %7, %52 : vector<16x8xf32>
      %54 = vector.broadcast %3 : vector<1x1xf32> to vector<16x8xf32>
      %55 = arith.addf %51, %54 : vector<16x8xf32>
      %56 = arith.subf %53, %55 : vector<16x8xf32>
      %57 = arith.mulf %56, %56 : vector<16x8xf32>
      %cst_28 = arith.constant 0.000000e+00 : f32
      %58 = vector.broadcast %cst_28 : f32 to vector<16x8xf32>
      %59 = arith.subf %58, %57 : vector<16x8xf32>
      %60 = math.exp %59 : vector<16x8xf32>
      %61 = vector.broadcast %49 : vector<1x8xf32> to vector<16x8xf32>
      %62 = arith.mulf %60, %61 : vector<16x8xf32>
      %cst_29 = arith.constant dense<0.000000e+00> : vector<16xf32>
      %63 = vector.multi_reduction <add>, %62, %cst_29 [1] : vector<16x8xf32> to vector<16xf32>
      %64 = vector.shape_cast %63 : vector<16xf32> to vector<16x1xf32>
      %65 = arith.addf %47, %64 : vector<16x1xf32>
      %cst_30 = arith.constant 9.99999971E-10 : f32
      %66 = vector.broadcast %cst_30 : f32 to vector<16x1xf32>
      %67 = arith.maximumf %65, %66 : vector<16x1xf32>
      %cst_31 = arith.constant 1.000000e+00 : f32
      %68 = vector.broadcast %cst_31 : f32 to vector<16x1xf32>
      %69 = arith.divf %68, %67 : vector<16x1xf32>
      %c0_32 = arith.constant 0 : index
      %c0_33 = arith.constant 0 : index
      %70 = vector.load %arg9[%c0_32, %c0_33] : memref<16x1xf32, #tpu.memory_space<vmem>>, vector<16x1xf32>
      tpu.vector_store %arg9[%c0_32, %c0_33], %69 {strides = array<i32>} : memref<16x1xf32, #tpu.memory_space<vmem>>, vector<16x1xf32>,
      %cst_34 = arith.constant 0.000000e+00 : f32
      %71 = vector.broadcast %cst_34 : f32 to vector<16x128xf32>
      %c0_35 = arith.constant 0 : index
      %c0_36 = arith.constant 0 : index
      %72 = vector.load %arg10[%c0_35, %c0_36] : memref<16x128xf32, #tpu.memory_space<vmem>>, vector<16x128xf32>
      tpu.vector_store %arg10[%c0_35, %c0_36], %71 {strides = array<i32>} : memref<16x128xf32, #tpu.memory_space<vmem>>, vector<16x128xf32>,
    } else {
    }
    %c0_3 = arith.constant 0 : index
    %c0_4 = arith.constant 0 : index
    %c0_5 = arith.constant 0 : index
    %13 = vector.load %arg5[%c0_3, %c0_4, %c0_5] : memref<1x1x8xf32, #tpu.memory_space<vmem>>, vector<1x1x8xf32>
    %14 = vector.shape_cast %13 : vector<1x1x8xf32> to vector<1x8xf32>
    %c8_i32 = arith.constant 8 : i32
    %15 = arith.muli %arg2, %c8_i32 : i32
    %16 = arith.sitofp %15 : i32 to f32
    %17 = vector.broadcast %16 : f32 to vector<16x8xf32>
    %18 = arith.addf %9, %17 : vector<16x8xf32>
    %cst = arith.constant 2.000000e+00 : f32
    %19 = vector.broadcast %cst : f32 to vector<16x8xf32>
    %20 = arith.divf %7, %19 : vector<16x8xf32>
    %21 = vector.broadcast %3 : vector<1x1xf32> to vector<16x8xf32>
    %22 = arith.addf %18, %21 : vector<16x8xf32>
    %23 = arith.subf %20, %22 : vector<16x8xf32>
    %24 = arith.mulf %23, %23 : vector<16x8xf32>
    %cst_6 = arith.constant 0.000000e+00 : f32
    %25 = vector.broadcast %cst_6 : f32 to vector<16x8xf32>
    %26 = arith.subf %25, %24 : vector<16x8xf32>
    %27 = math.exp %26 : vector<16x8xf32>
    %28 = vector.broadcast %14 : vector<1x8xf32> to vector<16x8xf32>
    %29 = arith.mulf %27, %28 : vector<16x8xf32>
    %c0_7 = arith.constant 0 : index
    %c0_8 = arith.constant 0 : index
    %30 = vector.load %arg9[%c0_7, %c0_8] : memref<16x1xf32, #tpu.memory_space<vmem>>, vector<16x1xf32>
    %31 = vector.broadcast %30 : vector<16x1xf32> to vector<16x8xf32>
    %32 = arith.mulf %29, %31 : vector<16x8xf32>
    %33 = arith.truncf %32 : vector<16x8xf32> to vector<16x8xbf16>
    %c0_9 = arith.constant 0 : index
    %c0_10 = arith.constant 0 : index
    %c0_11 = arith.constant 0 : index
    %34 = vector.load %arg7[%c0_9, %c0_10, %c0_11] : memref<1x16x8xbf16, #tpu.memory_space<vmem>>, vector<1x16x8xbf16>
    %35 = vector.shape_cast %34 : vector<1x16x8xbf16> to vector<16x8xbf16>
    %36 = vector.shape_cast %33 : vector<16x8xbf16> to vector<1x16x8xbf16>
    tpu.vector_store %arg7[%c0_9, %c0_10, %c0_11], %36 {strides = array<i32>} : memref<1x16x8xbf16, #tpu.memory_space<vmem>>, vector<1x16x8xbf16>,
    %c0_12 = arith.constant 0 : index
    %c0_13 = arith.constant 0 : index
    %37 = vector.load %arg10[%c0_12, %c0_13] : memref<16x128xf32, #tpu.memory_space<vmem>>, vector<16x128xf32>
    %38 = arith.truncf %32 : vector<16x8xf32> to vector<16x8xbf16>
    %c0_14 = arith.constant 0 : index
    %c0_15 = arith.constant 0 : index
    %c0_16 = arith.constant 0 : index
    %39 = vector.load %arg6[%c0_14, %c0_15, %c0_16] : memref<1x8x128xbf16, #tpu.memory_space<vmem>>, vector<1x8x128xbf16>
    %40 = vector.shape_cast %39 : vector<1x8x128xbf16> to vector<8x128xbf16>
    %cst_17 = arith.constant dense<0.000000e+00> : vector<16x128xf32>
    %41 = tpu.matmul %38, %40, %cst_17 {dimension_numbers = #tpu.dot_dimension_numbers<[1], [0], [0], [1], [0, 0, 1, 1], [], []>} : vector<16x8xbf16>, vector<8x128xbf16>, vector<16x128xf32> -> vector<16x128xf32>
    %42 = arith.addf %37, %41 : vector<16x128xf32>
    %c0_18 = arith.constant 0 : index
    %c0_19 = arith.constant 0 : index
    %43 = vector.load %arg10[%c0_18, %c0_19] : memref<16x128xf32, #tpu.memory_space<vmem>>, vector<16x128xf32>
    tpu.vector_store %arg10[%c0_18, %c0_19], %42 {strides = array<i32>} : memref<16x128xf32, #tpu.memory_space<vmem>>, vector<16x128xf32>,
    %c0_i32_20 = arith.constant 0 : i32
    %44 = arith.cmpi eq, %arg2, %c0_i32_20 : i32
    %45 = arith.extui %44 : i1 to i32
    %c0_i32_21 = arith.constant 0 : i32
    %46 = arith.cmpi ne, %45, %c0_i32_21 : i32
    scf.if %46 {
      %c0_22 = arith.constant 0 : index
      %c0_23 = arith.constant 0 : index
      %47 = vector.load %arg10[%c0_22, %c0_23] : memref<16x128xf32, #tpu.memory_space<vmem>>, vector<16x128xf32>
      %48 = arith.truncf %47 : vector<16x128xf32> to vector<16x128xbf16>
      %c0_24 = arith.constant 0 : index
      %c0_25 = arith.constant 0 : index
      %c0_26 = arith.constant 0 : index
      %49 = vector.load %arg8[%c0_24, %c0_25, %c0_26] : memref<1x16x128xbf16, #tpu.memory_space<vmem>>, vector<1x16x128xbf16>
      %50 = vector.shape_cast %49 : vector<1x16x128xbf16> to vector<16x128xbf16>
      %51 = vector.shape_cast %48 : vector<16x128xbf16> to vector<1x16x128xbf16>
      tpu.vector_store %arg8[%c0_24, %c0_25, %c0_26], %51 {strides = array<i32>} : memref<1x16x128xbf16, #tpu.memory_space<vmem>>, vector<1x16x128xbf16>,
    } else {
    }
    return
  }
  func.func @transform_0(%arg0: i32, %arg1: i32, %arg2: i32) -> (i32, i32, i32) {
    %c0_i32 = arith.constant 0 : i32
    %c0_i32_0 = arith.constant 0 : i32
    %c0_i32_1 = arith.constant 0 : i32
    return %arg0, %c0_i32, %c0_i32_0 : i32, i32, i32
  }
  func.func @transform_1(%arg0: i32, %arg1: i32, %arg2: i32) -> (i32, i32, i32) {
    %c0_i32 = arith.constant 0 : i32
    %c0_i32_0 = arith.constant 0 : i32
    %c0_i32_1 = arith.constant 0 : i32
    return %arg0, %c0_i32, %c0_i32_0 : i32, i32, i32
  }
  func.func @transform_2(%arg0: i32, %arg1: i32, %arg2: i32) -> (i32, i32, i32) {
    %c0_i32 = arith.constant 0 : i32
    %c0_i32_0 = arith.constant 0 : i32
    return %arg0, %c0_i32, %arg2 : i32, i32, i32
  }
  func.func @transform_3(%arg0: i32, %arg1: i32, %arg2: i32) -> (i32, i32, i32) {
    %c0_i32 = arith.constant 0 : i32
    %c0_i32_0 = arith.constant 0 : i32
    return %arg0, %arg2, %c0_i32 : i32, i32, i32
  }
  func.func @transform_4(%arg0: i32, %arg1: i32, %arg2: i32) -> (i32, i32, i32) {
    %c0_i32 = arith.constant 0 : i32
    return %arg0, %arg1, %arg2 : i32, i32, i32
  }
  func.func @transform_5(%arg0: i32, %arg1: i32, %arg2: i32) -> (i32, i32, i32) {
    %c0_i32 = arith.constant 0 : i32
    %c0_i32_0 = arith.constant 0 : i32
    return %arg0, %arg1, %c0_i32 : i32, i32, i32
  }
}

module attributes {stable_mosaic.version = 11 : i64} {
  func.func @_enc_kernel(%arg0: i32, %arg1: i32, %arg2: memref<1x16x128xbf16, #tpu.memory_space<vmem>>, %arg3: memref<1x1x128xf32, #tpu.memory_space<vmem>>, %arg4: memref<1x16x1xf32, #tpu.memory_space<vmem>>, %arg5: memref<128x128xbf16, #tpu.memory_space<vmem>>, %arg6: memref<1x128xf32, #tpu.memory_space<vmem>>, %arg7: memref<128x128xbf16, #tpu.memory_space<vmem>>, %arg8: memref<1x128xf32, #tpu.memory_space<vmem>>, %arg9: memref<1x16x128xbf16, #tpu.memory_space<vmem>>) attributes {dimension_semantics = [#tpu.dimension_semantics<parallel>, #tpu.dimension_semantics<parallel>], iteration_bounds = array<i64: 2, 1>, scalar_prefetch = 0 : i64, scratch_operands = 0 : i64, tpu.core_type = #tpu.core_type<tc>, window_params = [{transform_indices = @transform_0, window_bounds = array<i64: 1, 16, 128>}, {transform_indices = @transform_1, window_bounds = array<i64: 1, 1, 128>}, {transform_indices = @transform_2, window_bounds = array<i64: 1, 16, 1>}, {pipeline_mode = #tpu.pipeline_mode<synchronous>, transform_indices = @transform_3, window_bounds = array<i64: 128, 128>}, {pipeline_mode = #tpu.pipeline_mode<synchronous>, transform_indices = @transform_4, window_bounds = array<i64: 1, 128>}, {pipeline_mode = #tpu.pipeline_mode<synchronous>, transform_indices = @transform_5, window_bounds = array<i64: 128, 128>}, {pipeline_mode = #tpu.pipeline_mode<synchronous>, transform_indices = @transform_6, window_bounds = array<i64: 1, 128>}, {transform_indices = @transform_7, window_bounds = array<i64: 1, 16, 128>}]} {
    %c0 = arith.constant 0 : index
    %c0_0 = arith.constant 0 : index
    %c0_1 = arith.constant 0 : index
    %0 = vector.load %arg2[%c0, %c0_0, %c0_1] : memref<1x16x128xbf16, #tpu.memory_space<vmem>>, vector<1x16x128xbf16>
    %1 = vector.shape_cast %0 : vector<1x16x128xbf16> to vector<16x128xbf16>
    %c0_2 = arith.constant 0 : index
    %c0_3 = arith.constant 0 : index
    %2 = vector.load %arg5[%c0_2, %c0_3] : memref<128x128xbf16, #tpu.memory_space<vmem>>, vector<128x128xbf16>
    %cst = arith.constant dense<0.000000e+00> : vector<16x128xf32>
    %3 = tpu.matmul %1, %2, %cst {dimension_numbers = #tpu.dot_dimension_numbers<[1], [0], [0], [1], [0, 0, 1, 1], [], []>} : vector<16x128xbf16>, vector<128x128xbf16>, vector<16x128xf32> -> vector<16x128xf32>
    %c0_4 = arith.constant 0 : index
    %c0_5 = arith.constant 0 : index
    %4 = vector.load %arg6[%c0_4, %c0_5] : memref<1x128xf32, #tpu.memory_space<vmem>>, vector<1x128xf32>
    %5 = vector.broadcast %4 : vector<1x128xf32> to vector<16x128xf32>
    %6 = arith.addf %3, %5 : vector<16x128xf32>
    %c0_6 = arith.constant 0 : index
    %c0_7 = arith.constant 0 : index
    %c0_8 = arith.constant 0 : index
    %7 = vector.load %arg3[%c0_6, %c0_7, %c0_8] : memref<1x1x128xf32, #tpu.memory_space<vmem>>, vector<1x1x128xf32>
    %8 = vector.shape_cast %7 : vector<1x1x128xf32> to vector<1x128xf32>
    %9 = vector.broadcast %8 : vector<1x128xf32> to vector<16x128xf32>
    %10 = arith.addf %6, %9 : vector<16x128xf32>
    %cst_9 = arith.constant 0.000000e+00 : f32
    %11 = vector.broadcast %cst_9 : f32 to vector<16x128xf32>
    %12 = arith.maximumf %10, %11 : vector<16x128xf32>
    %13 = arith.truncf %12 : vector<16x128xf32> to vector<16x128xbf16>
    %c0_10 = arith.constant 0 : index
    %c0_11 = arith.constant 0 : index
    %14 = vector.load %arg7[%c0_10, %c0_11] : memref<128x128xbf16, #tpu.memory_space<vmem>>, vector<128x128xbf16>
    %cst_12 = arith.constant dense<0.000000e+00> : vector<16x128xf32>
    %15 = tpu.matmul %13, %14, %cst_12 {dimension_numbers = #tpu.dot_dimension_numbers<[1], [0], [0], [1], [0, 0, 1, 1], [], []>} : vector<16x128xbf16>, vector<128x128xbf16>, vector<16x128xf32> -> vector<16x128xf32>
    %c0_13 = arith.constant 0 : index
    %c0_14 = arith.constant 0 : index
    %16 = vector.load %arg8[%c0_13, %c0_14] : memref<1x128xf32, #tpu.memory_space<vmem>>, vector<1x128xf32>
    %17 = vector.broadcast %16 : vector<1x128xf32> to vector<16x128xf32>
    %18 = arith.addf %15, %17 : vector<16x128xf32>
    %c0_15 = arith.constant 0 : index
    %c0_16 = arith.constant 0 : index
    %c0_17 = arith.constant 0 : index
    %19 = vector.load %arg4[%c0_15, %c0_16, %c0_17] : memref<1x16x1xf32, #tpu.memory_space<vmem>>, vector<1x16x1xf32>
    %20 = vector.shape_cast %19 : vector<1x16x1xf32> to vector<16x1xf32>
    %21 = vector.broadcast %20 : vector<16x1xf32> to vector<16x128xf32>
    %22 = arith.mulf %18, %21 : vector<16x128xf32>
    %23 = arith.truncf %22 : vector<16x128xf32> to vector<16x128xbf16>
    %c0_18 = arith.constant 0 : index
    %c0_19 = arith.constant 0 : index
    %c0_20 = arith.constant 0 : index
    %24 = vector.load %arg9[%c0_18, %c0_19, %c0_20] : memref<1x16x128xbf16, #tpu.memory_space<vmem>>, vector<1x16x128xbf16>
    %25 = vector.shape_cast %24 : vector<1x16x128xbf16> to vector<16x128xbf16>
    %26 = vector.shape_cast %23 : vector<16x128xbf16> to vector<1x16x128xbf16>
    tpu.vector_store %arg9[%c0_18, %c0_19, %c0_20], %26 {strides = array<i32>} : memref<1x16x128xbf16, #tpu.memory_space<vmem>>, vector<1x16x128xbf16>,
    return
  }
  func.func @transform_0(%arg0: i32, %arg1: i32) -> (i32, i32, i32) {
    %c0_i32 = arith.constant 0 : i32
    %c0_i32_0 = arith.constant 0 : i32
    return %arg0, %arg1, %c0_i32 : i32, i32, i32
  }
  func.func @transform_1(%arg0: i32, %arg1: i32) -> (i32, i32, i32) {
    %c0_i32 = arith.constant 0 : i32
    %c0_i32_0 = arith.constant 0 : i32
    %c0_i32_1 = arith.constant 0 : i32
    return %arg0, %c0_i32, %c0_i32_0 : i32, i32, i32
  }
  func.func @transform_2(%arg0: i32, %arg1: i32) -> (i32, i32, i32) {
    %c0_i32 = arith.constant 0 : i32
    %c0_i32_0 = arith.constant 0 : i32
    return %arg0, %arg1, %c0_i32 : i32, i32, i32
  }
  func.func @transform_3(%arg0: i32, %arg1: i32) -> (i32, i32) {
    %c0_i32 = arith.constant 0 : i32
    %c0_i32_0 = arith.constant 0 : i32
    %c0_i32_1 = arith.constant 0 : i32
    return %c0_i32, %c0_i32_0 : i32, i32
  }
  func.func @transform_4(%arg0: i32, %arg1: i32) -> (i32, i32) {
    %c0_i32 = arith.constant 0 : i32
    %c0_i32_0 = arith.constant 0 : i32
    %c0_i32_1 = arith.constant 0 : i32
    return %c0_i32, %c0_i32_0 : i32, i32
  }
  func.func @transform_5(%arg0: i32, %arg1: i32) -> (i32, i32) {
    %c0_i32 = arith.constant 0 : i32
    %c0_i32_0 = arith.constant 0 : i32
    %c0_i32_1 = arith.constant 0 : i32
    return %c0_i32, %c0_i32_0 : i32, i32
  }
  func.func @transform_6(%arg0: i32, %arg1: i32) -> (i32, i32) {
    %c0_i32 = arith.constant 0 : i32
    %c0_i32_0 = arith.constant 0 : i32
    %c0_i32_1 = arith.constant 0 : i32
    return %c0_i32, %c0_i32_0 : i32, i32
  }
  func.func @transform_7(%arg0: i32, %arg1: i32) -> (i32, i32, i32) {
    %c0_i32 = arith.constant 0 : i32
    %c0_i32_0 = arith.constant 0 : i32
    return %arg0, %arg1, %c0_i32 : i32, i32, i32
  }
}

module attributes {stable_mosaic.version = 11 : i64} {
  func.func @_dec_mel_kernel(%arg0: i32, %arg1: i32, %arg2: memref<1x16x128xbf16, #tpu.memory_space<vmem>>, %arg3: memref<1x1x128xf32, #tpu.memory_space<vmem>>, %arg4: memref<1x16x1xf32, #tpu.memory_space<vmem>>, %arg5: memref<128x128xbf16, #tpu.memory_space<vmem>>, %arg6: memref<1x128xf32, #tpu.memory_space<vmem>>, %arg7: memref<128x128xbf16, #tpu.memory_space<vmem>>, %arg8: memref<1x128xf32, #tpu.memory_space<vmem>>, %arg9: memref<128x128xbf16, #tpu.memory_space<vmem>>, %arg10: memref<1x128xf32, #tpu.memory_space<vmem>>, %arg11: memref<1x16x128xbf16, #tpu.memory_space<vmem>>) attributes {dimension_semantics = [#tpu.dimension_semantics<parallel>, #tpu.dimension_semantics<parallel>], iteration_bounds = array<i64: 2, 1>, scalar_prefetch = 0 : i64, scratch_operands = 0 : i64, tpu.core_type = #tpu.core_type<tc>, window_params = [{transform_indices = @transform_0, window_bounds = array<i64: 1, 16, 128>}, {transform_indices = @transform_1, window_bounds = array<i64: 1, 1, 128>}, {transform_indices = @transform_2, window_bounds = array<i64: 1, 16, 1>}, {pipeline_mode = #tpu.pipeline_mode<synchronous>, transform_indices = @transform_3, window_bounds = array<i64: 128, 128>}, {pipeline_mode = #tpu.pipeline_mode<synchronous>, transform_indices = @transform_4, window_bounds = array<i64: 1, 128>}, {pipeline_mode = #tpu.pipeline_mode<synchronous>, transform_indices = @transform_5, window_bounds = array<i64: 128, 128>}, {pipeline_mode = #tpu.pipeline_mode<synchronous>, transform_indices = @transform_6, window_bounds = array<i64: 1, 128>}, {pipeline_mode = #tpu.pipeline_mode<synchronous>, transform_indices = @transform_7, window_bounds = array<i64: 128, 128>}, {pipeline_mode = #tpu.pipeline_mode<synchronous>, transform_indices = @transform_8, window_bounds = array<i64: 1, 128>}, {transform_indices = @transform_9, window_bounds = array<i64: 1, 16, 128>}]} {
    %c0 = arith.constant 0 : index
    %c0_0 = arith.constant 0 : index
    %c0_1 = arith.constant 0 : index
    %0 = vector.load %arg2[%c0, %c0_0, %c0_1] : memref<1x16x128xbf16, #tpu.memory_space<vmem>>, vector<1x16x128xbf16>
    %1 = vector.shape_cast %0 : vector<1x16x128xbf16> to vector<16x128xbf16>
    %c0_2 = arith.constant 0 : index
    %c0_3 = arith.constant 0 : index
    %2 = vector.load %arg5[%c0_2, %c0_3] : memref<128x128xbf16, #tpu.memory_space<vmem>>, vector<128x128xbf16>
    %cst = arith.constant dense<0.000000e+00> : vector<16x128xf32>
    %3 = tpu.matmul %1, %2, %cst {dimension_numbers = #tpu.dot_dimension_numbers<[1], [0], [0], [1], [0, 0, 1, 1], [], []>} : vector<16x128xbf16>, vector<128x128xbf16>, vector<16x128xf32> -> vector<16x128xf32>
    %c0_4 = arith.constant 0 : index
    %c0_5 = arith.constant 0 : index
    %4 = vector.load %arg6[%c0_4, %c0_5] : memref<1x128xf32, #tpu.memory_space<vmem>>, vector<1x128xf32>
    %5 = vector.broadcast %4 : vector<1x128xf32> to vector<16x128xf32>
    %6 = arith.addf %3, %5 : vector<16x128xf32>
    %c0_6 = arith.constant 0 : index
    %c0_7 = arith.constant 0 : index
    %c0_8 = arith.constant 0 : index
    %7 = vector.load %arg3[%c0_6, %c0_7, %c0_8] : memref<1x1x128xf32, #tpu.memory_space<vmem>>, vector<1x1x128xf32>
    %8 = vector.shape_cast %7 : vector<1x1x128xf32> to vector<1x128xf32>
    %9 = vector.broadcast %8 : vector<1x128xf32> to vector<16x128xf32>
    %10 = arith.addf %6, %9 : vector<16x128xf32>
    %cst_9 = arith.constant 0.000000e+00 : f32
    %11 = vector.broadcast %cst_9 : f32 to vector<16x128xf32>
    %12 = arith.maximumf %10, %11 : vector<16x128xf32>
    %13 = arith.truncf %12 : vector<16x128xf32> to vector<16x128xbf16>
    %c0_10 = arith.constant 0 : index
    %c0_11 = arith.constant 0 : index
    %14 = vector.load %arg7[%c0_10, %c0_11] : memref<128x128xbf16, #tpu.memory_space<vmem>>, vector<128x128xbf16>
    %cst_12 = arith.constant dense<0.000000e+00> : vector<16x128xf32>
    %15 = tpu.matmul %13, %14, %cst_12 {dimension_numbers = #tpu.dot_dimension_numbers<[1], [0], [0], [1], [0, 0, 1, 1], [], []>} : vector<16x128xbf16>, vector<128x128xbf16>, vector<16x128xf32> -> vector<16x128xf32>
    %c0_13 = arith.constant 0 : index
    %c0_14 = arith.constant 0 : index
    %16 = vector.load %arg8[%c0_13, %c0_14] : memref<1x128xf32, #tpu.memory_space<vmem>>, vector<1x128xf32>
    %17 = vector.broadcast %16 : vector<1x128xf32> to vector<16x128xf32>
    %18 = arith.addf %15, %17 : vector<16x128xf32>
    %c0_15 = arith.constant 0 : index
    %c0_16 = arith.constant 0 : index
    %c0_17 = arith.constant 0 : index
    %19 = vector.load %arg4[%c0_15, %c0_16, %c0_17] : memref<1x16x1xf32, #tpu.memory_space<vmem>>, vector<1x16x1xf32>
    %20 = vector.shape_cast %19 : vector<1x16x1xf32> to vector<16x1xf32>
    %21 = vector.broadcast %20 : vector<16x1xf32> to vector<16x128xf32>
    %22 = arith.mulf %18, %21 : vector<16x128xf32>
    %23 = arith.truncf %22 : vector<16x128xf32> to vector<16x128xbf16>
    %c0_18 = arith.constant 0 : index
    %c0_19 = arith.constant 0 : index
    %24 = vector.load %arg9[%c0_18, %c0_19] : memref<128x128xbf16, #tpu.memory_space<vmem>>, vector<128x128xbf16>
    %cst_20 = arith.constant dense<0.000000e+00> : vector<16x128xf32>
    %25 = tpu.matmul %23, %24, %cst_20 {dimension_numbers = #tpu.dot_dimension_numbers<[1], [0], [0], [1], [0, 0, 1, 1], [], []>} : vector<16x128xbf16>, vector<128x128xbf16>, vector<16x128xf32> -> vector<16x128xf32>
    %c0_21 = arith.constant 0 : index
    %c0_22 = arith.constant 0 : index
    %26 = vector.load %arg10[%c0_21, %c0_22] : memref<1x128xf32, #tpu.memory_space<vmem>>, vector<1x128xf32>
    %27 = vector.broadcast %26 : vector<1x128xf32> to vector<16x128xf32>
    %28 = arith.addf %25, %27 : vector<16x128xf32>
    %29 = arith.truncf %28 : vector<16x128xf32> to vector<16x128xbf16>
    %c0_23 = arith.constant 0 : index
    %c0_24 = arith.constant 0 : index
    %c0_25 = arith.constant 0 : index
    %30 = vector.load %arg11[%c0_23, %c0_24, %c0_25] : memref<1x16x128xbf16, #tpu.memory_space<vmem>>, vector<1x16x128xbf16>
    %31 = vector.shape_cast %30 : vector<1x16x128xbf16> to vector<16x128xbf16>
    %32 = vector.shape_cast %29 : vector<16x128xbf16> to vector<1x16x128xbf16>
    tpu.vector_store %arg11[%c0_23, %c0_24, %c0_25], %32 {strides = array<i32>} : memref<1x16x128xbf16, #tpu.memory_space<vmem>>, vector<1x16x128xbf16>,
    return
  }
  func.func @transform_0(%arg0: i32, %arg1: i32) -> (i32, i32, i32) {
    %c0_i32 = arith.constant 0 : i32
    %c0_i32_0 = arith.constant 0 : i32
    return %arg0, %arg1, %c0_i32 : i32, i32, i32
  }
  func.func @transform_1(%arg0: i32, %arg1: i32) -> (i32, i32, i32) {
    %c0_i32 = arith.constant 0 : i32
    %c0_i32_0 = arith.constant 0 : i32
    %c0_i32_1 = arith.constant 0 : i32
    return %arg0, %c0_i32, %c0_i32_0 : i32, i32, i32
  }
  func.func @transform_2(%arg0: i32, %arg1: i32) -> (i32, i32, i32) {
    %c0_i32 = arith.constant 0 : i32
    %c0_i32_0 = arith.constant 0 : i32
    return %arg0, %arg1, %c0_i32 : i32, i32, i32
  }
  func.func @transform_3(%arg0: i32, %arg1: i32) -> (i32, i32) {
    %c0_i32 = arith.constant 0 : i32
    %c0_i32_0 = arith.constant 0 : i32
    %c0_i32_1 = arith.constant 0 : i32
    return %c0_i32, %c0_i32_0 : i32, i32
  }
  func.func @transform_4(%arg0: i32, %arg1: i32) -> (i32, i32) {
    %c0_i32 = arith.constant 0 : i32
    %c0_i32_0 = arith.constant 0 : i32
    %c0_i32_1 = arith.constant 0 : i32
    return %c0_i32, %c0_i32_0 : i32, i32
  }
  func.func @transform_5(%arg0: i32, %arg1: i32) -> (i32, i32) {
    %c0_i32 = arith.constant 0 : i32
    %c0_i32_0 = arith.constant 0 : i32
    %c0_i32_1 = arith.constant 0 : i32
    return %c0_i32, %c0_i32_0 : i32, i32
  }
  func.func @transform_6(%arg0: i32, %arg1: i32) -> (i32, i32) {
    %c0_i32 = arith.constant 0 : i32
    %c0_i32_0 = arith.constant 0 : i32
    %c0_i32_1 = arith.constant 0 : i32
    return %c0_i32, %c0_i32_0 : i32, i32
  }
  func.func @transform_7(%arg0: i32, %arg1: i32) -> (i32, i32) {
    %c0_i32 = arith.constant 0 : i32
    %c0_i32_0 = arith.constant 0 : i32
    %c0_i32_1 = arith.constant 0 : i32
    return %c0_i32, %c0_i32_0 : i32, i32
  }
  func.func @transform_8(%arg0: i32, %arg1: i32) -> (i32, i32) {
    %c0_i32 = arith.constant 0 : i32
    %c0_i32_0 = arith.constant 0 : i32
    %c0_i32_1 = arith.constant 0 : i32
    return %c0_i32, %c0_i32_0 : i32, i32
  }
  func.func @transform_9(%arg0: i32, %arg1: i32) -> (i32, i32, i32) {
    %c0_i32 = arith.constant 0 : i32
    %c0_i32_0 = arith.constant 0 : i32
    return %arg0, %arg1, %c0_i32 : i32, i32, i32
  }
}

module attributes {stable_mosaic.version = 11 : i64} {
  func.func @_postnet_kernel(%arg0: i32, %arg1: i32, %arg2: memref<1x1x28x128xbf16, #tpu.memory_space<vmem>>, %arg3: memref<5x128x128xbf16, #tpu.memory_space<vmem>>, %arg4: memref<1x128xf32, #tpu.memory_space<vmem>>, %arg5: memref<5x128x128xbf16, #tpu.memory_space<vmem>>, %arg6: memref<1x128xf32, #tpu.memory_space<vmem>>, %arg7: memref<5x128x128xbf16, #tpu.memory_space<vmem>>, %arg8: memref<1x128xf32, #tpu.memory_space<vmem>>, %arg9: memref<1x16x128xf32, #tpu.memory_space<vmem>>) attributes {dimension_semantics = [#tpu.dimension_semantics<parallel>, #tpu.dimension_semantics<parallel>], iteration_bounds = array<i64: 2, 1>, scalar_prefetch = 0 : i64, scratch_operands = 0 : i64, tpu.core_type = #tpu.core_type<tc>, window_params = [{transform_indices = @transform_0, window_bounds = array<i64: 1, 1, 28, 128>}, {pipeline_mode = #tpu.pipeline_mode<synchronous>, transform_indices = @transform_1, window_bounds = array<i64: 5, 128, 128>}, {pipeline_mode = #tpu.pipeline_mode<synchronous>, transform_indices = @transform_2, window_bounds = array<i64: 1, 128>}, {pipeline_mode = #tpu.pipeline_mode<synchronous>, transform_indices = @transform_3, window_bounds = array<i64: 5, 128, 128>}, {pipeline_mode = #tpu.pipeline_mode<synchronous>, transform_indices = @transform_4, window_bounds = array<i64: 1, 128>}, {pipeline_mode = #tpu.pipeline_mode<synchronous>, transform_indices = @transform_5, window_bounds = array<i64: 5, 128, 128>}, {pipeline_mode = #tpu.pipeline_mode<synchronous>, transform_indices = @transform_6, window_bounds = array<i64: 1, 128>}, {transform_indices = @transform_7, window_bounds = array<i64: 1, 16, 128>}]} {
    %c16_i32 = arith.constant 16 : i32
    %0 = arith.muli %arg1, %c16_i32 : i32
    %c0 = arith.constant 0 : index
    %c0_0 = arith.constant 0 : index
    %c0_1 = arith.constant 0 : index
    %c0_2 = arith.constant 0 : index
    %1 = vector.load %arg2[%c0, %c0_0, %c0_1, %c0_2] : memref<1x1x28x128xbf16, #tpu.memory_space<vmem>>, vector<1x1x28x128xbf16>
    %2 = vector.shape_cast %1 : vector<1x1x28x128xbf16> to vector<28x128xbf16>
    %3 = arith.extf %2 : vector<28x128xbf16> to vector<28x128xf32>
    %c6_i32 = arith.constant 6 : i32
    %4 = arith.subi %0, %c6_i32 : i32
    %5 = tpu.iota {dimensions = array<i32: 0>} : vector<28x1xi32>
    %6 = vector.broadcast %4 : i32 to vector<28x1xi32>
    %7 = arith.addi %5, %6 : vector<28x1xi32>
    %c0_i32 = arith.constant 0 : i32
    %8 = vector.broadcast %c0_i32 : i32 to vector<28x1xi32>
    %9 = arith.cmpi sge, %7, %8 : vector<28x1xi32>
    %c16_i32_3 = arith.constant 16 : i32
    %10 = vector.broadcast %c16_i32_3 : i32 to vector<28x1xi32>
    %11 = arith.cmpi slt, %7, %10 : vector<28x1xi32>
    %12 = arith.andi %9, %11 : vector<28x1xi1>
    %cst = arith.constant 0.000000e+00 : f32
    %13 = vector.shape_cast %12 : vector<28x1xi1> to vector<28x1xi1>
    %14 = vector.broadcast %13 : vector<28x1xi1> to vector<28x128xi1>
    %15 = vector.broadcast %cst : f32 to vector<28x128xf32>
    %16 = arith.select %14, %3, %15 : vector<28x128xi1>, vector<28x128xf32>
    %cst_4 = arith.constant 0.000000e+00 : f32
    %17 = vector.broadcast %cst_4 : f32 to vector<24x128xf32>
    %c0_5 = arith.constant 0 : index
    %c0_6 = arith.constant 0 : index
    %18 = vector.load %arg4[%c0_5, %c0_6] : memref<1x128xf32, #tpu.memory_space<vmem>>, vector<1x128xf32>
    %19 = vector.broadcast %18 : vector<1x128xf32> to vector<24x128xf32>
    %20 = arith.addf %17, %19 : vector<24x128xf32>
    %21 = vector.extract_strided_slice %16 {offsets = [0, 0], sizes = [24, 128], strides = [1, 1]} : vector<28x128xf32> to vector<24x128xf32>
    %22 = arith.truncf %21 : vector<24x128xf32> to vector<24x128xbf16>
    %c0_7 = arith.constant 0 : index
    %c0_8 = arith.constant 0 : index
    %c0_9 = arith.constant 0 : index
    %23 = vector.load %arg3[%c0_7, %c0_8, %c0_9] : memref<5x128x128xbf16, #tpu.memory_space<vmem>>, vector<1x128x128xbf16>
    %24 = vector.shape_cast %23 : vector<1x128x128xbf16> to vector<128x128xbf16>
    %cst_10 = arith.constant dense<0.000000e+00> : vector<24x128xf32>
    %25 = tpu.matmul %22, %24, %cst_10 {dimension_numbers = #tpu.dot_dimension_numbers<[1], [0], [0], [1], [0, 0, 1, 1], [], []>} : vector<24x128xbf16>, vector<128x128xbf16>, vector<24x128xf32> -> vector<24x128xf32>
    %26 = arith.addf %20, %25 : vector<24x128xf32>
    %27 = vector.extract_strided_slice %16 {offsets = [1, 0], sizes = [24, 128], strides = [1, 1]} : vector<28x128xf32> to vector<24x128xf32>
    %28 = arith.truncf %27 : vector<24x128xf32> to vector<24x128xbf16>
    %c1 = arith.constant 1 : index
    %c0_11 = arith.constant 0 : index
    %c0_12 = arith.constant 0 : index
    %29 = vector.load %arg3[%c1, %c0_11, %c0_12] : memref<5x128x128xbf16, #tpu.memory_space<vmem>>, vector<1x128x128xbf16>
    %30 = vector.shape_cast %29 : vector<1x128x128xbf16> to vector<128x128xbf16>
    %cst_13 = arith.constant dense<0.000000e+00> : vector<24x128xf32>
    %31 = tpu.matmul %28, %30, %cst_13 {dimension_numbers = #tpu.dot_dimension_numbers<[1], [0], [0], [1], [0, 0, 1, 1], [], []>} : vector<24x128xbf16>, vector<128x128xbf16>, vector<24x128xf32> -> vector<24x128xf32>
    %32 = arith.addf %26, %31 : vector<24x128xf32>
    %33 = vector.extract_strided_slice %16 {offsets = [2, 0], sizes = [24, 128], strides = [1, 1]} : vector<28x128xf32> to vector<24x128xf32>
    %34 = arith.truncf %33 : vector<24x128xf32> to vector<24x128xbf16>
    %c2 = arith.constant 2 : index
    %c0_14 = arith.constant 0 : index
    %c0_15 = arith.constant 0 : index
    %35 = vector.load %arg3[%c2, %c0_14, %c0_15] : memref<5x128x128xbf16, #tpu.memory_space<vmem>>, vector<1x128x128xbf16>
    %36 = vector.shape_cast %35 : vector<1x128x128xbf16> to vector<128x128xbf16>
    %cst_16 = arith.constant dense<0.000000e+00> : vector<24x128xf32>
    %37 = tpu.matmul %34, %36, %cst_16 {dimension_numbers = #tpu.dot_dimension_numbers<[1], [0], [0], [1], [0, 0, 1, 1], [], []>} : vector<24x128xbf16>, vector<128x128xbf16>, vector<24x128xf32> -> vector<24x128xf32>
    %38 = arith.addf %32, %37 : vector<24x128xf32>
    %39 = vector.extract_strided_slice %16 {offsets = [3, 0], sizes = [24, 128], strides = [1, 1]} : vector<28x128xf32> to vector<24x128xf32>
    %40 = arith.truncf %39 : vector<24x128xf32> to vector<24x128xbf16>
    %c3 = arith.constant 3 : index
    %c0_17 = arith.constant 0 : index
    %c0_18 = arith.constant 0 : index
    %41 = vector.load %arg3[%c3, %c0_17, %c0_18] : memref<5x128x128xbf16, #tpu.memory_space<vmem>>, vector<1x128x128xbf16>
    %42 = vector.shape_cast %41 : vector<1x128x128xbf16> to vector<128x128xbf16>
    %cst_19 = arith.constant dense<0.000000e+00> : vector<24x128xf32>
    %43 = tpu.matmul %40, %42, %cst_19 {dimension_numbers = #tpu.dot_dimension_numbers<[1], [0], [0], [1], [0, 0, 1, 1], [], []>} : vector<24x128xbf16>, vector<128x128xbf16>, vector<24x128xf32> -> vector<24x128xf32>
    %44 = arith.addf %38, %43 : vector<24x128xf32>
    %45 = vector.extract_strided_slice %16 {offsets = [4, 0], sizes = [24, 128], strides = [1, 1]} : vector<28x128xf32> to vector<24x128xf32>
    %46 = arith.truncf %45 : vector<24x128xf32> to vector<24x128xbf16>
    %c4 = arith.constant 4 : index
    %c0_20 = arith.constant 0 : index
    %c0_21 = arith.constant 0 : index
    %47 = vector.load %arg3[%c4, %c0_20, %c0_21] : memref<5x128x128xbf16, #tpu.memory_space<vmem>>, vector<1x128x128xbf16>
    %48 = vector.shape_cast %47 : vector<1x128x128xbf16> to vector<128x128xbf16>
    %cst_22 = arith.constant dense<0.000000e+00> : vector<24x128xf32>
    %49 = tpu.matmul %46, %48, %cst_22 {dimension_numbers = #tpu.dot_dimension_numbers<[1], [0], [0], [1], [0, 0, 1, 1], [], []>} : vector<24x128xbf16>, vector<128x128xbf16>, vector<24x128xf32> -> vector<24x128xf32>
    %50 = arith.addf %44, %49 : vector<24x128xf32>
    %51 = math.tanh %50 : vector<24x128xf32>
    %c4_i32 = arith.constant 4 : i32
    %52 = arith.subi %0, %c4_i32 : i32
    %53 = tpu.iota {dimensions = array<i32: 0>} : vector<24x1xi32>
    %54 = vector.broadcast %52 : i32 to vector<24x1xi32>
    %55 = arith.addi %53, %54 : vector<24x1xi32>
    %c0_i32_23 = arith.constant 0 : i32
    %56 = vector.broadcast %c0_i32_23 : i32 to vector<24x1xi32>
    %57 = arith.cmpi sge, %55, %56 : vector<24x1xi32>
    %c16_i32_24 = arith.constant 16 : i32
    %58 = vector.broadcast %c16_i32_24 : i32 to vector<24x1xi32>
    %59 = arith.cmpi slt, %55, %58 : vector<24x1xi32>
    %60 = arith.andi %57, %59 : vector<24x1xi1>
    %cst_25 = arith.constant 0.000000e+00 : f32
    %61 = vector.shape_cast %60 : vector<24x1xi1> to vector<24x1xi1>
    %62 = vector.broadcast %61 : vector<24x1xi1> to vector<24x128xi1>
    %63 = vector.broadcast %cst_25 : f32 to vector<24x128xf32>
    %64 = arith.select %62, %51, %63 : vector<24x128xi1>, vector<24x128xf32>
    %cst_26 = arith.constant 0.000000e+00 : f32
    %65 = vector.broadcast %cst_26 : f32 to vector<20x128xf32>
    %c0_27 = arith.constant 0 : index
    %c0_28 = arith.constant 0 : index
    %66 = vector.load %arg6[%c0_27, %c0_28] : memref<1x128xf32, #tpu.memory_space<vmem>>, vector<1x128xf32>
    %67 = vector.broadcast %66 : vector<1x128xf32> to vector<20x128xf32>
    %68 = arith.addf %65, %67 : vector<20x128xf32>
    %69 = vector.extract_strided_slice %64 {offsets = [0, 0], sizes = [20, 128], strides = [1, 1]} : vector<24x128xf32> to vector<20x128xf32>
    %70 = arith.truncf %69 : vector<20x128xf32> to vector<20x128xbf16>
    %c0_29 = arith.constant 0 : index
    %c0_30 = arith.constant 0 : index
    %c0_31 = arith.constant 0 : index
    %71 = vector.load %arg5[%c0_29, %c0_30, %c0_31] : memref<5x128x128xbf16, #tpu.memory_space<vmem>>, vector<1x128x128xbf16>
    %72 = vector.shape_cast %71 : vector<1x128x128xbf16> to vector<128x128xbf16>
    %cst_32 = arith.constant dense<0.000000e+00> : vector<20x128xf32>
    %73 = tpu.matmul %70, %72, %cst_32 {dimension_numbers = #tpu.dot_dimension_numbers<[1], [0], [0], [1], [0, 0, 1, 1], [], []>} : vector<20x128xbf16>, vector<128x128xbf16>, vector<20x128xf32> -> vector<20x128xf32>
    %74 = arith.addf %68, %73 : vector<20x128xf32>
    %75 = vector.extract_strided_slice %64 {offsets = [1, 0], sizes = [20, 128], strides = [1, 1]} : vector<24x128xf32> to vector<20x128xf32>
    %76 = arith.truncf %75 : vector<20x128xf32> to vector<20x128xbf16>
    %c1_33 = arith.constant 1 : index
    %c0_34 = arith.constant 0 : index
    %c0_35 = arith.constant 0 : index
    %77 = vector.load %arg5[%c1_33, %c0_34, %c0_35] : memref<5x128x128xbf16, #tpu.memory_space<vmem>>, vector<1x128x128xbf16>
    %78 = vector.shape_cast %77 : vector<1x128x128xbf16> to vector<128x128xbf16>
    %cst_36 = arith.constant dense<0.000000e+00> : vector<20x128xf32>
    %79 = tpu.matmul %76, %78, %cst_36 {dimension_numbers = #tpu.dot_dimension_numbers<[1], [0], [0], [1], [0, 0, 1, 1], [], []>} : vector<20x128xbf16>, vector<128x128xbf16>, vector<20x128xf32> -> vector<20x128xf32>
    %80 = arith.addf %74, %79 : vector<20x128xf32>
    %81 = vector.extract_strided_slice %64 {offsets = [2, 0], sizes = [20, 128], strides = [1, 1]} : vector<24x128xf32> to vector<20x128xf32>
    %82 = arith.truncf %81 : vector<20x128xf32> to vector<20x128xbf16>
    %c2_37 = arith.constant 2 : index
    %c0_38 = arith.constant 0 : index
    %c0_39 = arith.constant 0 : index
    %83 = vector.load %arg5[%c2_37, %c0_38, %c0_39] : memref<5x128x128xbf16, #tpu.memory_space<vmem>>, vector<1x128x128xbf16>
    %84 = vector.shape_cast %83 : vector<1x128x128xbf16> to vector<128x128xbf16>
    %cst_40 = arith.constant dense<0.000000e+00> : vector<20x128xf32>
    %85 = tpu.matmul %82, %84, %cst_40 {dimension_numbers = #tpu.dot_dimension_numbers<[1], [0], [0], [1], [0, 0, 1, 1], [], []>} : vector<20x128xbf16>, vector<128x128xbf16>, vector<20x128xf32> -> vector<20x128xf32>
    %86 = arith.addf %80, %85 : vector<20x128xf32>
    %87 = vector.extract_strided_slice %64 {offsets = [3, 0], sizes = [20, 128], strides = [1, 1]} : vector<24x128xf32> to vector<20x128xf32>
    %88 = arith.truncf %87 : vector<20x128xf32> to vector<20x128xbf16>
    %c3_41 = arith.constant 3 : index
    %c0_42 = arith.constant 0 : index
    %c0_43 = arith.constant 0 : index
    %89 = vector.load %arg5[%c3_41, %c0_42, %c0_43] : memref<5x128x128xbf16, #tpu.memory_space<vmem>>, vector<1x128x128xbf16>
    %90 = vector.shape_cast %89 : vector<1x128x128xbf16> to vector<128x128xbf16>
    %cst_44 = arith.constant dense<0.000000e+00> : vector<20x128xf32>
    %91 = tpu.matmul %88, %90, %cst_44 {dimension_numbers = #tpu.dot_dimension_numbers<[1], [0], [0], [1], [0, 0, 1, 1], [], []>} : vector<20x128xbf16>, vector<128x128xbf16>, vector<20x128xf32> -> vector<20x128xf32>
    %92 = arith.addf %86, %91 : vector<20x128xf32>
    %93 = vector.extract_strided_slice %64 {offsets = [4, 0], sizes = [20, 128], strides = [1, 1]} : vector<24x128xf32> to vector<20x128xf32>
    %94 = arith.truncf %93 : vector<20x128xf32> to vector<20x128xbf16>
    %c4_45 = arith.constant 4 : index
    %c0_46 = arith.constant 0 : index
    %c0_47 = arith.constant 0 : index
    %95 = vector.load %arg5[%c4_45, %c0_46, %c0_47] : memref<5x128x128xbf16, #tpu.memory_space<vmem>>, vector<1x128x128xbf16>
    %96 = vector.shape_cast %95 : vector<1x128x128xbf16> to vector<128x128xbf16>
    %cst_48 = arith.constant dense<0.000000e+00> : vector<20x128xf32>
    %97 = tpu.matmul %94, %96, %cst_48 {dimension_numbers = #tpu.dot_dimension_numbers<[1], [0], [0], [1], [0, 0, 1, 1], [], []>} : vector<20x128xbf16>, vector<128x128xbf16>, vector<20x128xf32> -> vector<20x128xf32>
    %98 = arith.addf %92, %97 : vector<20x128xf32>
    %99 = math.tanh %98 : vector<20x128xf32>
    %c2_i32 = arith.constant 2 : i32
    %100 = arith.subi %0, %c2_i32 : i32
    %101 = tpu.iota {dimensions = array<i32: 0>} : vector<20x1xi32>
    %102 = vector.broadcast %100 : i32 to vector<20x1xi32>
    %103 = arith.addi %101, %102 : vector<20x1xi32>
    %c0_i32_49 = arith.constant 0 : i32
    %104 = vector.broadcast %c0_i32_49 : i32 to vector<20x1xi32>
    %105 = arith.cmpi sge, %103, %104 : vector<20x1xi32>
    %c16_i32_50 = arith.constant 16 : i32
    %106 = vector.broadcast %c16_i32_50 : i32 to vector<20x1xi32>
    %107 = arith.cmpi slt, %103, %106 : vector<20x1xi32>
    %108 = arith.andi %105, %107 : vector<20x1xi1>
    %cst_51 = arith.constant 0.000000e+00 : f32
    %109 = vector.shape_cast %108 : vector<20x1xi1> to vector<20x1xi1>
    %110 = vector.broadcast %109 : vector<20x1xi1> to vector<20x128xi1>
    %111 = vector.broadcast %cst_51 : f32 to vector<20x128xf32>
    %112 = arith.select %110, %99, %111 : vector<20x128xi1>, vector<20x128xf32>
    %cst_52 = arith.constant 0.000000e+00 : f32
    %113 = vector.broadcast %cst_52 : f32 to vector<16x128xf32>
    %c0_53 = arith.constant 0 : index
    %c0_54 = arith.constant 0 : index
    %114 = vector.load %arg8[%c0_53, %c0_54] : memref<1x128xf32, #tpu.memory_space<vmem>>, vector<1x128xf32>
    %115 = vector.broadcast %114 : vector<1x128xf32> to vector<16x128xf32>
    %116 = arith.addf %113, %115 : vector<16x128xf32>
    %117 = vector.extract_strided_slice %112 {offsets = [0, 0], sizes = [16, 128], strides = [1, 1]} : vector<20x128xf32> to vector<16x128xf32>
    %118 = arith.truncf %117 : vector<16x128xf32> to vector<16x128xbf16>
    %c0_55 = arith.constant 0 : index
    %c0_56 = arith.constant 0 : index
    %c0_57 = arith.constant 0 : index
    %119 = vector.load %arg7[%c0_55, %c0_56, %c0_57] : memref<5x128x128xbf16, #tpu.memory_space<vmem>>, vector<1x128x128xbf16>
    %120 = vector.shape_cast %119 : vector<1x128x128xbf16> to vector<128x128xbf16>
    %cst_58 = arith.constant dense<0.000000e+00> : vector<16x128xf32>
    %121 = tpu.matmul %118, %120, %cst_58 {dimension_numbers = #tpu.dot_dimension_numbers<[1], [0], [0], [1], [0, 0, 1, 1], [], []>} : vector<16x128xbf16>, vector<128x128xbf16>, vector<16x128xf32> -> vector<16x128xf32>
    %122 = arith.addf %116, %121 : vector<16x128xf32>
    %123 = vector.extract_strided_slice %112 {offsets = [1, 0], sizes = [16, 128], strides = [1, 1]} : vector<20x128xf32> to vector<16x128xf32>
    %124 = arith.truncf %123 : vector<16x128xf32> to vector<16x128xbf16>
    %c1_59 = arith.constant 1 : index
    %c0_60 = arith.constant 0 : index
    %c0_61 = arith.constant 0 : index
    %125 = vector.load %arg7[%c1_59, %c0_60, %c0_61] : memref<5x128x128xbf16, #tpu.memory_space<vmem>>, vector<1x128x128xbf16>
    %126 = vector.shape_cast %125 : vector<1x128x128xbf16> to vector<128x128xbf16>
    %cst_62 = arith.constant dense<0.000000e+00> : vector<16x128xf32>
    %127 = tpu.matmul %124, %126, %cst_62 {dimension_numbers = #tpu.dot_dimension_numbers<[1], [0], [0], [1], [0, 0, 1, 1], [], []>} : vector<16x128xbf16>, vector<128x128xbf16>, vector<16x128xf32> -> vector<16x128xf32>
    %128 = arith.addf %122, %127 : vector<16x128xf32>
    %129 = vector.extract_strided_slice %112 {offsets = [2, 0], sizes = [16, 128], strides = [1, 1]} : vector<20x128xf32> to vector<16x128xf32>
    %130 = arith.truncf %129 : vector<16x128xf32> to vector<16x128xbf16>
    %c2_63 = arith.constant 2 : index
    %c0_64 = arith.constant 0 : index
    %c0_65 = arith.constant 0 : index
    %131 = vector.load %arg7[%c2_63, %c0_64, %c0_65] : memref<5x128x128xbf16, #tpu.memory_space<vmem>>, vector<1x128x128xbf16>
    %132 = vector.shape_cast %131 : vector<1x128x128xbf16> to vector<128x128xbf16>
    %cst_66 = arith.constant dense<0.000000e+00> : vector<16x128xf32>
    %133 = tpu.matmul %130, %132, %cst_66 {dimension_numbers = #tpu.dot_dimension_numbers<[1], [0], [0], [1], [0, 0, 1, 1], [], []>} : vector<16x128xbf16>, vector<128x128xbf16>, vector<16x128xf32> -> vector<16x128xf32>
    %134 = arith.addf %128, %133 : vector<16x128xf32>
    %135 = vector.extract_strided_slice %112 {offsets = [3, 0], sizes = [16, 128], strides = [1, 1]} : vector<20x128xf32> to vector<16x128xf32>
    %136 = arith.truncf %135 : vector<16x128xf32> to vector<16x128xbf16>
    %c3_67 = arith.constant 3 : index
    %c0_68 = arith.constant 0 : index
    %c0_69 = arith.constant 0 : index
    %137 = vector.load %arg7[%c3_67, %c0_68, %c0_69] : memref<5x128x128xbf16, #tpu.memory_space<vmem>>, vector<1x128x128xbf16>
    %138 = vector.shape_cast %137 : vector<1x128x128xbf16> to vector<128x128xbf16>
    %cst_70 = arith.constant dense<0.000000e+00> : vector<16x128xf32>
    %139 = tpu.matmul %136, %138, %cst_70 {dimension_numbers = #tpu.dot_dimension_numbers<[1], [0], [0], [1], [0, 0, 1, 1], [], []>} : vector<16x128xbf16>, vector<128x128xbf16>, vector<16x128xf32> -> vector<16x128xf32>
    %140 = arith.addf %134, %139 : vector<16x128xf32>
    %141 = vector.extract_strided_slice %112 {offsets = [4, 0], sizes = [16, 128], strides = [1, 1]} : vector<20x128xf32> to vector<16x128xf32>
    %142 = arith.truncf %141 : vector<16x128xf32> to vector<16x128xbf16>
    %c4_71 = arith.constant 4 : index
    %c0_72 = arith.constant 0 : index
    %c0_73 = arith.constant 0 : index
    %143 = vector.load %arg7[%c4_71, %c0_72, %c0_73] : memref<5x128x128xbf16, #tpu.memory_space<vmem>>, vector<1x128x128xbf16>
    %144 = vector.shape_cast %143 : vector<1x128x128xbf16> to vector<128x128xbf16>
    %cst_74 = arith.constant dense<0.000000e+00> : vector<16x128xf32>
    %145 = tpu.matmul %142, %144, %cst_74 {dimension_numbers = #tpu.dot_dimension_numbers<[1], [0], [0], [1], [0, 0, 1, 1], [], []>} : vector<16x128xbf16>, vector<128x128xbf16>, vector<16x128xf32> -> vector<16x128xf32>
    %146 = arith.addf %140, %145 : vector<16x128xf32>
    %147 = vector.extract_strided_slice %16 {offsets = [6, 0], sizes = [16, 128], strides = [1, 1]} : vector<28x128xf32> to vector<16x128xf32>
    %148 = arith.addf %147, %146 : vector<16x128xf32>
    %c0_75 = arith.constant 0 : index
    %c0_76 = arith.constant 0 : index
    %c0_77 = arith.constant 0 : index
    %149 = vector.load %arg9[%c0_75, %c0_76, %c0_77] : memref<1x16x128xf32, #tpu.memory_space<vmem>>, vector<1x16x128xf32>
    %150 = vector.shape_cast %149 : vector<1x16x128xf32> to vector<16x128xf32>
    %151 = vector.shape_cast %148 : vector<16x128xf32> to vector<1x16x128xf32>
    tpu.vector_store %arg9[%c0_75, %c0_76, %c0_77], %151 {strides = array<i32>} : memref<1x16x128xf32, #tpu.memory_space<vmem>>, vector<1x16x128xf32>,
    return
  }
  func.func @transform_0(%arg0: i32, %arg1: i32) -> (i32, i32, i32, i32) {
    %c0_i32 = arith.constant 0 : i32
    %c0_i32_0 = arith.constant 0 : i32
    %c0_i32_1 = arith.constant 0 : i32
    return %arg0, %arg1, %c0_i32, %c0_i32_0 : i32, i32, i32, i32
  }
  func.func @transform_1(%arg0: i32, %arg1: i32) -> (i32, i32, i32) {
    %c0_i32 = arith.constant 0 : i32
    %c0_i32_0 = arith.constant 0 : i32
    %c0_i32_1 = arith.constant 0 : i32
    %c0_i32_2 = arith.constant 0 : i32
    return %c0_i32, %c0_i32_0, %c0_i32_1 : i32, i32, i32
  }
  func.func @transform_2(%arg0: i32, %arg1: i32) -> (i32, i32) {
    %c0_i32 = arith.constant 0 : i32
    %c0_i32_0 = arith.constant 0 : i32
    %c0_i32_1 = arith.constant 0 : i32
    return %c0_i32, %c0_i32_0 : i32, i32
  }
  func.func @transform_3(%arg0: i32, %arg1: i32) -> (i32, i32, i32) {
    %c0_i32 = arith.constant 0 : i32
    %c0_i32_0 = arith.constant 0 : i32
    %c0_i32_1 = arith.constant 0 : i32
    %c0_i32_2 = arith.constant 0 : i32
    return %c0_i32, %c0_i32_0, %c0_i32_1 : i32, i32, i32
  }
  func.func @transform_4(%arg0: i32, %arg1: i32) -> (i32, i32) {
    %c0_i32 = arith.constant 0 : i32
    %c0_i32_0 = arith.constant 0 : i32
    %c0_i32_1 = arith.constant 0 : i32
    return %c0_i32, %c0_i32_0 : i32, i32
  }
  func.func @transform_5(%arg0: i32, %arg1: i32) -> (i32, i32, i32) {
    %c0_i32 = arith.constant 0 : i32
    %c0_i32_0 = arith.constant 0 : i32
    %c0_i32_1 = arith.constant 0 : i32
    %c0_i32_2 = arith.constant 0 : i32
    return %c0_i32, %c0_i32_0, %c0_i32_1 : i32, i32, i32
  }
  func.func @transform_6(%arg0: i32, %arg1: i32) -> (i32, i32) {
    %c0_i32 = arith.constant 0 : i32
    %c0_i32_0 = arith.constant 0 : i32
    %c0_i32_1 = arith.constant 0 : i32
    return %c0_i32, %c0_i32_0 : i32, i32
  }
  func.func @transform_7(%arg0: i32, %arg1: i32) -> (i32, i32, i32) {
    %c0_i32 = arith.constant 0 : i32
    %c0_i32_0 = arith.constant 0 : i32
    return %arg0, %arg1, %c0_i32 : i32, i32, i32
  }
}

module attributes {stable_mosaic.version = 11 : i64} {
  func.func @_cls_kernel(%arg0: i32, %arg1: i32, %arg2: memref<1x8x128xbf16, #tpu.memory_space<vmem>>, %arg3: memref<1x8x1xf32, #tpu.memory_space<vmem>>, %arg4: memref<1x1x1xf32, #tpu.memory_space<vmem>>, %arg5: memref<128x128xbf16, #tpu.memory_space<vmem>>, %arg6: memref<1x128xf32, #tpu.memory_space<vmem>>, %arg7: memref<1x1x128xf32, #tpu.memory_space<vmem>>, %arg8: memref<1x128xf32, #tpu.memory_space<vmem>>) attributes {dimension_semantics = [#tpu.dimension_semantics<parallel>, #tpu.dimension_semantics<arbitrary>], iteration_bounds = array<i64: 2, 1>, scalar_prefetch = 0 : i64, scratch_operands = 1 : i64, tpu.core_type = #tpu.core_type<tc>, window_params = [{transform_indices = @transform_0, window_bounds = array<i64: 1, 8, 128>}, {transform_indices = @transform_1, window_bounds = array<i64: 1, 8, 1>}, {transform_indices = @transform_2, window_bounds = array<i64: 1, 1, 1>}, {pipeline_mode = #tpu.pipeline_mode<synchronous>, transform_indices = @transform_3, window_bounds = array<i64: 128, 128>}, {pipeline_mode = #tpu.pipeline_mode<synchronous>, transform_indices = @transform_4, window_bounds = array<i64: 1, 128>}, {transform_indices = @transform_5, window_bounds = array<i64: 1, 1, 128>}]} {
    %c0_i32 = arith.constant 0 : i32
    %0 = arith.cmpi eq, %arg1, %c0_i32 : i32
    %1 = arith.extui %0 : i1 to i32
    %c0_i32_0 = arith.constant 0 : i32
    %2 = arith.cmpi ne, %1, %c0_i32_0 : i32
    scf.if %2 {
      %cst_12 = arith.constant 0.000000e+00 : f32
      %18 = vector.broadcast %cst_12 : f32 to vector<1x128xf32>
      %c0_13 = arith.constant 0 : index
      %c0_14 = arith.constant 0 : index
      %19 = vector.load %arg8[%c0_13, %c0_14] : memref<1x128xf32, #tpu.memory_space<vmem>>, vector<1x128xf32>
      tpu.vector_store %arg8[%c0_13, %c0_14], %18 {strides = array<i32>} : memref<1x128xf32, #tpu.memory_space<vmem>>, vector<1x128xf32>,
    } else {
    }
    %c0 = arith.constant 0 : index
    %c0_1 = arith.constant 0 : index
    %c0_2 = arith.constant 0 : index
    %3 = vector.load %arg2[%c0, %c0_1, %c0_2] : memref<1x8x128xbf16, #tpu.memory_space<vmem>>, vector<1x8x128xbf16>
    %4 = vector.shape_cast %3 : vector<1x8x128xbf16> to vector<8x128xbf16>
    %5 = arith.extf %4 : vector<8x128xbf16> to vector<8x128xf32>
    %c0_3 = arith.constant 0 : index
    %c0_4 = arith.constant 0 : index
    %c0_5 = arith.constant 0 : index
    %6 = vector.load %arg3[%c0_3, %c0_4, %c0_5] : memref<1x8x1xf32, #tpu.memory_space<vmem>>, vector<1x8x1xf32>
    %7 = vector.shape_cast %6 : vector<1x8x1xf32> to vector<8x1xf32>
    %c0_6 = arith.constant 0 : index
    %c0_7 = arith.constant 0 : index
    %8 = vector.load %arg8[%c0_6, %c0_7] : memref<1x128xf32, #tpu.memory_space<vmem>>, vector<1x128xf32>
    %9 = vector.broadcast %7 : vector<8x1xf32> to vector<8x128xf32>
    %10 = arith.mulf %5, %9 : vector<8x128xf32>
    %cst = arith.constant dense<0.000000e+00> : vector<128xf32>
    %11 = vector.multi_reduction <add>, %10, %cst [0] : vector<8x128xf32> to vector<128xf32>
    %12 = vector.shape_cast %11 : vector<128xf32> to vector<1x128xf32>
    %13 = arith.addf %8, %12 : vector<1x128xf32>
    %c0_8 = arith.constant 0 : index
    %c0_9 = arith.constant 0 : index
    %14 = vector.load %arg8[%c0_8, %c0_9] : memref<1x128xf32, #tpu.memory_space<vmem>>, vector<1x128xf32>
    tpu.vector_store %arg8[%c0_8, %c0_9], %13 {strides = array<i32>} : memref<1x128xf32, #tpu.memory_space<vmem>>, vector<1x128xf32>,
    %c0_i32_10 = arith.constant 0 : i32
    %15 = arith.cmpi eq, %arg1, %c0_i32_10 : i32
    %16 = arith.extui %15 : i1 to i32
    %c0_i32_11 = arith.constant 0 : i32
    %17 = arith.cmpi ne, %16, %c0_i32_11 : i32
    scf.if %17 {
      %c0_12 = arith.constant 0 : index
      %c0_13 = arith.constant 0 : index
      %18 = vector.load %arg8[%c0_12, %c0_13] : memref<1x128xf32, #tpu.memory_space<vmem>>, vector<1x128xf32>
      %c0_14 = arith.constant 0 : index
      %c0_15 = arith.constant 0 : index
      %c0_16 = arith.constant 0 : index
      %19 = vector.load %arg4[%c0_14, %c0_15, %c0_16] : memref<1x1x1xf32, #tpu.memory_space<vmem>>, vector<1x1x1xf32>
      %20 = vector.shape_cast %19 : vector<1x1x1xf32> to vector<1x1xf32>
      %21 = vector.broadcast %20 : vector<1x1xf32> to vector<1x128xf32>
      %22 = arith.mulf %18, %21 : vector<1x128xf32>
      %23 = arith.truncf %22 : vector<1x128xf32> to vector<1x128xbf16>
      %c0_17 = arith.constant 0 : index
      %c0_18 = arith.constant 0 : index
      %24 = vector.load %arg5[%c0_17, %c0_18] : memref<128x128xbf16, #tpu.memory_space<vmem>>, vector<128x128xbf16>
      %cst_19 = arith.constant dense<0.000000e+00> : vector<1x128xf32>
      %25 = tpu.matmul %23, %24, %cst_19 {dimension_numbers = #tpu.dot_dimension_numbers<[1], [0], [0], [1], [0, 0, 1, 1], [], []>} : vector<1x128xbf16>, vector<128x128xbf16>, vector<1x128xf32> -> vector<1x128xf32>
      %c0_20 = arith.constant 0 : index
      %c0_21 = arith.constant 0 : index
      %26 = vector.load %arg6[%c0_20, %c0_21] : memref<1x128xf32, #tpu.memory_space<vmem>>, vector<1x128xf32>
      %27 = arith.addf %25, %26 : vector<1x128xf32>
      %c0_22 = arith.constant 0 : index
      %c0_23 = arith.constant 0 : index
      %c0_24 = arith.constant 0 : index
      %28 = vector.load %arg7[%c0_22, %c0_23, %c0_24] : memref<1x1x128xf32, #tpu.memory_space<vmem>>, vector<1x1x128xf32>
      %29 = vector.shape_cast %28 : vector<1x1x128xf32> to vector<1x128xf32>
      %30 = vector.shape_cast %27 : vector<1x128xf32> to vector<1x1x128xf32>
      tpu.vector_store %arg7[%c0_22, %c0_23, %c0_24], %30 {strides = array<i32>} : memref<1x1x128xf32, #tpu.memory_space<vmem>>, vector<1x1x128xf32>,
    } else {
    }
    return
  }
  func.func @transform_0(%arg0: i32, %arg1: i32) -> (i32, i32, i32) {
    %c0_i32 = arith.constant 0 : i32
    %c0_i32_0 = arith.constant 0 : i32
    return %arg0, %arg1, %c0_i32 : i32, i32, i32
  }
  func.func @transform_1(%arg0: i32, %arg1: i32) -> (i32, i32, i32) {
    %c0_i32 = arith.constant 0 : i32
    %c0_i32_0 = arith.constant 0 : i32
    return %arg0, %arg1, %c0_i32 : i32, i32, i32
  }
  func.func @transform_2(%arg0: i32, %arg1: i32) -> (i32, i32, i32) {
    %c0_i32 = arith.constant 0 : i32
    %c0_i32_0 = arith.constant 0 : i32
    %c0_i32_1 = arith.constant 0 : i32
    return %arg0, %c0_i32, %c0_i32_0 : i32, i32, i32
  }
  func.func @transform_3(%arg0: i32, %arg1: i32) -> (i32, i32) {
    %c0_i32 = arith.constant 0 : i32
    %c0_i32_0 = arith.constant 0 : i32
    %c0_i32_1 = arith.constant 0 : i32
    return %c0_i32, %c0_i32_0 : i32, i32
  }
  func.func @transform_4(%arg0: i32, %arg1: i32) -> (i32, i32) {
    %c0_i32 = arith.constant 0 : i32
    %c0_i32_0 = arith.constant 0 : i32
    %c0_i32_1 = arith.constant 0 : i32
    return %c0_i32, %c0_i32_0 : i32, i32
  }
  func.func @transform_5(%arg0: i32, %arg1: i32) -> (i32, i32, i32) {
    %c0_i32 = arith.constant 0 : i32
    %c0_i32_0 = arith.constant 0 : i32
    %c0_i32_1 = arith.constant 0 : i32
    return %arg0, %c0_i32, %c0_i32_0 : i32, i32, i32
  }
}

</mosaic_0001>

<bundles_post_ra>
// kernel: run.9
= control target key start
LH: loop header
LB: loop body
LE: loop exit
PB: predicated region body
PF: predicated region fallthrough
CT: control target
= control target key end

     0   :  { %11 = vsyncpa [#allocation5], 0  ;;  %s989_s0 = inlined_call_operand.vmem [shape: f32[2,1,1], index: 0, kind: input, shape index: {}]   ;;  %s990_s1 = inlined_call_operand.vmem [shape: f32[2,1,16], index: 1, kind: input, shape index: {}, may-alias: {1,2}]   ;;  %s991_s2 = inlined_call_operand.vmem [shape: f32[2,1,16], index: 2, kind: input, shape index: {}, may-alias: {1,2}]   ;;  %s992_s3 = inlined_call_operand.vmem [shape: bf16[2,16,128], index: 3, kind: input, shape index: {}]   ;;  %s993_s4 = inlined_call_operand.hbm [shape: bf16[2,8,16], index: 4, kind: output, shape index: {0}]   ;;  %s994_s5 = inlined_call_operand.vmem [shape: bf16[2,8,128], index: 5, kind: output, shape index: {1}]  }
   0x1   :  { %13 = vsyncpa [#allocation5 + $0x1], 0  ;;  %s862_s18 = smov 0   ;;  %s864_s19 = smov 0  }
   0x2   :  { %s866_s20 = smov 0   ;;  %s868_s21 = smov 0  }
   0x3   :  { %s870_s22 = smov 0   ;;  %s872_s23 = smov 0  }
   0x4 LB: > { %s654_s24 = sadd.s32 4294967295, %s826_s23   ;;  %s655_s25 = sadd.s32 4294967294, %s826_s23   ;;  %s826_s23 = sphi %s872_s23, %s19_s23   ;;  %s822_s22 = sphi %s870_s22, %s1001_s22   ;;  %s818_s21 = sphi %s868_s21, %s1000_s21   ;;  %s814_s20 = sphi %s866_s20, %s999_s20   ;;  %s810_s19 = sphi %s864_s19, %s998_s19   ;;  %s806_s18 = sphi %s862_s18, %s997_s18  }
   0x5   : > { %s38_s26 = sadd.s32 1, %s822_s22  ;;  %s157_s27 = sadd.s32 1, %s814_s20 }
   0x6   : > { %p40_p0 = scmp.ge.s32.totalorder %s38_s26, 2  ;;  %p167_p1 = scmp.ne.s32.totalorder %s814_s20, %s810_s19 }
   0x7   : > { %p168_p2 = scmp.eq.s32.totalorder %s654_s24, 1  ;;  %p173_p3 = scmp.ne.s32.totalorder %s810_s19, %s806_s18 }
   0x8   : > { %s1003_s26 = smov (%p40_p0, %s38_s26), 0  ;;  %p174_p5 = scmp.eq.s32.totalorder %s655_s25, 1 }
   0x9   : > { %p902_p4 = por %p168_p2, %p167_p1  ;;  %s150_s29 = ssub.s32 %s822_s22, %s1003_s26 }
   0xa   : > { %p658_p6 = scmp.ge.s32.totalorder %s826_s23, 1  ;;  %p155_p7 = scmp.eq.s32.totalorder %s150_s29, 0 }
   0xb   : > { %p909_p8 = por %p174_p5, %p173_p3  ;;  %p254_p9 = scmp.lt.s32.totalorder %s826_s23, 3 }
   0xc   : > { %s915_s6 = scalar_select %p155_p7, %s814_s20, %s157_s27  }
   0xd   : > { %p255_p10 = pnand %p658_p6, %p254_p9 }
   0xe   : > { %p305_p11 = scmp.lt.s32.totalorder (!%p255_p10), %s818_s21, 1  ;;  %v828_v0 = vmov (!%p255_p10), 0   ;;  %v338_v2 = vlaneseq (!%p255_p10)  ;;  %vm377_vm0 = vcmask (!%p255_p10), 130048   ;;  %vm385_vm1 = vcmask (!%p255_p10), 7168   ;;  %s293_s29 = sand.u32 (!%p255_p10), 1, %s810_s19  }
   0xf   : > { %258 = sbr.rel (%p255_p10) target bundleno = 692 (0x2b4), region = 36  ;;  %739 = vset.pattern.permute.xlu0 (!%p255_p10), %v828_v0  ;;  %740 = vset.pattern.permute.xlu1 (!%p255_p10), %v828_v0  ;;  %v829_v27 = vmov (!%p255_p10), 0.0   ;;  %vm830_vm2 = vmmov (!%p255_p10), 0   ;;  %s659_s8 = sshll.u32 (!%p255_p10), %s293_s29, 2  ;;  %vm426_vm3 = vcmask (!%p255_p10), 125952  }
  0x10   : > { %v339_v3 = vshrl.u32 (!%p255_p10), %v338_v2, 7  ;;  %v344_v5 = vand.u32 (!%p255_p10), 127, %v338_v2  ;;  %675 = vmatprep.subr.bf16.mxu0 (!%p255_p10), %v829_v27  ;;  %677 = vmatprep.mubr.msk.bf16.mxu0 (!%p255_p10), %vm830_vm2, %v829_v27  ;;  %s295_s9 = scalar_lea.vmem (!%p255_p10), [#allocation4], %s659_s8  ;;  %s490_s15 = scalar_lea.sflag (!%p255_p10), [#allocation5], %s293_s29 }
  0x11   : > { %s512_s11 = sshll.u32 (!%p255_p10), %s295_s9, 4  ;;  %s513_s11 = int_to_ptr.vmem [resolvable:$true] %s512_s11 }
  0x12   : > { %v340_v4 = vcvt.s32.f32 (!%p255_p10), %v339_v3  ;;  %v345_v7 = vcvt.s32.f32 (!%p255_p10), %v344_v5  ;;  %s748_s16 = scalar_lea.vmem (!%p255_p10), %s513_s11, 64 }
  0x13   : > { %p749_p12 = scmp.ne.s32.totalorder (!%p255_p10), %s513_s11, %s748_s16 }
  0x15   : > { %p750_p13 = pnand (!%p255_p10), %p749_p12, %p902_p4 }
  0x16   : > { %s919_s7 = scalar_select %p305_p11, %s818_s21, 1 }
  0x17   : > { %p751_p0 = pneg %p750_p13 }
  0x18   : > { %s307_s10 = scalar_lea.vmem %s989_s0, %s919_s7  ;;  %s310_s13 = scalar_lea.vmem %s990_s1, %s919_s7 }
  0x19   : > { %v672_v1 = vld [vmem:[%s307_s10] ss:$0 sm:$0xff]  ;;  %s671_s14 = sshll.u32 %s919_s7, 3  ;;  %s316_s27 = scalar_lea.vmem %s991_s2, %s919_s7 }
  0x1a   : > { %358 = vperm.xlu0 %739, %v672_v1   ;;  %399 = vperm.xlu1 %740, %v672_v1   ;;  %v663_v15 = vld [vmem:[%s310_s13] ss:$0 sm:$0xff]  ;;  %s325_s17 = scalar_lea.vmem %s992_s3, %s671_s14  ;;  %s668_s10 = sshll.u32 %s818_s21, 6 }
  0x1b   : > { %v741_v28 = vld [vmem:[%s325_s17] sm:$0xff]   ;;  %s944_s14 = scalar_lea.hbm %s993_s4, %s668_s10  ;;  %s831_s17 = smov [#allocation4]  }
  0x1c   : > { %676 = vmatpush3.bf16.msra.mxu0 %v741_v28  ;;  %v664_v34 = vld [vmem:[%s316_s27] ss:$0 sm:$0xff]  ;;  %s752_s24 = sshll.u32 %s831_s17, 4  ;;  %s753_s24 = int_to_ptr.vmem [resolvable:$false] %s752_s24 }
  0x1d   : > { %s754_s25 = scalar_lea.vmem %s753_s24, 128  ;;  %p755_p1 = scmp.lt.s32.totalorder %s513_s11, %s753_s24 }
  0x1e   : > { %p756_p2 = scmp.lt.s32.totalorder %s754_s25, %s748_s16 }
  0x20   : > { %p757_p3 = por %p756_p2, %p755_p1 }
  0x22   : > { %p758_p5 = pnand %p757_p3, %p751_p0 }
  0x99   : > { %v359_v6 = vpop.permute.xlu0 %358  ;;  %v400_v19 = vpop.permute.xlu1 %399 }
  0x9a   : > { %v361_v8 = vadd.f32 %v359_v6, %v340_v4  ;;  %v402_v20 = vadd.f32 %v400_v19, %v340_v4 }
  0x9c   : > { %v362_v9 = vmul.f32 2.0, %v361_v8  ;;  %v403_v21 = vmul.f32 2.0, %v402_v20 }
  0x9e   : > { %v363_v10 = vsub.f32 %v345_v7, %v362_v9  ;;  %v404_v22 = vsub.f32 %v345_v7, %v403_v21 }
  0xa0   : > { %v364_v11 = vmul.f32 %v363_v10, %v363_v10  ;;  %v405_v29 = vmul.f32 %v404_v22, %v404_v22 }
  0xa2   : > { %v365_v12 = vsub.f32 0.0, %v364_v11  ;;  %v406_v30 = vsub.f32 0.0, %v405_v29 }
  0xa4   : > { %v367_v13 = vmul.f32 0.5, %v365_v12  ;;  %v408_v31 = vmul.f32 0.5, %v406_v30 }
  0xa6   : > { %v368_v14 = vmul.f32 1.442695, %v367_v13  ;;  %v409_v32 = vmul.f32 1.442695, %v408_v31 }
  0xa8   : > { %742 = vpow2.f32 %v368_v14 }
  0xb2   : > { %v743_v16 = vpop.eup %742 }
  0xb3   : > { %v376_v17 = vmul.f32 %v743_v16, %v663_v15 }
  0xb5   : > { %v378_v18 = vsel %vm377_vm0, %v376_v17, 0.0 }
  0xb6   : > { %379 = vadd.xlane.f32.xlu0 %v378_v18 }
 0x143   : > { %v380_v23 = vpop.xlane.xlu0 %379 }
 0x144   : > { %v382_v24 = vmax.f32 %v380_v23, 1e-09 }
 0x146   : > { %744 = vrcp.f32 %v382_v24 }
 0x147   : > { %746 = vpow2.f32 %v409_v32 }
 0x150   : > { %v745_v25 = vpop.eup %744 }
 0x151   : > { %386 = vst.msk [vmem:[#allocation2] sm:$0xff] %vm385_vm1, %v745_v25  ;;  %v747_v33 = vpop.eup %746 }
 0x152   : > { %v417_v35 = vmul.f32 %v747_v33, %v664_v34 }
 0x158   : > { %v418_v26 = vld [vmem:[#allocation2] sm:$0xff] }
 0x159   : > { %421 = vperm.xlu1 %740, %v418_v26  }
 0x1d8   : > { %v422_v36 = vpop.permute.xlu1 %421 }
 0x1d9   : > { %v424_v37 = vmul.f32 %v422_v36, %v417_v35 }
 0x1db   : > { %v425_v38 = vpack.c.bf16 %v424_v37, %v424_v37 }
 0x1dd   : > { %678 = vmatmul.mubr.msk.bf16.vlgmr.msra.gmra.mrb[0].mxu0 %vm377_vm0, %v425_v38  ;;  %427 = vst.msk [vmem:[%s295_s9] sm:$0xf] %vm426_vm3, %v425_v38 }
 0x1de   : > { %761 = shalt.err (!%p758_p5)
}
 0x1df   : > { %s762_s21 = scalar_lea.hbm %s944_s14, 64  ;;  %s766_s8 = scalar_lea.hbm %s993_s4, 128 }
 0x1e0   : > { %p763_p6 = scmp.ne.s32.totalorder %s944_s14, %s762_s21  ;;  %p767_p10 = scmp.lt.u32.totalorder %s944_s14, %s993_s4 }
 0x1e1   : > { %p768_p11 = scmp.lt.u32.totalorder %s766_s8, %s762_s21  ;;  %p770_p13 = scmp.lt.u32.totalorder %s762_s21, %s944_s14 }
 0x1e2   : > { %p764_p7 = pnand %p763_p6, %p902_p4 }
 0x1e3   : > { %p769_p12 = por %p768_p11, %p767_p10 }
 0x1e4   : > { %p765_p9 = pneg %p764_p7 }
 0x1e5   : > { %p771_p0 = por %p770_p13, %p769_p12 }
 0x1e7   : > { %p772_p1 = pnand %p771_p0, %p765_p9 }
 0x1e9   : > { %775 = shalt.err (!%p772_p1)
}
 0x1ea   : > { %681 = dma.vmem_to_hbm [thread:$0]  (%p902_p4), %s513_s11, 64, %s944_s14, %s490_s15  }
 0x1eb   : > { %s662_s12 = sshll.u32 %s919_s7, 2 }
 0x1ec   : > { %s333_s17 = scalar_lea.vmem %s994_s5, %s662_s12 }
 0x2b0   : > { %v475_v39 = vpop.f32.mrb[0].mxu0 }
 0x2b1   : > { %v487_v40 = vpack.c.bf16 %v475_v39, %v475_v39  ;;  %v679_v41 = vpop.f32.mrb[1].mxu0 }
 0x2b2   : > { %v478_v42 = vpop.f32.mrb[2].mxu0 }
 0x2b3   : > { %488 = vst [vmem:[%s333_s17] sm:$0xf] %v487_v40  ;;  %v680_v43 = vpop.f32.mrb[3].mxu0 }
 0x2b4 PF: > { %p687_p2 = scmp.ge.s32.totalorder %s826_s23, 2  ;;  %s527_s28 = sand.u32 1, %s806_s18  }
 0x2b5   : > { %s528_s11 = scalar_lea.sflag [#allocation5], %s527_s28 }
 0x2b6   : > { %p684_p3 = pnand %p687_p2, %p909_p8 }
 0x2b8   : > { %801 = dma.done.wait (!%p684_p3), %s528_s11, 64  }
 0x2b9   : > { %803 = vsyncadd (!%p684_p3), %s528_s11, 4294967232  ;;  %s19_s23 = sadd.s32 1, %s826_s23   ;;  %s997_s18 = smov %s810_s19 }
 0x2ba   : > { %p16_p4 = scmp.ge.s32.totalorder %s19_s23, 4   ;;  %s998_s19 = smov %s814_s20 }
 0x2bb   : > { %s999_s20 = smov %s915_s6  ;;  %s1000_s21 = smov %s822_s22 }
 0x2bc   : > { %s1001_s22 = smov %s1003_s26  ;;  %18 = sbr.rel (!%p16_p4) target bundleno = 4 (0x4), region = 100 }
 0x2c3   :  { %543 = vsyncpa [#allocation5], 1 }
 0x2c4   :  { %545 = vsyncpa [#allocation5 + $0x1], 1 }

// kernel: run.11
= control target key start
LH: loop header
LB: loop body
LE: loop exit
PB: predicated region body
PF: predicated region fallthrough
CT: control target
= control target key end

     0   :  { %s866_s18 = smov 0   ;;  %s868_s19 = smov 0   ;;  %s921_s0 = inlined_call_operand.vmem [shape: f32[2,1,1], index: 0, kind: input, shape index: {}]   ;;  %s922_s1 = inlined_call_operand.vmem [shape: f32[2,1,8], index: 1, kind: input, shape index: {}, may-alias: {1,2}]   ;;  %s923_s2 = inlined_call_operand.vmem [shape: f32[2,1,8], index: 2, kind: input, shape index: {}, may-alias: {1,2}]   ;;  %s924_s3 = inlined_call_operand.vmem [shape: bf16[2,8,128], index: 3, kind: input, shape index: {}]   ;;  %s925_s4 = inlined_call_operand.vmem [shape: bf16[2,16,8], index: 4, kind: output, shape index: {0}]   ;;  %s926_s5 = inlined_call_operand.vmem [shape: bf16[2,16,128], index: 5, kind: output, shape index: {1}]  }
   0x1   :  { %s870_s20 = smov 0  }
   0x2 LB: > { %s35_s21 = sadd.s32 1, %s827_s19  ;;  %p733_p0 = scmp.ge.s32.totalorder %s831_s20, 1  ;;  %s831_s20 = sphi %s870_s20, %s16_s20   ;;  %s827_s19 = sphi %s868_s19, %s928_s19   ;;  %s823_s18 = sphi %s866_s18, %s927_s18  }
   0x3   : > { %p37_p1 = scmp.ge.s32.totalorder %s35_s21, 2  ;;  %p248_p2 = scmp.lt.s32.totalorder %s831_s20, 3 }
   0x5   : > { %s930_s21 = smov (%p37_p1, %s35_s21), 0  ;;  %p249_p3 = pnand %p733_p0, %p248_p2 }
   0x6   : > { %p306_p4 = scmp.lt.s32.totalorder (!%p249_p3), %s823_s18, 1  ;;  %v833_v0 = vmov (!%p249_p3), 0   ;;  %v352_v2 = vlaneseq (!%p249_p3)  ;;  %vm400_vm0 = vcmask (!%p249_p3), 64512   ;;  %vm415_vm1 = vcmask (!%p249_p3), 7168  }
   0x7   : > { %252 = sbr.rel (%p249_p3) target bundleno = 685 (0x2ad), region = 36  ;;  %795 = vset.pattern.permute.xlu0 (!%p249_p3), %v833_v0  ;;  %796 = vset.pattern.permute.xlu1 (!%p249_p3), %v833_v0  ;;  %vm488_vm2 = vcmask (!%p249_p3), 1043456   ;;  %v834_v37 = vmov (!%p249_p3), 0.0   ;;  %vm835_vm3 = vmmov (!%p249_p3), 0   ;;  %vm478_vm4 = vcmask (!%p249_p3), 60416  }
   0x8   : > { %v353_v3 = vshrl.u32 (!%p249_p3), %v352_v2, 7  ;;  %v361_v5 = vand.u32 (!%p249_p3), 127, %v352_v2  ;;  %762 = vmatprep.subr.bf16.mxu0 (!%p249_p3), %v834_v37  ;;  %764 = vmatprep.mubr.msk.bf16.mxu0 (!%p249_p3), %vm835_vm3, %v834_v37 }
   0xa   : > { %v354_v4 = vadd.s32 (!%p249_p3), 8, %v353_v3  ;;  %v355_v6 = vcvt.s32.f32 (!%p249_p3), %v353_v3  ;;  %v362_v8 = vcvt.s32.f32 (!%p249_p3), %v361_v5 }
   0xc   : > { %v356_v7 = vcvt.s32.f32 (!%p249_p3), %v354_v4  ;;  %v370_v9 = vmul.f32 (!%p249_p3), 0.5, %v355_v6 }
   0xe   : > { %s932_s18 = smov (!%p306_p4, %s823_s18), 1  ;;  %v371_v10 = vmul.f32 0.5, %v356_v7 }
   0xf   : > { %s308_s24 = scalar_lea.vmem %s921_s0, %s932_s18  ;;  %s311_s27 = scalar_lea.vmem %s922_s1, %s932_s18 }
  0x10   : > { %v759_v1 = vld [vmem:[%s308_s24] ss:$0 sm:$0xff]  ;;  %s734_s28 = sshll.u32 %s932_s18, 2  ;;  %s317_s9 = scalar_lea.vmem %s923_s2, %s932_s18 }
  0x11   : > { %378 = vperm.xlu0 %795, %v759_v1   ;;  %v739_v21 = vld [vmem:[%s311_s27] ss:$0 sm:$0xff]  ;;  %s324_s6 = scalar_lea.vmem %s924_s3, %s734_s28  ;;  %s748_s10 = sshll.u32 %s932_s18, 3 }
  0x12   : > { %v483_v36 = vld [vmem:[%s324_s6] sm:$0xf]  ;;  %s336_s13 = scalar_lea.vmem %s925_s4, %s748_s10  ;;  %s346_s16 = scalar_lea.vmem %s926_s5, %s748_s10 }
  0x13   : > { %v490_v38 = vsel %vm488_vm2, %v483_v36, 0  ;;  %v740_v50 = vld [vmem:[%s317_s9] ss:$0 sm:$0xff] }
  0x14   : > { %763 = vmatpush3.bf16.msra.mxu0 %v490_v38 }
  0x90   : > { %v379_v11 = vpop.permute.xlu0 %378 }
  0x91   : > { %v381_v12 = vadd.f32 %v379_v11, %v362_v8 }
  0x93   : > { %v382_v13 = vsub.f32 %v370_v9, %v381_v12  ;;  %v383_v14 = vsub.f32 %v371_v10, %v381_v12 }
  0x95   : > { %v384_v15 = vmul.f32 %v382_v13, %v382_v13  ;;  %v385_v16 = vmul.f32 %v383_v14, %v383_v14 }
  0x97   : > { %v386_v17 = vsub.f32 0.0, %v384_v15  ;;  %v387_v18 = vsub.f32 0.0, %v385_v16 }
  0x99   : > { %v388_v19 = vmul.f32 1.442695, %v386_v17  ;;  %v390_v20 = vmul.f32 1.442695, %v387_v18 }
  0x9b   : > { %797 = vpow2.f32 %v388_v19 }
  0x9c   : > { %799 = vpow2.f32 %v390_v20 }
  0xa5   : > { %v798_v22 = vpop.eup %797 }
  0xa6   : > { %v800_v23 = vpop.eup %799  ;;  %v398_v24 = vmul.f32 %v798_v22, %v739_v21 }
  0xa7   : > { %v399_v25 = vmul.f32 %v800_v23, %v739_v21 }
  0xa8   : > { %v401_v26 = vsel %vm400_vm0, %v398_v24, 0.0 }
  0xa9   : > { %v404_v27 = vsel %vm400_vm0, %v399_v25, 0.0  ;;  %402 = vadd.xlane.f32.xlu0 %v401_v26 }
  0xaa   : > { %405 = vadd.xlane.f32.xlu1 %v404_v27 }
  0xbb   : > { %434 = vperm.xlu1 %796, %v759_v1  }
 0x136   : > { %v403_v28 = vpop.xlane.xlu0 %402 }
 0x137   : > { %v406_v29 = vpop.xlane.xlu1 %405  ;;  %v409_v30 = vmax.f32 %v403_v28, 1e-09 }
 0x138   : > { %v410_v31 = vmax.f32 %v406_v29, 1e-09 }
 0x139   : > { %801 = vrcp.f32 %v409_v30 }
 0x13a   : > { %803 = vrcp.f32 %v410_v31 }
 0x13b   : > { %v435_v39 = vpop.permute.xlu1 %434 }
 0x13c   : > { %v437_v40 = vadd.f32 %v435_v39, %v362_v8 }
 0x13e   : > { %v438_v41 = vsub.f32 %v370_v9, %v437_v40  ;;  %v439_v42 = vsub.f32 %v371_v10, %v437_v40 }
 0x140   : > { %v440_v43 = vmul.f32 %v438_v41, %v438_v41  ;;  %v441_v44 = vmul.f32 %v439_v42, %v439_v42 }
 0x142   : > { %v442_v45 = vsub.f32 0.0, %v440_v43  ;;  %v443_v46 = vsub.f32 0.0, %v441_v44 }
 0x143   : > { %v802_v32 = vpop.eup %801 }
 0x144   : > { %v804_v33 = vpop.eup %803  ;;  %416 = vst.msk [vmem:[#allocation2] sm:$0xff] %vm415_vm1, %v802_v32  ;;  %v444_v47 = vmul.f32 1.442695, %v442_v45  ;;  %v446_v48 = vmul.f32 1.442695, %v443_v46 }
 0x145   : > { %417 = vst.msk [vmem:[#allocation2 + $0x8] sm:$0xff] %vm415_vm1, %v804_v33 }
 0x146   : > { %805 = vpow2.f32 %v444_v47 }
 0x147   : > { %807 = vpow2.f32 %v446_v48 }
 0x14b   : > { %v456_v34 = vld [vmem:[#allocation2] sm:$0xff] }
 0x14c   : > { %460 = vperm.xlu1 %796, %v456_v34   ;;  %v457_v35 = vld [vmem:[#allocation2 + $0x8] sm:$0xff] }
 0x150   : > { %465 = vperm.xlu1 %796, %v457_v35   ;;  %v806_v49 = vpop.eup %805 }
 0x151   : > { %v454_v51 = vmul.f32 %v806_v49, %v740_v50  ;;  %v808_v52 = vpop.eup %807 }
 0x152   : > { %v455_v55 = vmul.f32 %v808_v52, %v740_v50 }
 0x1cb   : > { %v461_v53 = vpop.permute.xlu1 %460 }
 0x1cc   : > { %v468_v54 = vmul.f32 %v461_v53, %v454_v51 }
 0x1ce   : > { %v750_v56 = vpack.c.bf16 %v468_v54, %v468_v54 }
 0x1cf   : > { %v466_v57 = vpop.permute.xlu1 %465 }
 0x1d0   : > { %v469_v58 = vmul.f32 %v466_v57, %v455_v55  ;;  %479 = vst.msk [vmem:[%s336_s13] sm:$0xf] %vm478_vm4, %v750_v56 }
 0x1d2   : > { %v470_v59 = vpack.c.bf16 %v469_v58, %v468_v54  ;;  %v751_v60 = vpack.c.bf16 %v469_v58, %v469_v58 }
 0x1d4   : > { %765 = vmatmul.mubr.msk.bf16.vlgmr.msra.gmra.mrb[0].mxu0 %vm400_vm0, %v470_v59  ;;  %480 = vst.msk [vmem:[%s336_s13 + $0x4] sm:$0xf] %vm478_vm4, %v751_v60 }
 0x2a7   : > { %v526_v61 = vpop.f32.mrb[0].mxu0 }
 0x2a8   : > { %v766_v62 = vpop.f32.mrb[1].mxu0 }
 0x2a9   : > { %v529_v63 = vpop.f32.mrb[2].mxu0 }
 0x2aa   : > { %v757_v0 = vpack.c.bf16 %v529_v63, %v526_v61  ;;  %v767_v1 = vpop.f32.mrb[3].mxu0 }
 0x2ac   : > { %758 = vst [vmem:[%s346_s16] sm:$0xff] %v757_v0  }
 0x2ad PF: > { %s16_s20 = sadd.s32 1, %s831_s20   ;;  %s927_s18 = smov %s827_s19 }
 0x2ae   : > { %p13_p5 = scmp.ge.s32.totalorder %s16_s20, 4   ;;  %s928_s19 = smov %s930_s21 }
 0x2b0   :  { %15 = sbr.rel (!%p13_p5) target bundleno = 2 (0x2), region = 95 }

// kernel: run.7
= control target key start
LH: loop header
LB: loop body
LE: loop exit
PB: predicated region body
PF: predicated region fallthrough
CT: control target
= control target key end

     0   :  { %s917_s24 = smov 0   ;;  %s919_s25 = smov 0   ;;  %s1035_s0 = inlined_call_operand.vmem [shape: bf16[2,16,128], index: 0, kind: input, shape index: {}]   ;;  %s1036_s1 = inlined_call_operand.vmem [shape: f32[2,16,1], index: 1, kind: input, shape index: {}]   ;;  %s1037_s2 = inlined_call_operand.vmem [shape: f32[2,1,1], index: 2, kind: input, shape index: {}]   ;;  %s1038_s3 = inlined_call_operand.vmem [shape: bf16[128,128], index: 3, kind: input, shape index: {}]   ;;  %s1039_s4 = inlined_call_operand.vmem [shape: f32[1,128], index: 4, kind: input, shape index: {}]   ;;  %s1040_s5 = inlined_call_operand.vmem [shape: bf16[128,128], index: 5, kind: input, shape index: {}]   ;;  %s1041_s6 = inlined_call_operand.vmem [shape: f32[1,128], index: 6, kind: input, shape index: {}]   ;;  %s1042_s7 = inlined_call_operand.vmem [shape: f32[2,1,128], index: 7, kind: output, shape index: {}]  }
   0x1   :  { %s921_s26 = smov 0  }
   0x2 LB: > { %s29_s27 = sadd.s32 1, %s868_s25  ;;  %p719_p0 = scmp.ge.s32.totalorder %s872_s26, 1  ;;  %s872_s26 = sphi %s921_s26, %s17_s26   ;;  %s868_s25 = sphi %s919_s25, %s1044_s25   ;;  %s864_s24 = sphi %s917_s24, %s1043_s24  }
   0x3   : > { %p31_p1 = scmp.ge.s32.totalorder %s29_s27, 2  ;;  %p281_p2 = scmp.lt.s32.totalorder %s872_s26, 3 }
   0x5   : > { %s1046_s27 = smov (%p31_p1, %s29_s27), 0  ;;  %p282_p3 = pnand %p719_p0, %p281_p2 }
   0x6   : > { %v833_v0 = vld [vmem:[%s1038_s3] sm:$0xff] (!%p282_p3)   ;;  %v874_v1 = vmov (!%p282_p3), 0.0   ;;  %v834_v2 = vld [vmem:[%s1038_s3 + $0x8] sm:$0xff] (!%p282_p3)   ;;  %vm875_vm0 = vmmov (!%p282_p3), 0   ;;  %p328_p4 = scmp.lt.s32.totalorder (!%p282_p3), %s864_s24, 1  ;;  %v876_v3 = vmov (!%p282_p3), 0   ;;  %v515_v40 = vlaneseq (!%p282_p3) }
   0x7   : > { %285 = sbr.rel (%p282_p3) target bundleno = 502 (0x1f6), region = 48  ;;  %764 = vmatprep.subr.bf16.mxu0 (!%p282_p3), %v874_v1  ;;  %358 = vst [vmem:[#allocation2] sm:$0x1] (!%p282_p3), %v874_v1  ;;  %784 = vmatprep.subr.bf16.mxu1 (!%p282_p3), %v874_v1  ;;  %v835_v4 = vld [vmem:[%s1038_s3 + $0x10] sm:$0xff] (!%p282_p3)   ;;  %v836_v5 = vld [vmem:[%s1038_s3 + $0x18] sm:$0xff] (!%p282_p3)   ;;  %v837_v9 = vld [vmem:[%s1038_s3 + $0x20] sm:$0xff] (!%p282_p3)  }
   0x8   : > { %765 = vmatpush3.bf16.msra.mxu0 (!%p282_p3), %v833_v0  ;;  %780 = vmatprep.mubr.msk.bf16.mxu0 (!%p282_p3), %vm875_vm0, %v874_v1  ;;  %v838_v10 = vld [vmem:[%s1038_s3 + $0x28] sm:$0xff] (!%p282_p3)   ;;  %v839_v11 = vld [vmem:[%s1038_s3 + $0x30] sm:$0xff] (!%p282_p3)   ;;  %v840_v12 = vld [vmem:[%s1038_s3 + $0x38] sm:$0xff] (!%p282_p3)   ;;  %v516_v44 = vshrl.u32 (!%p282_p3), %v515_v40, 7 }
   0x9   : > { %766 = vmatprep.subr.bf16.mxu0 (!%p282_p3), %v874_v1  ;;  %800 = vmatprep.mubr.msk.bf16.mxu1 (!%p282_p3), %vm875_vm0, %v874_v1  ;;  %v842_v14 = vld [vmem:[%s1040_s5] sm:$0xff] (!%p282_p3)   ;;  %v843_v15 = vld [vmem:[%s1040_s5 + $0x8] sm:$0xff] (!%p282_p3)   ;;  %v844_v16 = vld [vmem:[%s1040_s5 + $0x10] sm:$0xff] (!%p282_p3)  }
   0xa   : > { %831 = vset.pattern.permute.xlu0 (!%p282_p3), %v876_v3  ;;  %832 = vset.pattern.permute.xlu1 (!%p282_p3), %v876_v3  ;;  %v845_v17 = vld [vmem:[%s1040_s5 + $0x18] sm:$0xff] (!%p282_p3)   ;;  %v846_v18 = vld [vmem:[%s1040_s5 + $0x20] sm:$0xff] (!%p282_p3)   ;;  %v847_v19 = vld [vmem:[%s1040_s5 + $0x28] sm:$0xff] (!%p282_p3)   ;;  %v517_v46 = vsub.s32 (!%p282_p3), 0, %v516_v44 }
   0xb   : > { %785 = vmatpush3.bf16.msra.mxu1 (!%p282_p3), %v842_v14  ;;  %v848_v20 = vld [vmem:[%s1040_s5 + $0x30] sm:$0xff] (!%p282_p3)   ;;  %v849_v21 = vld [vmem:[%s1040_s5 + $0x38] sm:$0xff] (!%p282_p3)   ;;  %v724_v22 = vld [vmem:[%s1039_s4] ss:$0 sm:$0xff] (!%p282_p3) }
   0xc   : > { %767 = vmatpush3.bf16.msra.mxu0 (!%p282_p3), %v834_v2  ;;  %786 = vmatprep.subr.bf16.mxu1 (!%p282_p3), %v874_v1  ;;  %v537_v52 = vld [vmem:[%s1041_s6] sm:$0x1] (!%p282_p3) }
   0xd   : > { %768 = vmatprep.subr.bf16.mxu0 (!%p282_p3), %v874_v1 }
   0xe   : > { %s1048_s24 = smov (!%p328_p4, %s864_s24), 1  ;;  %v483_v42 = vld [vmem:[#allocation2] sm:$0x1] }
   0xf   : > { %s744_s11 = sshll.u32 %s1048_s24, 3  ;;  %s349_s14 = scalar_lea.vmem %s1037_s2, %s1048_s24  ;;  %787 = vmatpush3.bf16.msra.mxu1 %v843_v15 }
  0x10   : > { %s335_s17 = scalar_lea.vmem %s1035_s0, %s744_s11  ;;  %s745_s18 = sshll.u32 %s1048_s24, 4  ;;  %v509_v7 = vld [vmem:[%s349_s14] sm:$0x1]  ;;  %769 = vmatpush3.bf16.msra.mxu0 %v835_v4  ;;  %788 = vmatprep.subr.bf16.mxu1 %v874_v1 }
  0x11   : > { %s345_s21 = scalar_lea.vmem %s1036_s1, %s745_s18  ;;  %770 = vmatprep.subr.bf16.mxu0 %v874_v1  ;;  %512 = vperm.xlu1 %832, %v509_v7   ;;  %v841_v13 = vld [vmem:[%s335_s17] sm:$0xff]   ;;  %s352_s16 = scalar_lea.vmem %s1042_s7, %s1048_s24 }
  0x12   : > { %v361_v6 = vld [vmem:[%s345_s21] sm:$0xff]  ;;  %v362_v8 = vld [vmem:[%s345_s21 + $0x8] sm:$0xff] }
  0x13   : > { %486 = vperm.xlu0 %831, %v361_v6   ;;  %789 = vmatpush3.bf16.msra.mxu1 %v844_v16 }
  0x14   : > { %771 = vmatpush3.bf16.msra.mxu0 %v836_v5  ;;  %790 = vmatprep.subr.bf16.mxu1 %v874_v1 }
  0x15   : > { %772 = vmatprep.subr.bf16.mxu0 %v874_v1 }
  0x17   : > { %491 = vperm.xlu0 %831, %v362_v8   ;;  %791 = vmatpush3.bf16.msra.mxu1 %v845_v17 }
  0x18   : > { %773 = vmatpush3.bf16.msra.mxu0 %v837_v9  ;;  %792 = vmatprep.subr.bf16.mxu1 %v874_v1 }
  0x19   : > { %774 = vmatprep.subr.bf16.mxu0 %v874_v1 }
  0x1b   : > { %793 = vmatpush3.bf16.msra.mxu1 %v846_v18 }
  0x1c   : > { %775 = vmatpush3.bf16.msra.mxu0 %v838_v10  ;;  %794 = vmatprep.subr.bf16.mxu1 %v874_v1 }
  0x1d   : > { %776 = vmatprep.subr.bf16.mxu0 %v874_v1 }
  0x1f   : > { %795 = vmatpush3.bf16.msra.mxu1 %v847_v19 }
  0x20   : > { %777 = vmatpush3.bf16.msra.mxu0 %v839_v11  ;;  %796 = vmatprep.subr.bf16.mxu1 %v874_v1 }
  0x21   : > { %778 = vmatprep.subr.bf16.mxu0 %v874_v1 }
  0x23   : > { %797 = vmatpush3.bf16.msra.mxu1 %v848_v20 }
  0x24   : > { %779 = vmatpush3.bf16.msra.mxu0 %v840_v12  ;;  %798 = vmatprep.subr.bf16.mxu1 %v874_v1 }
  0x27   : > { %781 = vmatmul.mubr.bf16.vlgmr.msra.gmra.mrb[0].mxu0 %v841_v13  ;;  %799 = vmatpush3.bf16.msra.mxu1 %v849_v21 }
  0x90   : > { %v513_v47 = vpop.permute.xlu1 %512 }
  0x91   : > { %v518_v48 = vrot.slane %v513_v47, %v517_v46 }
  0x92   : > { %v487_v23 = vpop.permute.xlu0 %486 }
  0x96   : > { %v492_v32 = vpop.permute.xlu0 %491 }
  0xfa   : > { %v474_v24 = vpop.f32.mrb[0].mxu0 }
  0xfb   : > { %v475_v25 = vadd.f32 %v724_v22, %v474_v24  ;;  %v782_v26 = vpop.f32.mrb[1].mxu0 }
  0xfc   : > { %v477_v27 = vpop.f32.mrb[2].mxu0 }
  0xfd   : > { %v481_v28 = vmax.f32 %v475_v25, 0.0  ;;  %v478_v29 = vadd.f32 %v724_v22, %v477_v27  ;;  %v783_v30 = vpop.f32.mrb[3].mxu0 }
  0xff   : > { %v482_v31 = vmax.f32 %v478_v29, 0.0  ;;  %v494_v33 = vmul.f32 %v487_v23, %v481_v28 }
 0x101   : > { %v495_v34 = vmul.f32 %v492_v32, %v482_v31 }
 0x103   : > { %v496_v35 = vadd.f32 %v495_v34, %v494_v33 }
 0x105   : > { %v497_v36 = vrot.slane %v496_v35, 4 }
 0x107   : > { %v498_v37 = vadd.f32 %v497_v36, %v496_v35 }
 0x109   : > { %v499_v38 = vrot.slane %v498_v37, 2 }
 0x10b   : > { %v500_v39 = vadd.f32 %v499_v38, %v498_v37 }
 0x10d   : > { %v501_v41 = vrot.slane %v500_v39, 1 }
 0x10f   : > { %v502_v43 = vadd.f32 %v501_v41, %v500_v39 }
 0x111   : > { %v503_v45 = vadd.f32 %v502_v43, %v483_v42 }
 0x113   : > { %504 = vst [vmem:[#allocation2] sm:$0x1] %v503_v45 }
 0x11a   : > { %v508_v49 = vld [vmem:[#allocation2] sm:$0x1] }
 0x11b   : > { %v519_v50 = vmul.f32 %v518_v48, %v508_v49 }
 0x11d   : > { %v520_v51 = vpack.c.bf16 %v519_v50, %v519_v50 }
 0x11f   : > { %801 = vmatmul.mubr.bf16.vlgmr.msra.gmra.mrb[0].mxu1 %v520_v51 }
 0x1f2   : > { %v620_v53 = vpop.f32.mrb[0].mxu1 }
 0x1f3   : > { %v621_v54 = vadd.f32 %v620_v53, %v537_v52  ;;  %v802_v55 = vpop.f32.mrb[1].mxu1 }
 0x1f4   : > { %v623_v56 = vpop.f32.mrb[2].mxu1 }
 0x1f5   : > { %626 = vst [vmem:[%s352_s16] sm:$0x1] %v621_v54  ;;  %v803_v57 = vpop.f32.mrb[3].mxu1 }
 0x1f6 PF: > { %s17_s26 = sadd.s32 1, %s872_s26   ;;  %s1043_s24 = smov %s868_s25 }
 0x1f7   : > { %p14_p5 = scmp.ge.s32.totalorder %s17_s26, 4   ;;  %s1044_s25 = smov %s1046_s27 }
 0x1f9   :  { %16 = sbr.rel (!%p14_p5) target bundleno = 2 (0x2), region = 92 }

// kernel: run.8
= control target key start
LH: loop header
LB: loop body
LE: loop exit
PB: predicated region body
PF: predicated region fallthrough
CT: control target
= control target key end

     0   :  { %12 = vsyncpa [#allocation3], 0  ;;  %s1043_s24 = smov 0   ;;  %s1045_s25 = smov 0   ;;  %s1167_s0 = inlined_call_operand.vmem [shape: bf16[2,16,128], index: 0, kind: input, shape index: {}]   ;;  %s1168_s1 = inlined_call_operand.vmem [shape: f32[2,1,128], index: 1, kind: input, shape index: {}]   ;;  %s1169_s2 = inlined_call_operand.vmem [shape: f32[2,16,1], index: 2, kind: input, shape index: {}]   ;;  %s1170_s3 = inlined_call_operand.vmem [shape: bf16[128,128], index: 3, kind: input, shape index: {}]   ;;  %s1171_s4 = inlined_call_operand.vmem [shape: f32[1,128], index: 4, kind: input, shape index: {}]   ;;  %s1172_s5 = inlined_call_operand.hbm [shape: bf16[128,128], index: 5, kind: input, shape index: {}]   ;;  %s1173_s6 = inlined_call_operand.vmem [shape: f32[1,128], index: 6, kind: input, shape index: {}]   ;;  %s1174_s7 = inlined_call_operand.vmem [shape: bf16[2,16,128], index: 7, kind: output, shape index: {}]  }
   0x1   :  { %s1047_s26 = smov 0  }
   0x2 LB: > { %s778_s27 = sadd.s32 4294967295, %s995_s26   ;;  %s30_s28 = sadd.s32 1, %s991_s25  ;;  %s995_s26 = sphi %s1047_s26, %s18_s26   ;;  %s991_s25 = sphi %s1045_s25, %s1184_s25   ;;  %s987_s24 = sphi %s1043_s24, %s1183_s24  }
   0x3   : > { %p32_p0 = scmp.ge.s32.totalorder %s30_s28, 2  ;;  %p780_p1 = scmp.ge.s32.totalorder %s995_s26, 1 }
   0x4   : > { %p229_p2 = scmp.lt.s32.totalorder %s995_s26, 3  ;;  %p1068_p4 = scmp.eq.s32.totalorder %s778_s27, 0 }
   0x5   : > { %s1186_s28 = smov (%p32_p0, %s30_s28), 0  ;;  %s997_s8 = smov [#allocation2]  }
   0x6   : > { %p1064_p3 = pnand %p780_p1, %p229_p2  ;;  %s247_s9 = sshll.u32 %s997_s8, 4  ;;  %s248_s9 = int_to_ptr.vmem [resolvable:$true] %s247_s9 }
   0x7   : > { %s1179_s30 = scalar_select %p1068_p4, 1, 0 }
   0x8   : > { %s1178_s29 = scalar_select %p1064_p3, 1, 0 }
   0x9   : > { %p887_p5 = pneg %p1064_p3  ;;  %s941_s13 = scalar_lea.hbm %s1172_s5, 1024 }
   0xa   : > { %p942_p7 = scmp.ne.s32.totalorder %s1172_s5, %s941_s13  ;;  %p948_p11 = scmp.lt.u32.totalorder %s941_s13, %s1172_s5 }
   0xb   : > { %p1076_p6 = pnand %p1068_p4, %p887_p5 }
   0xd   : > { %p943_p8 = pneg %p1076_p6 }
   0xf   : > { %p944_p9 = pnand %p943_p8, %p942_p7 }
  0x11   : > { %p945_p10 = pneg %p944_p9 }
  0x13   : > { %p950_p12 = pnand %p948_p11, %p945_p10 }
  0x15   : > { %953 = shalt.err (!%p950_p12)
}
  0x16   : > { %s954_s18 = scalar_lea.vmem %s248_s9, 1024  ;;  %p962_p2 = scmp.lt.s32.totalorder %s248_s9, %s248_s9 }
  0x17   : > { %p955_p13 = scmp.ne.s32.totalorder %s248_s9, %s954_s18  ;;  %p963_p5 = scmp.lt.s32.totalorder %s954_s18, %s954_s18 }
  0x19   : > { %p957_p0 = pnand %p955_p13, %p943_p8  ;;  %p964_p4 = por %p963_p5, %p962_p2 }
  0x1b   : > { %p958_p1 = pneg %p957_p0 }
  0x1d   : > { %p965_p3 = pnand %p964_p4, %p958_p1 }
  0x1f   : > { %968 = shalt.err (!%p965_p3)
}
  0x20   : > { %s998_s19 = smov 64   ;;  %s999_s20 = smov 4  }
  0x21   : > { %890 = dma.hbm_to_vmem [thread:$0]  (!%p1076_p6), %s1172_s5, 1024, %s248_s9, [#allocation3], %s998_s19, %s998_s19, %s999_s20  }
  0x22   : > { %p1181_p7 = scmp.ne.s32.totalorder %s1178_s29, 0 }
  0x23   : > { %p1182_p9 = scmp.ne.s32.totalorder (!%p1181_p7), %s1179_s30, 0 }
  0x24   : > { %298 = sbr.rel (%p1181_p7) target bundleno = 521 (0x209), region = 48 }
  0x2b   : > { %982 = dma.done.wait (%p1182_p9), [#allocation3], 1024  }
  0x2c   : > { %984 = vsyncadd (%p1182_p9), [#allocation3], 4294966272  ;;  %v1000_v0 = vmov 0.0   ;;  %vm1001_vm0 = vmmov 0   ;;  %p351_p3 = scmp.lt.s32.totalorder %s987_s24, 1  ;;  %v924_v1 = vld [vmem:[%s1170_s3] sm:$0xff]  }
  0x2d   : > { %843 = vmatprep.subr.bf16.mxu0 %v1000_v0  ;;  %859 = vmatprep.mubr.msk.bf16.mxu0 %vm1001_vm0, %v1000_v0  ;;  %v925_v2 = vld [vmem:[%s1170_s3 + $0x8] sm:$0xff]   ;;  %v926_v3 = vld [vmem:[%s1170_s3 + $0x10] sm:$0xff]   ;;  %v933_v4 = vld [vmem:[#allocation2] sm:$0xff]   ;;  %v1002_v18 = vmov 0  }
  0x2e   : > { %863 = vmatprep.subr.bf16.mxu1 %v1000_v0  ;;  %879 = vmatprep.mubr.msk.bf16.mxu1 %vm1001_vm0, %v1000_v0  ;;  %s1188_s24 = smov (!%p351_p3, %s987_s24), 1  ;;  %v927_v5 = vld [vmem:[%s1170_s3 + $0x18] sm:$0xff]   ;;  %v934_v6 = vld [vmem:[#allocation2 + $0x8] sm:$0xff]   ;;  %v928_v7 = vld [vmem:[%s1170_s3 + $0x20] sm:$0xff]  }
  0x2f   : > { %844 = vmatpush3.bf16.msra.mxu0 %v924_v1  ;;  %s815_s8 = sshll.u32 %s1188_s24, 3  ;;  %864 = vmatpush3.bf16.msra.mxu1 %v933_v4  ;;  %v935_v8 = vld [vmem:[#allocation2 + $0x10] sm:$0xff]   ;;  %v929_v9 = vld [vmem:[%s1170_s3 + $0x28] sm:$0xff]   ;;  %v936_v10 = vld [vmem:[#allocation2 + $0x18] sm:$0xff]   ;;  %s816_s27 = sshll.u32 %s1188_s24, 4 }
  0x30   : > { %845 = vmatprep.subr.bf16.mxu0 %v1000_v0  ;;  %s1121_s13 = scalar_lea.vmem %s1167_s0, %s815_s8  ;;  %865 = vmatprep.subr.bf16.mxu1 %v1000_v0  ;;  %v930_v11 = vld [vmem:[%s1170_s3 + $0x30] sm:$0xff]   ;;  %v937_v12 = vld [vmem:[#allocation2 + $0x20] sm:$0xff]   ;;  %v931_v13 = vld [vmem:[%s1170_s3 + $0x38] sm:$0xff]   ;;  %s371_s9 = scalar_lea.vmem %s1169_s2, %s816_s27 }
  0x31   : > { %v932_v14 = vld [vmem:[%s1121_s13] sm:$0xff]   ;;  %v938_v15 = vld [vmem:[#allocation2 + $0x28] sm:$0xff]   ;;  %v939_v16 = vld [vmem:[#allocation2 + $0x30] sm:$0xff]   ;;  %923 = vset.pattern.permute.xlu0 %v1002_v18  ;;  %s362_s12 = scalar_lea.vmem %s1168_s1, %s1188_s24  ;;  %s381_s19 = scalar_lea.vmem %s1174_s7, %s815_s8 }
  0x32   : > { %v940_v17 = vld [vmem:[#allocation2 + $0x38] sm:$0xff]   ;;  %v628_v19 = vld [vmem:[%s371_s9] sm:$0xff]  ;;  %v629_v20 = vld [vmem:[%s371_s9 + $0x8] sm:$0xff] }
  0x33   : > { %846 = vmatpush3.bf16.msra.mxu0 %v925_v2  ;;  %866 = vmatpush3.bf16.msra.mxu1 %v934_v6  ;;  %v791_v21 = vld [vmem:[%s1171_s4] ss:$0 sm:$0xff] }
  0x34   : > { %847 = vmatprep.subr.bf16.mxu0 %v1000_v0  ;;  %867 = vmatprep.subr.bf16.mxu1 %v1000_v0  ;;  %v801_v23 = vld [vmem:[%s362_s12] ss:$0 sm:$0xff] }
  0x35   : > { %632 = vperm.xlu0 %923, %v628_v19   ;;  %v802_v35 = vld [vmem:[%s1173_s6] ss:$0 sm:$0xff] }
  0x37   : > { %848 = vmatpush3.bf16.msra.mxu0 %v926_v3  ;;  %868 = vmatpush3.bf16.msra.mxu1 %v935_v8 }
  0x38   : > { %849 = vmatprep.subr.bf16.mxu0 %v1000_v0  ;;  %869 = vmatprep.subr.bf16.mxu1 %v1000_v0 }
  0x39   : > { %637 = vperm.xlu0 %923, %v629_v20  }
  0x3b   : > { %850 = vmatpush3.bf16.msra.mxu0 %v927_v5  ;;  %870 = vmatpush3.bf16.msra.mxu1 %v936_v10 }
  0x3c   : > { %851 = vmatprep.subr.bf16.mxu0 %v1000_v0  ;;  %871 = vmatprep.subr.bf16.mxu1 %v1000_v0 }
  0x3f   : > { %852 = vmatpush3.bf16.msra.mxu0 %v928_v7  ;;  %872 = vmatpush3.bf16.msra.mxu1 %v937_v12 }
  0x40   : > { %853 = vmatprep.subr.bf16.mxu0 %v1000_v0  ;;  %873 = vmatprep.subr.bf16.mxu1 %v1000_v0 }
  0x43   : > { %854 = vmatpush3.bf16.msra.mxu0 %v929_v9  ;;  %874 = vmatpush3.bf16.msra.mxu1 %v938_v15 }
  0x44   : > { %855 = vmatprep.subr.bf16.mxu0 %v1000_v0  ;;  %875 = vmatprep.subr.bf16.mxu1 %v1000_v0 }
  0x47   : > { %856 = vmatpush3.bf16.msra.mxu0 %v930_v11  ;;  %876 = vmatpush3.bf16.msra.mxu1 %v939_v16 }
  0x48   : > { %857 = vmatprep.subr.bf16.mxu0 %v1000_v0  ;;  %877 = vmatprep.subr.bf16.mxu1 %v1000_v0 }
  0x4b   : > { %858 = vmatpush3.bf16.msra.mxu0 %v931_v13  ;;  %878 = vmatpush3.bf16.msra.mxu1 %v940_v17 }
  0x4e   : > { %860 = vmatmul.mubr.bf16.vlgmr.msra.gmra.mrb[0].mxu0 %v932_v14 }
  0xb4   : > { %v633_v34 = vpop.permute.xlu0 %632 }
  0xb8   : > { %v638_v42 = vpop.permute.xlu0 %637 }
 0x121   : > { %v497_v22 = vpop.f32.mrb[0].mxu0 }
 0x122   : > { %v498_v24 = vadd.f32 %v791_v21, %v497_v22  ;;  %v861_v25 = vpop.f32.mrb[1].mxu0 }
 0x123   : > { %v500_v26 = vpop.f32.mrb[2].mxu0 }
 0x124   : > { %v511_v27 = vadd.f32 %v801_v23, %v498_v24  ;;  %v501_v28 = vadd.f32 %v791_v21, %v500_v26  ;;  %v862_v29 = vpop.f32.mrb[3].mxu0 }
 0x126   : > { %v512_v30 = vadd.f32 %v801_v23, %v501_v28  ;;  %v513_v31 = vmax.f32 %v511_v27, 0.0 }
 0x128   : > { %v514_v32 = vmax.f32 %v512_v30, 0.0 }
 0x12a   : > { %v515_v33 = vpack.c.bf16 %v514_v32, %v513_v31 }
 0x12c   : > { %880 = vmatmul.mubr.bf16.vlgmr.msra.gmra.mrb[0].mxu1 %v515_v33 }
 0x1ff   : > { %v621_v36 = vpop.f32.mrb[0].mxu1 }
 0x200   : > { %v622_v37 = vadd.f32 %v802_v35, %v621_v36  ;;  %v881_v38 = vpop.f32.mrb[1].mxu1 }
 0x201   : > { %v624_v39 = vpop.f32.mrb[2].mxu1 }
 0x202   : > { %v625_v40 = vadd.f32 %v802_v35, %v624_v39  ;;  %v882_v41 = vpop.f32.mrb[3].mxu1  ;;  %v640_v43 = vmul.f32 %v633_v34, %v622_v37 }
 0x204   : > { %v641_v44 = vmul.f32 %v638_v42, %v625_v40 }
 0x206   : > { %v823_v45 = vpack.c.bf16 %v641_v44, %v640_v43 }
 0x208   : > { %824 = vst [vmem:[%s381_s19] sm:$0xff] %v823_v45  }
 0x209 PF: > { %s18_s26 = sadd.s32 1, %s995_s26   ;;  %s1183_s24 = smov %s991_s25 }
 0x20a   : > { %p15_p4 = scmp.ge.s32.totalorder %s18_s26, 4   ;;  %s1184_s25 = smov %s1186_s28 }
 0x20c   :  { %17 = sbr.rel (!%p15_p4) target bundleno = 2 (0x2), region = 89 }
 0x213   :  { %682 = vsyncpa [#allocation3], 1 }
 0x214   :  { %684 = vsyncpa [#allocation3 + $0x1], 1 }

// kernel: run.12
= control target key start
LH: loop header
LB: loop body
LE: loop exit
PB: predicated region body
PF: predicated region fallthrough
CT: control target
= control target key end

     0   :  { %14 = vsyncpa [#allocation3], 0  ;;  %s1603_s0 = inlined_call_operand.vmem [shape: bf16[2,16,128], index: 0, kind: input, shape index: {}]   ;;  %s1604_s1 = inlined_call_operand.vmem [shape: f32[2,1,128], index: 1, kind: input, shape index: {}]   ;;  %s1605_s2 = inlined_call_operand.vmem [shape: f32[2,16,1], index: 2, kind: input, shape index: {}]   ;;  %s1606_s3 = inlined_call_operand.hbm [shape: bf16[128,128], index: 3, kind: input, shape index: {}]   ;;  %s1607_s4 = inlined_call_operand.vmem [shape: f32[1,128], index: 4, kind: input, shape index: {}]   ;;  %s1608_s5 = inlined_call_operand.hbm [shape: bf16[128,128], index: 5, kind: input, shape index: {}]   ;;  %s1609_s6 = inlined_call_operand.vmem [shape: f32[1,128], index: 6, kind: input, shape index: {}]   ;;  %s1610_s7 = inlined_call_operand.hbm [shape: bf16[128,128], index: 7, kind: input, shape index: {}]   ;;  %s1611_s8 = inlined_call_operand.vmem [shape: f32[1,128], index: 8, kind: input, shape index: {}]   ;;  %s1612_s9 = inlined_call_operand.vmem [shape: bf16[2,16,128], index: 9, kind: output, shape index: {}]  }
   0x1   :  { %15 = vsyncpa [#allocation5], 0  ;;  %s1400_s30 = smov 0   ;;  %s1402_s10 = smov 0  }
   0x2   :  { %s1404_s11 = smov 0  }
   0x3 LB: > { %1617 = sst [smem:[#allocation9_spill]] %s1336_s10  ;;  %s993_s12 = sadd.s32 4294967295, %s1340_s11   ;;  %s1340_s11 = sphi %s1404_s11, %s21_s11   ;;  %s1336_s10 = sphi %s1402_s10, %s1626_s10   ;;  %s1332_s30 = sphi %s1400_s30, %s1625_s30  }
   0x4   : > { %p995_p0 = scmp.ge.s32.totalorder %s1340_s11, 1  ;;  %p274_p1 = scmp.lt.s32.totalorder %s1340_s11, 3 }
   0x5   : > { %p1418_p2 = scmp.eq.s32.totalorder %s993_s12, 0  ;;  %s1342_s15 = smov [#allocation4]  }
   0x6   : > { %p1422_p3 = pnand %p995_p0, %p274_p1  ;;  %s302_s16 = sshll.u32 %s1342_s15, 4  ;;  %s1426_s16 = int_to_ptr.vmem [resolvable:$true] %s302_s16 }
   0x7   : > { %s1618_s13 = scalar_select %p1418_p2, 1, 0 }
   0x8   : > { %s1619_s14 = scalar_select %p1422_p3, 1, 0 }
   0x9   : > { %p1152_p4 = pneg %p1422_p3  ;;  %s33_s18 = sadd.s32 1, %s1336_s10 }
   0xa   : > { %p1437_p6 = scmp.ge.s32.totalorder %s33_s18, 2  ;;  %s1343_s20 = smov [#allocation2]  }
   0xb   : > { %p1432_p5 = pnand %p1418_p2, %p1152_p4  ;;  %s286_s21 = sshll.u32 %s1343_s20, 4  ;;  %s287_s21 = int_to_ptr.vmem [resolvable:$true] %s286_s21 }
   0xc   : > { %s1226_s24 = scalar_lea.hbm %s1608_s5, 1024 }
   0xd   : > { %p1227_p7 = scmp.ne.s32.totalorder %s1608_s5, %s1226_s24  ;;  %p1449_p8 = pneg %p1432_p5 }
   0xe   : > { %p1233_p11 = scmp.lt.u32.totalorder %s1226_s24, %s1608_s5 }
   0xf   : > { %p1229_p9 = pnand %p1449_p8, %p1227_p7 }
  0x11   : > { %p1230_p10 = pneg %p1229_p9 }
  0x13   : > { %p1235_p12 = pnand %p1233_p11, %p1230_p10 }
  0x15   : > { %1238 = shalt.err (!%p1235_p12)
}
  0x16   : > { %s1239_s12 = scalar_lea.vmem %s1426_s16, 1024  ;;  %p1247_p4 = scmp.lt.s32.totalorder %s1426_s16, %s1426_s16 }
  0x17   : > { %p1240_p13 = scmp.ne.s32.totalorder %s1426_s16, %s1239_s12  ;;  %p1248_p2 = scmp.lt.s32.totalorder %s1239_s12, %s1239_s12 }
  0x19   : > { %p1242_p0 = pnand %p1240_p13, %p1449_p8  ;;  %p1249_p7 = por %p1248_p2, %p1247_p4 }
  0x1b   : > { %p1243_p1 = pneg %p1242_p0 }
  0x1d   : > { %p1250_p9 = pnand %p1249_p7, %p1243_p1 }
  0x1f   : > { %1253 = shalt.err (!%p1250_p9)
}
  0x20   : > { %s1344_s15 = smov 64   ;;  %s1345_s20 = smov 4  }
  0x21   : > { %1158 = dma.hbm_to_vmem [thread:$0]  (!%p1432_p5), %s1608_s5, 1024, %s1426_s16, [#allocation5], %s1344_s15, %s1344_s15, %s1345_s20  }
  0x22   : > { %s1628_s18 = smov (%p1437_p6, %s33_s18), 0  ;;  %s1254_s26 = scalar_lea.hbm %s1606_s3, 1024 }
  0x23   : > { %p1255_p2 = scmp.ne.s32.totalorder %s1606_s3, %s1254_s26  ;;  %p1261_p12 = scmp.lt.u32.totalorder %s1254_s26, %s1606_s3 }
  0x25   : > { %p1257_p10 = pnand %p1255_p2, %p1449_p8 }
  0x27   : > { %p1258_p11 = pneg %p1257_p10 }
  0x29   : > { %p1263_p13 = pnand %p1261_p12, %p1258_p11 }
  0x2b   : > { %1266 = shalt.err (!%p1263_p13)
}
  0x2c   : > { %s1267_s16 = scalar_lea.vmem %s287_s21, 1024  ;;  %p1275_p4 = scmp.lt.s32.totalorder %s287_s21, %s287_s21 }
  0x2d   : > { %p1268_p6 = scmp.ne.s32.totalorder %s287_s21, %s1267_s16  ;;  %p1276_p7 = scmp.lt.s32.totalorder %s1267_s16, %s1267_s16 }
  0x2f   : > { %p1270_p0 = pnand %p1268_p6, %p1449_p8  ;;  %p1277_p9 = por %p1276_p7, %p1275_p4 }
  0x31   : > { %p1271_p1 = pneg %p1270_p0 }
  0x33   : > { %p1278_p3 = pnand %p1277_p9, %p1271_p1 }
  0x35   : > { %1281 = shalt.err (!%p1278_p3)
}
  0x36   : > { %1155 = dma.hbm_to_vmem [thread:$0]  (!%p1432_p5), %s1606_s3, 1024, %s287_s21, [#allocation3], %s1344_s15, %s1344_s15, %s1345_s20  }
  0x37   : > { %s1346_s22 = smov [#allocation6]   ;;  %s1282_s26 = scalar_lea.hbm %s1610_s7, 1024 }
  0x38   : > { %s318_s23 = sshll.u32 %s1346_s22, 4  ;;  %p1283_p3 = scmp.ne.s32.totalorder %s1610_s7, %s1282_s26  ;;  %s319_s23 = int_to_ptr.vmem [resolvable:$true] %s318_s23 }
  0x39   : > { %p1289_p11 = scmp.lt.u32.totalorder %s1282_s26, %s1610_s7 }
  0x3a   : > { %p1285_p2 = pnand %p1283_p3, %p1449_p8 }
  0x3c   : > { %p1286_p10 = pneg %p1285_p2 }
  0x3e   : > { %p1291_p12 = pnand %p1289_p11, %p1286_p10 }
  0x40   : > { %1294 = shalt.err (!%p1291_p12)
}
  0x41   : > { %s1295_s21 = scalar_lea.vmem %s319_s23, 1024  ;;  %p1303_p1 = scmp.lt.s32.totalorder %s319_s23, %s319_s23 }
  0x42   : > { %p1296_p13 = scmp.ne.s32.totalorder %s319_s23, %s1295_s21  ;;  %p1304_p4 = scmp.lt.s32.totalorder %s1295_s21, %s1295_s21 }
  0x44   : > { %p1298_p6 = pnand %p1296_p13, %p1449_p8  ;;  %p1305_p7 = por %p1304_p4, %p1303_p1 }
  0x46   : > { %p1299_p0 = pneg %p1298_p6 }
  0x48   : > { %p1306_p9 = pnand %p1305_p7, %p1299_p0 }
  0x4a   : > { %1309 = shalt.err (!%p1306_p9)
}
  0x4b   : > { %1161 = dma.hbm_to_vmem [thread:$0]  (!%p1432_p5), %s1610_s7, 1024, %s319_s23, [#allocation5], %s1344_s15, %s1344_s15, %s1345_s20  }
  0x4c   : > { %p1623_p3 = scmp.ne.s32.totalorder %s1619_s14, 0 }
  0x4d   : > { %p1624_p8 = scmp.ne.s32.totalorder (!%p1623_p3), %s1618_s13, 0 }
  0x4e   : > { %369 = sbr.rel (%p1623_p3) target bundleno = 783 (0x30f), region = 56 }
  0x55   : > { %1323 = dma.done.wait (%p1624_p8), [#allocation3], 1024  }
  0x56   : > { %1325 = vsyncadd (%p1624_p8), [#allocation3], 4294966272 }
  0x57   : > { %1327 = dma.done.wait (%p1624_p8), [#allocation5], 2048  }
  0x58   : > { %1329 = vsyncadd (%p1624_p8), [#allocation5], 4294965248  ;;  %v1347_v0 = vmov 0.0   ;;  %vm1348_vm0 = vmmov 0   ;;  %p434_p5 = scmp.lt.s32.totalorder %s1332_s30, 1  ;;  %v1201_v1 = vld [vmem:[#allocation2] sm:$0xff]  }
  0x59   : > { %1080 = vmatprep.subr.bf16.mxu0 %v1347_v0  ;;  %1096 = vmatprep.mubr.msk.bf16.mxu0 %vm1348_vm0, %v1347_v0  ;;  %v1202_v2 = vld [vmem:[#allocation2 + $0x8] sm:$0xff]   ;;  %v1203_v3 = vld [vmem:[#allocation2 + $0x10] sm:$0xff]   ;;  %v1210_v4 = vld [vmem:[#allocation4] sm:$0xff]   ;;  %v1349_v19 = vmov 0  }
  0x5a   : > { %1100 = vmatprep.subr.bf16.mxu1 %v1347_v0  ;;  %1116 = vmatprep.mubr.msk.bf16.mxu1 %vm1348_vm0, %v1347_v0  ;;  %s1630_s30 = smov (!%p434_p5, %s1332_s30), 1  ;;  %v1204_v5 = vld [vmem:[#allocation2 + $0x18] sm:$0xff]   ;;  %v1211_v6 = vld [vmem:[#allocation4 + $0x8] sm:$0xff]   ;;  %v1205_v7 = vld [vmem:[#allocation2 + $0x20] sm:$0xff]  }
  0x5b   : > { %1081 = vmatpush3.bf16.msra.mxu0 %v1201_v1  ;;  %s1043_s13 = sshll.u32 %s1630_s30, 3  ;;  %1101 = vmatpush3.bf16.msra.mxu1 %v1210_v4  ;;  %v1212_v8 = vld [vmem:[#allocation4 + $0x10] sm:$0xff]   ;;  %v1206_v9 = vld [vmem:[#allocation2 + $0x28] sm:$0xff]   ;;  %v1213_v10 = vld [vmem:[#allocation4 + $0x18] sm:$0xff]   ;;  %s1044_s15 = sshll.u32 %s1630_s30, 4 }
  0x5c   : > { %1082 = vmatprep.subr.bf16.mxu0 %v1347_v0  ;;  %s1547_s27 = scalar_lea.vmem %s1603_s0, %s1043_s13  ;;  %1102 = vmatprep.subr.bf16.mxu1 %v1347_v0  ;;  %v1207_v11 = vld [vmem:[#allocation2 + $0x30] sm:$0xff]   ;;  %v1214_v12 = vld [vmem:[#allocation4 + $0x20] sm:$0xff]   ;;  %v1208_v13 = vld [vmem:[#allocation2 + $0x38] sm:$0xff]   ;;  %s454_s23 = scalar_lea.vmem %s1605_s2, %s1044_s15 }
  0x5d   : > { %v1209_v14 = vld [vmem:[%s1547_s27] sm:$0xff]   ;;  %v1215_v15 = vld [vmem:[#allocation4 + $0x28] sm:$0xff]   ;;  %v1216_v16 = vld [vmem:[#allocation4 + $0x30] sm:$0xff]   ;;  %1200 = vset.pattern.permute.xlu0 %v1349_v19  ;;  %s445_s26 = scalar_lea.vmem %s1604_s1, %s1630_s30  ;;  %s464_s17 = scalar_lea.vmem %s1612_s9, %s1043_s13 }
  0x5e   : > { %v1217_v17 = vld [vmem:[#allocation4 + $0x38] sm:$0xff]   ;;  %v1218_v18 = vld [vmem:[#allocation6] sm:$0xff]   ;;  %v1219_v21 = vld [vmem:[#allocation6 + $0x8] sm:$0xff]  }
  0x5f   : > { %1083 = vmatpush3.bf16.msra.mxu0 %v1202_v2  ;;  %1103 = vmatpush3.bf16.msra.mxu1 %v1211_v6  ;;  %v711_v20 = vld [vmem:[%s454_s23] sm:$0xff]  ;;  %v712_v22 = vld [vmem:[%s454_s23 + $0x8] sm:$0xff]  ;;  %v1220_v23 = vld [vmem:[#allocation6 + $0x10] sm:$0xff]  }
  0x60   : > { %1084 = vmatprep.subr.bf16.mxu0 %v1347_v0  ;;  %1104 = vmatprep.subr.bf16.mxu1 %v1347_v0  ;;  %v1221_v24 = vld [vmem:[#allocation6 + $0x18] sm:$0xff]   ;;  %v1222_v25 = vld [vmem:[#allocation6 + $0x20] sm:$0xff]   ;;  %v1223_v26 = vld [vmem:[#allocation6 + $0x28] sm:$0xff]  }
  0x61   : > { %715 = vperm.xlu0 %1200, %v711_v20   ;;  %v1010_v27 = vld [vmem:[%s1607_s4] ss:$0 sm:$0xff]  ;;  %v1224_v40 = vld [vmem:[#allocation6 + $0x30] sm:$0xff]   ;;  %v1225_v41 = vld [vmem:[#allocation6 + $0x38] sm:$0xff]  }
  0x62   : > { %v1020_v29 = vld [vmem:[%s445_s26] ss:$0 sm:$0xff] }
  0x63   : > { %1085 = vmatpush3.bf16.msra.mxu0 %v1203_v3  ;;  %1105 = vmatpush3.bf16.msra.mxu1 %v1212_v8  ;;  %v1021_v43 = vld [vmem:[%s1609_s6] ss:$0 sm:$0xff] }
  0x64   : > { %1086 = vmatprep.subr.bf16.mxu0 %v1347_v0  ;;  %1106 = vmatprep.subr.bf16.mxu1 %v1347_v0  ;;  %v1030_v54 = vld [vmem:[%s1611_s8] ss:$0 sm:$0xff] }
  0x65   : > { %720 = vperm.xlu0 %1200, %v712_v22  }
  0x67   : > { %1087 = vmatpush3.bf16.msra.mxu0 %v1204_v5  ;;  %1107 = vmatpush3.bf16.msra.mxu1 %v1213_v10 }
  0x68   : > { %1088 = vmatprep.subr.bf16.mxu0 %v1347_v0  ;;  %1108 = vmatprep.subr.bf16.mxu1 %v1347_v0 }
  0x6b   : > { %1089 = vmatpush3.bf16.msra.mxu0 %v1205_v7  ;;  %1109 = vmatpush3.bf16.msra.mxu1 %v1214_v12 }
  0x6c   : > { %1090 = vmatprep.subr.bf16.mxu0 %v1347_v0  ;;  %1110 = vmatprep.subr.bf16.mxu1 %v1347_v0 }
  0x6f   : > { %1091 = vmatpush3.bf16.msra.mxu0 %v1206_v9  ;;  %1111 = vmatpush3.bf16.msra.mxu1 %v1215_v15 }
  0x70   : > { %1092 = vmatprep.subr.bf16.mxu0 %v1347_v0  ;;  %1112 = vmatprep.subr.bf16.mxu1 %v1347_v0 }
  0x73   : > { %1093 = vmatpush3.bf16.msra.mxu0 %v1207_v11  ;;  %1113 = vmatpush3.bf16.msra.mxu1 %v1216_v16 }
  0x74   : > { %1094 = vmatprep.subr.bf16.mxu0 %v1347_v0  ;;  %1114 = vmatprep.subr.bf16.mxu1 %v1347_v0 }
  0x77   : > { %1095 = vmatpush3.bf16.msra.mxu0 %v1208_v13  ;;  %1115 = vmatpush3.bf16.msra.mxu1 %v1217_v17 }
  0x78   : > { %1120 = vmatprep.subr.bf16.mxu0 %v1347_v0 }
  0x7a   : > { %1097 = vmatmul.mubr.bf16.vlgmr.msra.gmra.mrb[0].mxu0 %v1209_v14 }
  0x7b   : > { %1136 = vmatprep.mubr.msk.bf16.mxu0 %vm1348_vm0, %v1347_v0  ;;  %1121 = vmatpush3.bf16.msra.mxu0 %v1218_v18 }
  0x7c   : > { %1122 = vmatprep.subr.bf16.mxu0 %v1347_v0 }
  0x7f   : > { %1123 = vmatpush3.bf16.msra.mxu0 %v1219_v21 }
  0x80   : > { %1124 = vmatprep.subr.bf16.mxu0 %v1347_v0 }
  0x83   : > { %1125 = vmatpush3.bf16.msra.mxu0 %v1220_v23 }
  0x84   : > { %1126 = vmatprep.subr.bf16.mxu0 %v1347_v0 }
  0x87   : > { %1127 = vmatpush3.bf16.msra.mxu0 %v1221_v24 }
  0x88   : > { %1128 = vmatprep.subr.bf16.mxu0 %v1347_v0 }
  0x8b   : > { %1129 = vmatpush3.bf16.msra.mxu0 %v1222_v25 }
  0x8c   : > { %1130 = vmatprep.subr.bf16.mxu0 %v1347_v0 }
  0x8f   : > { %1131 = vmatpush3.bf16.msra.mxu0 %v1223_v26 }
  0x90   : > { %1132 = vmatprep.subr.bf16.mxu0 %v1347_v0 }
  0x93   : > { %1133 = vmatpush3.bf16.msra.mxu0 %v1224_v40 }
  0x94   : > { %1134 = vmatprep.subr.bf16.mxu0 %v1347_v0 }
  0x97   : > { %1135 = vmatpush3.bf16.msra.mxu0 %v1225_v41 }
  0xe0   : > { %v716_v42 = vpop.permute.xlu0 %715 }
  0xe4   : > { %v721_v50 = vpop.permute.xlu0 %720 }
 0x14d   : > { %v580_v28 = vpop.f32.mrb[0].mxu0 }
 0x14e   : > { %v581_v30 = vadd.f32 %v1010_v27, %v580_v28  ;;  %v1098_v31 = vpop.f32.mrb[1].mxu0 }
 0x14f   : > { %v583_v32 = vpop.f32.mrb[2].mxu0 }
 0x150   : > { %v594_v33 = vadd.f32 %v1020_v29, %v581_v30  ;;  %v584_v34 = vadd.f32 %v1010_v27, %v583_v32  ;;  %v1099_v35 = vpop.f32.mrb[3].mxu0 }
 0x152   : > { %v595_v36 = vadd.f32 %v1020_v29, %v584_v34  ;;  %v596_v37 = vmax.f32 %v594_v33, 0.0 }
 0x154   : > { %v597_v38 = vmax.f32 %v595_v36, 0.0 }
 0x156   : > { %v598_v39 = vpack.c.bf16 %v597_v38, %v596_v37 }
 0x158   : > { %1117 = vmatmul.mubr.bf16.vlgmr.msra.gmra.mrb[0].mxu1 %v598_v39 }
 0x22b   : > { %v704_v44 = vpop.f32.mrb[0].mxu1 }
 0x22c   : > { %v705_v45 = vadd.f32 %v1021_v43, %v704_v44  ;;  %v1118_v46 = vpop.f32.mrb[1].mxu1 }
 0x22d   : > { %v707_v47 = vpop.f32.mrb[2].mxu1 }
 0x22e   : > { %v708_v48 = vadd.f32 %v1021_v43, %v707_v47  ;;  %v1119_v49 = vpop.f32.mrb[3].mxu1  ;;  %v723_v51 = vmul.f32 %v716_v42, %v705_v45 }
 0x230   : > { %v724_v52 = vmul.f32 %v721_v50, %v708_v48 }
 0x232   : > { %v725_v53 = vpack.c.bf16 %v724_v52, %v723_v51 }
 0x234   : > { %1137 = vmatmul.mubr.bf16.vlgmr.msra.gmra.mrb[4].mxu0 %v725_v53 }
 0x307   : > { %v831_v55 = vpop.f32.mrb[4].mxu0 }
 0x308   : > { %v1138_v56 = vpop.f32.mrb[5].mxu0  ;;  %v832_v58 = vadd.f32 %v1030_v54, %v831_v55 }
 0x309   : > { %v834_v57 = vpop.f32.mrb[6].mxu0 }
 0x30a   : > { %v835_v59 = vadd.f32 %v1030_v54, %v834_v57  ;;  %v1139_v60 = vpop.f32.mrb[7].mxu0 }
 0x30c   : > { %v1051_v61 = vpack.c.bf16 %v835_v59, %v832_v58 }
 0x30e   : > { %1052 = vst [vmem:[%s464_s17] sm:$0xff] %v1051_v61  }
 0x30f PF: > { %s21_s11 = sadd.s32 1, %s1340_s11   ;;  %s1625_s30 = sld [smem:[#allocation9_spill]] }
 0x310   : > { %p18_p2 = scmp.ge.s32.totalorder %s21_s11, 4   ;;  %s1626_s10 = smov %s1628_s18 }
 0x312   :  { %20 = sbr.rel (!%p18_p2) target bundleno = 3 (0x3), region = 105 }
 0x319   :  { %878 = vsyncpa [#allocation3], 1 }
 0x31a   :  { %880 = vsyncpa [#allocation3 + $0x1], 1 }
 0x31b   :  { %881 = vsyncpa [#allocation5], 1 }

// kernel: run.10
= control target key start
LH: loop header
LB: loop body
LE: loop exit
PB: predicated region body
PF: predicated region fallthrough
CT: control target
= control target key end

     0   :  { %10 = vsyncpa [#allocation4], 0  ;;  %s911_s0 = inlined_call_operand.vmem [shape: bf16[2,8,128], index: 0, kind: input, shape index: {}]   ;;  %s912_s1 = inlined_call_operand.vmem [shape: f32[2,8,1], index: 1, kind: input, shape index: {}]   ;;  %s913_s2 = inlined_call_operand.vmem [shape: f32[2,1,1], index: 2, kind: input, shape index: {}]   ;;  %s914_s3 = inlined_call_operand.vmem [shape: bf16[128,128], index: 3, kind: input, shape index: {}]   ;;  %s915_s4 = inlined_call_operand.vmem [shape: f32[1,128], index: 4, kind: input, shape index: {}]   ;;  %s916_s5 = inlined_call_operand.hbm [shape: f32[2,1,128], index: 5, kind: output, shape index: {}]  }
   0x1   :  { %12 = vsyncpa [#allocation4 + $0x1], 0  ;;  %s761_s18 = smov 0   ;;  %s763_s19 = smov 0  }
   0x2   :  { %s765_s20 = smov 0   ;;  %s767_s21 = smov 0  }
   0x3   :  { %s769_s22 = smov 0   ;;  %s771_s23 = smov 0  }
   0x4 LB: > { %s533_s24 = sadd.s32 4294967295, %s725_s23   ;;  %s534_s25 = sadd.s32 4294967294, %s725_s23   ;;  %s725_s23 = sphi %s771_s23, %s18_s23   ;;  %s721_s22 = sphi %s769_s22, %s923_s22   ;;  %s717_s21 = sphi %s767_s21, %s922_s21   ;;  %s713_s20 = sphi %s765_s20, %s921_s20   ;;  %s709_s19 = sphi %s763_s19, %s920_s19   ;;  %s705_s18 = sphi %s761_s18, %s919_s18  }
   0x5   : > { %s30_s26 = sadd.s32 1, %s721_s22  ;;  %s161_s27 = sadd.s32 1, %s713_s20 }
   0x6   : > { %p32_p0 = scmp.ge.s32.totalorder %s30_s26, 2  ;;  %p171_p1 = scmp.ne.s32.totalorder %s713_s20, %s709_s19 }
   0x7   : > { %p172_p2 = scmp.eq.s32.totalorder %s533_s24, 1  ;;  %p177_p3 = scmp.ne.s32.totalorder %s709_s19, %s705_s18 }
   0x8   : > { %s925_s26 = smov (%p32_p0, %s30_s26), 0  ;;  %p178_p5 = scmp.eq.s32.totalorder %s534_s25, 1 }
   0x9   : > { %p801_p4 = por %p172_p2, %p171_p1  ;;  %s158_s29 = ssub.s32 %s721_s22, %s925_s26 }
   0xa   : > { %p537_p6 = scmp.ge.s32.totalorder %s725_s23, 1  ;;  %p159_p7 = scmp.eq.s32.totalorder %s158_s29, 0 }
   0xb   : > { %p808_p8 = por %p178_p5, %p177_p3  ;;  %p228_p9 = scmp.lt.s32.totalorder %s725_s23, 3 }
   0xc   : > { %s814_s6 = scalar_select %p159_p7, %s713_s20, %s161_s27  }
   0xd   : > { %p229_p10 = pnand %p537_p6, %p228_p9 }
   0xe   : > { %p267_p11 = scmp.lt.s32.totalorder (!%p229_p10), %s717_s21, 1  ;;  %v639_v0 = vld [vmem:[%s914_s3] sm:$0xff] (!%p229_p10)   ;;  %v727_v1 = vmov (!%p229_p10), 0   ;;  %v728_v2 = vmov (!%p229_p10), 0.0   ;;  %v640_v4 = vld [vmem:[%s914_s3 + $0x8] sm:$0xff] (!%p229_p10)   ;;  %v641_v6 = vld [vmem:[%s914_s3 + $0x10] sm:$0xff] (!%p229_p10)   ;;  %v318_v21 = vlaneseq (!%p229_p10) }
   0xf   : > { %232 = sbr.rel (%p229_p10) target bundleno = 411 (0x19b), region = 40  ;;  %638 = vset.pattern.permute.xlu0 (!%p229_p10), %v727_v1  ;;  %560 = vmatprep.subr.bf16.mxu0 (!%p229_p10), %v728_v2  ;;  %289 = vst [vmem:[#allocation2] sm:$0x1] (!%p229_p10), %v728_v2  ;;  %v642_v7 = vld [vmem:[%s914_s3 + $0x18] sm:$0xff] (!%p229_p10)   ;;  %v643_v8 = vld [vmem:[%s914_s3 + $0x20] sm:$0xff] (!%p229_p10)   ;;  %v644_v9 = vld [vmem:[%s914_s3 + $0x28] sm:$0xff] (!%p229_p10)  }
  0x10   : > { %561 = vmatpush3.bf16.msra.mxu0 (!%p229_p10), %v639_v0  ;;  %v645_v10 = vld [vmem:[%s914_s3 + $0x30] sm:$0xff] (!%p229_p10)   ;;  %v646_v11 = vld [vmem:[%s914_s3 + $0x38] sm:$0xff] (!%p229_p10)   ;;  %vm729_vm0 = vmmov (!%p229_p10), 0   ;;  %v319_v25 = vshrl.u32 (!%p229_p10), %v318_v21, 7  ;;  %v340_v32 = vld [vmem:[%s915_s4] sm:$0x1] (!%p229_p10) }
  0x11   : > { %562 = vmatprep.subr.bf16.mxu0 (!%p229_p10), %v728_v2  ;;  %576 = vmatprep.mubr.msk.bf16.mxu0 (!%p229_p10), %vm729_vm0, %v728_v2  ;;  %s548_s8 = sshll.u32 (!%p229_p10), %s717_s21, 4 }
  0x12   : > { %v320_v26 = vsub.s32 (!%p229_p10), 0, %v319_v25  ;;  %s864_s14 = scalar_lea.hbm (!%p229_p10), %s916_s5, %s548_s8 }
  0x14   : > { %563 = vmatpush3.bf16.msra.mxu0 (!%p229_p10), %v640_v4 }
  0x15   : > { %564 = vmatprep.subr.bf16.mxu0 (!%p229_p10), %v728_v2 }
  0x16   : > { %s821_s9 = scalar_select %p267_p11, %s717_s21, 1  ;;  %v293_v22 = vld [vmem:[#allocation2] sm:$0x1] }
  0x18   : > { %s539_s10 = sshll.u32 %s821_s9, 3  ;;  %s283_s16 = scalar_lea.vmem %s913_s2, %s821_s9  ;;  %565 = vmatpush3.bf16.msra.mxu0 %v641_v6 }
  0x19   : > { %s280_s13 = scalar_lea.vmem %s912_s1, %s539_s10  ;;  %v312_v5 = vld [vmem:[%s283_s16] sm:$0x1]  ;;  %566 = vmatprep.subr.bf16.mxu0 %v728_v2  ;;  %s538_s17 = sshll.u32 %s821_s9, 2 }
  0x1a   : > { %v292_v3 = vld [vmem:[%s280_s13] sm:$0xff]  ;;  %s273_s27 = scalar_lea.vmem %s911_s0, %s538_s17  ;;  %s265_s9 = sand.u32 1, %s709_s19  }
  0x1b   : > { %296 = vperm.xlu0 %638, %v292_v3   ;;  %v290_v12 = vld [vmem:[%s273_s27] sm:$0xf]  ;;  %s266_s10 = scalar_lea.vmem [#allocation3], %s265_s9  ;;  %s431_s15 = scalar_lea.sflag [#allocation4], %s265_s9 }
  0x1c   : > { %567 = vmatpush3.bf16.msra.mxu0 %v642_v7  ;;  %v291_v13 = vunpack.c.l.bf16 %v290_v12  ;;  %s443_s11 = sshll.u32 %s266_s10, 4  ;;  %s730_s16 = smov [#allocation3]   ;;  %s866_s11 = int_to_ptr.vmem [resolvable:$true] %s443_s11 }
  0x1d   : > { %568 = vmatprep.subr.bf16.mxu0 %v728_v2  ;;  %s647_s21 = scalar_lea.vmem %s866_s11, 16  ;;  %s651_s17 = sshll.u32 %s730_s16, 4  ;;  %s652_s17 = int_to_ptr.vmem [resolvable:$false] %s651_s17 }
  0x1e   : > { %p648_p12 = scmp.ne.s32.totalorder %s866_s11, %s647_s21  ;;  %s653_s24 = scalar_lea.vmem %s652_s17, 32 }
  0x1f   : > { %315 = vperm.xlu0 %638, %v312_v5   ;;  %p654_p1 = scmp.lt.s32.totalorder %s866_s11, %s652_s17  ;;  %p655_p2 = scmp.lt.s32.totalorder %s653_s24, %s647_s21 }
  0x20   : > { %569 = vmatpush3.bf16.msra.mxu0 %v643_v8  ;;  %p649_p13 = pnand %p648_p12, %p801_p4 }
  0x21   : > { %570 = vmatprep.subr.bf16.mxu0 %v728_v2  ;;  %p656_p3 = por %p655_p2, %p654_p1 }
  0x22   : > { %p650_p0 = pneg %p649_p13 }
  0x24   : > { %571 = vmatpush3.bf16.msra.mxu0 %v644_v9  ;;  %p657_p5 = pnand %p656_p3, %p650_p0 }
  0x25   : > { %572 = vmatprep.subr.bf16.mxu0 %v728_v2 }
  0x28   : > { %573 = vmatpush3.bf16.msra.mxu0 %v645_v10 }
  0x29   : > { %574 = vmatprep.subr.bf16.mxu0 %v728_v2 }
  0x2c   : > { %575 = vmatpush3.bf16.msra.mxu0 %v646_v11 }
  0x9a   : > { %v297_v14 = vpop.permute.xlu0 %296 }
  0x9b   : > { %v299_v15 = vmul.f32 %v297_v14, %v291_v13 }
  0x9d   : > { %v300_v16 = vrot.slane %v299_v15, 4 }
  0x9e   : > { %v316_v27 = vpop.permute.xlu0 %315 }
  0x9f   : > { %v301_v17 = vadd.f32 %v300_v16, %v299_v15  ;;  %v321_v28 = vrot.slane %v316_v27, %v320_v26 }
  0xa1   : > { %v302_v18 = vrot.slane %v301_v17, 2 }
  0xa3   : > { %v303_v19 = vadd.f32 %v302_v18, %v301_v17 }
  0xa5   : > { %v304_v20 = vrot.slane %v303_v19, 1 }
  0xa7   : > { %v305_v23 = vadd.f32 %v304_v20, %v303_v19 }
  0xa9   : > { %v306_v24 = vadd.f32 %v305_v23, %v293_v22 }
  0xab   : > { %307 = vst [vmem:[#allocation2] sm:$0x1] %v306_v24 }
  0xb2   : > { %v311_v29 = vld [vmem:[#allocation2] sm:$0x1] }
  0xb3   : > { %v322_v30 = vmul.f32 %v321_v28, %v311_v29 }
  0xb5   : > { %v323_v31 = vpack.c.bf16 %v322_v30, %v322_v30 }
  0xb7   : > { %577 = vmatmul.mubr.bf16.vlgmr.msra.gmra.mrb[0].mxu0 %v323_v31 }
 0x18a   : > { %v423_v33 = vpop.f32.mrb[0].mxu0 }
 0x18b   : > { %v424_v34 = vadd.f32 %v423_v33, %v340_v32  ;;  %v578_v35 = vpop.f32.mrb[1].mxu0 }
 0x18c   : > { %v426_v36 = vpop.f32.mrb[2].mxu0 }
 0x18d   : > { %429 = vst [vmem:[%s266_s10] sm:$0x1] %v424_v34  ;;  %v579_v37 = vpop.f32.mrb[3].mxu0 }
 0x18e   : > { %660 = shalt.err (!%p657_p5)
}
 0x18f   : > { %s661_s25 = scalar_lea.hbm %s864_s14, 16  ;;  %s665_s29 = scalar_lea.hbm %s916_s5, 32 }
 0x190   : > { %p662_p6 = scmp.ne.s32.totalorder %s864_s14, %s661_s25  ;;  %p666_p10 = scmp.lt.u32.totalorder %s864_s14, %s916_s5 }
 0x191   : > { %p667_p11 = scmp.lt.u32.totalorder %s665_s29, %s661_s25  ;;  %p669_p13 = scmp.lt.u32.totalorder %s661_s25, %s864_s14 }
 0x192   : > { %p663_p7 = pnand %p662_p6, %p801_p4 }
 0x193   : > { %p668_p12 = por %p667_p11, %p666_p10 }
 0x194   : > { %p664_p9 = pneg %p663_p7 }
 0x195   : > { %p670_p0 = por %p669_p13, %p668_p12 }
 0x197   : > { %p671_p1 = pnand %p670_p0, %p664_p9 }
 0x199   : > { %674 = shalt.err (!%p671_p1)
}
 0x19a   : > { %580 = dma.vmem_to_hbm [thread:$0]  (%p801_p4), %s866_s11, 16, %s864_s14, %s431_s15  }
 0x19b PF: > { %p586_p2 = scmp.ge.s32.totalorder %s725_s23, 2  ;;  %s455_s10 = sand.u32 1, %s705_s18  }
 0x19c   : > { %s456_s12 = scalar_lea.sflag [#allocation4], %s455_s10 }
 0x19d   : > { %p583_p3 = pnand %p586_p2, %p808_p8 }
 0x19f   : > { %700 = dma.done.wait (!%p583_p3), %s456_s12, 16  }
 0x1a0   : > { %702 = vsyncadd (!%p583_p3), %s456_s12, 4294967280  ;;  %s18_s23 = sadd.s32 1, %s725_s23   ;;  %s919_s18 = smov %s709_s19 }
 0x1a1   : > { %p15_p5 = scmp.ge.s32.totalorder %s18_s23, 4   ;;  %s920_s19 = smov %s713_s20 }
 0x1a2   : > { %s921_s20 = smov %s814_s6  ;;  %s922_s21 = smov %s721_s22 }
 0x1a3   : > { %s923_s22 = smov %s925_s26  ;;  %17 = sbr.rel (!%p15_p5) target bundleno = 4 (0x4), region = 89 }
 0x1aa   :  { %460 = vsyncpa [#allocation4], 1 }
 0x1ab   :  { %462 = vsyncpa [#allocation4 + $0x1], 1 }

// kernel: run.13
= control target key start
LH: loop header
LB: loop body
LE: loop exit
PB: predicated region body
PF: predicated region fallthrough
CT: control target
= control target key end

     0   :  { %12 = vsyncpa [#allocation3], 0  ;;  %s3446_s24 = smov 0   ;;  %s3448_s25 = smov 0   ;;  %s3923_s0 = inlined_call_operand.vmem [shape: bf16[2,1,28,128], index: 0, kind: input, shape index: {}]   ;;  %s3924_s1 = inlined_call_operand.vmem [shape: bf16[5,128,128], index: 1, kind: input, shape index: {}]   ;;  %s3925_s2 = inlined_call_operand.vmem [shape: f32[1,128], index: 2, kind: input, shape index: {}]   ;;  %s3926_s3 = inlined_call_operand.vmem [shape: bf16[5,128,128], index: 3, kind: input, shape index: {}]   ;;  %s3927_s4 = inlined_call_operand.vmem [shape: f32[1,128], index: 4, kind: input, shape index: {}]   ;;  %s3928_s5 = inlined_call_operand.hbm [shape: bf16[5,128,128], index: 5, kind: input, shape index: {}]   ;;  %s3929_s6 = inlined_call_operand.vmem [shape: f32[1,128], index: 6, kind: input, shape index: {}]   ;;  %s3930_s7 = inlined_call_operand.vmem [shape: f32[2,16,128], index: 7, kind: output, shape index: {}]  }
   0x1   :  { %s3450_s26 = smov 0  }
   0x2 LB: > { %s2386_s27 = sadd.s32 4294967295, %s3398_s26   ;;  %s30_s28 = sadd.s32 1, %s3394_s25  ;;  %s3398_s26 = sphi %s3450_s26, %s18_s26   ;;  %s3394_s25 = sphi %s3448_s25, %s3940_s25   ;;  %s3390_s24 = sphi %s3446_s24, %s3939_s24  }
   0x3   : > { %p32_p0 = scmp.ge.s32.totalorder %s30_s28, 2  ;;  %p2388_p1 = scmp.ge.s32.totalorder %s3398_s26, 1 }
   0x4   : > { %p217_p2 = scmp.lt.s32.totalorder %s3398_s26, 3  ;;  %p3471_p4 = scmp.eq.s32.totalorder %s2386_s27, 0 }
   0x5   : > { %s3942_s28 = smov (%p32_p0, %s30_s28), 0  ;;  %s3400_s8 = smov [#allocation2]  }
   0x6   : > { %p3467_p3 = pnand %p2388_p1, %p217_p2  ;;  %s241_s9 = sshll.u32 %s3400_s8, 4  ;;  %s242_s9 = int_to_ptr.vmem [resolvable:$true] %s241_s9 }
   0x7   : > { %s3935_s30 = scalar_select %p3471_p4, 1, 0 }
   0x8   : > { %s3934_s29 = scalar_select %p3467_p3, 1, 0 }
   0x9   : > { %p3173_p5 = pneg %p3467_p3  ;;  %s3344_s13 = scalar_lea.hbm %s3928_s5, 5120 }
   0xa   : > { %p3345_p7 = scmp.ne.s32.totalorder %s3928_s5, %s3344_s13  ;;  %p3351_p11 = scmp.lt.u32.totalorder %s3344_s13, %s3928_s5 }
   0xb   : > { %p3479_p6 = pnand %p3471_p4, %p3173_p5 }
   0xd   : > { %p3346_p8 = pneg %p3479_p6 }
   0xf   : > { %p3347_p9 = pnand %p3346_p8, %p3345_p7 }
  0x11   : > { %p3348_p10 = pneg %p3347_p9 }
  0x13   : > { %p3353_p12 = pnand %p3351_p11, %p3348_p10 }
  0x15   : > { %3356 = shalt.err (!%p3353_p12)
}
  0x16   : > { %s3357_s18 = scalar_lea.vmem %s242_s9, 5120  ;;  %p3365_p2 = scmp.lt.s32.totalorder %s242_s9, %s242_s9 }
  0x17   : > { %p3358_p13 = scmp.ne.s32.totalorder %s242_s9, %s3357_s18  ;;  %p3366_p5 = scmp.lt.s32.totalorder %s3357_s18, %s3357_s18 }
  0x19   : > { %p3360_p0 = pnand %p3358_p13, %p3346_p8  ;;  %p3367_p4 = por %p3366_p5, %p3365_p2 }
  0x1b   : > { %p3361_p1 = pneg %p3360_p0 }
  0x1d   : > { %p3368_p3 = pnand %p3367_p4, %p3361_p1 }
  0x1f   : > { %3371 = shalt.err (!%p3368_p3)
}
  0x20   : > { %s3401_s19 = smov 64   ;;  %s3402_s20 = smov 4  }
  0x21   : > { %3176 = dma.hbm_to_vmem [thread:$0]  (!%p3479_p6), %s3928_s5, 5120, %s242_s9, [#allocation3], %s3401_s19, %s3401_s19, %s3402_s20  }
  0x22   : > { %p3937_p7 = scmp.ne.s32.totalorder %s3934_s29, 0 }
  0x23   : > { %p3938_p9 = scmp.ne.s32.totalorder (!%p3937_p7), %s3935_s30, 0 }
  0x24   : > { %272 = sbr.rel (%p3937_p7) target bundleno = 1081 (0x439), region = 48 }
  0x2b   : > { %3385 = dma.done.wait (%p3938_p9), [#allocation3], 5120  }
  0x2c   : > { %3387 = vsyncadd (%p3938_p9), [#allocation3], 4294962176  ;;  %v3209_v0 = vld [vmem:[%s3924_s1] sm:$0xff]   ;;  %v342_v1 = vlaneseq  ;;  %v3211_v3 = vld [vmem:[%s3924_s1 + $0x8] sm:$0xff]   ;;  %p312_p3 = scmp.lt.s32.totalorder %s3390_s24, 1  ;;  %vm3403_vm2 = vmmov 1  }
  0x2d   : > { %v3210_v2 = vld [vmem:[%s3924_s1 + $0x80] sm:$0xff]   ;;  %2814 = vmatprep.subr.bf16.mxu1 %v3209_v0  ;;  %v3212_v4 = vld [vmem:[%s3924_s1 + $0x88] sm:$0xff]   ;;  %v3213_v5 = vld [vmem:[%s3924_s1 + $0x10] sm:$0xff]   ;;  %v3404_v26 = vmov 0.0   ;;  %vm655_vm4 = vcmask 1046528   ;;  %vm903_vm8 = vcmask 1045504  }
  0x2e   : > { %2854 = vmatprep.subr.bf16.mxu0 %v3210_v2  ;;  %2815 = vmatpush3.bf16.msra.mxu1 %v3209_v0  ;;  %v3521_v6 = vshrl.u32 %v342_v1, 7  ;;  %v3214_v7 = vld [vmem:[%s3924_s1 + $0x90] sm:$0xff]   ;;  %s3944_s24 = smov (!%p312_p3, %s3390_s24), 1  ;;  %v3215_v8 = vld [vmem:[%s3924_s1 + $0x18] sm:$0xff]   ;;  %v3217_v12 = vld [vmem:[%s3924_s1 + $0x20] sm:$0xff]   ;;  %vm3405_vm13 = vmmov 0  }
  0x2f   : > { %2855 = vmatpush3.bf16.msra.mxu0 %v3210_v2  ;;  %2816 = vmatprep.subr.bf16.mxu1 %v3211_v3  ;;  %v3216_v10 = vld [vmem:[%s3924_s1 + $0x98] sm:$0xff]   ;;  %s2665_s20 = sshll.u32 %s3944_s24, 4  ;;  %v3218_v14 = vld [vmem:[%s3924_s1 + $0xa0] sm:$0xff]   ;;  %v3219_v15 = vld [vmem:[%s3924_s1 + $0x28] sm:$0xff]   ;;  %vm519_vm5 = vsmask.f32 7424 }
  0x30   : > { %2856 = vmatprep.subr.bf16.mxu0 %v3212_v4  ;;  %v3533_v9 = vadd.s32 16, %v3521_v6  ;;  %v348_v11 = vadd.s32 4294967290, %v3521_v6  ;;  %s320_s29 = scalar_lea.vmem %s3923_s0, %s2665_s20  ;;  %v3220_v18 = vld [vmem:[%s3924_s1 + $0xa8] sm:$0xff]   ;;  %v3221_v24 = vld [vmem:[%s3924_s1 + $0x30] sm:$0xff]   ;;  %v3223_v31 = vld [vmem:[%s3924_s1 + $0x38] sm:$0xff]   ;;  %s329_s13 = scalar_lea.vmem %s3930_s7, %s2665_s20 }
  0x31   : > { %v3555_v16 = vld [vmem:[%s320_s29] sm:$0xff]   ;;  %v335_v17 = vld [vmem:[%s320_s29 + $0x8] sm:$0xf]  ;;  %v3222_v28 = vld [vmem:[%s3924_s1 + $0xb0] sm:$0xff]   ;;  %vm777_vm7 = vsmask.f32 6400 }
  0x32   : > { %2817 = vmatpush3.bf16.msra.mxu1 %v3211_v3  ;;  %v350_v13 = vadd.s32 4294967290, %v3533_v9  ;;  %vm352_vm0 = vcmp.ge.s32.totalorder %v348_v11, 0  ;;  %v337_v19 = vunpack.c.l.bf16 %v3555_v16  ;;  %v338_v20 = vunpack.c.h.bf16 %v3555_v16  ;;  %v3224_v33 = vld [vmem:[%s3924_s1 + $0xb8] sm:$0xff]   ;;  %v3226_v38 = vld [vmem:[%s3924_s1 + $0x40] sm:$0xff]   ;;  %v3229_v46 = vld [vmem:[%s3924_s1 + $0x48] sm:$0xff]  }
  0x33   : > { %2857 = vmatpush3.bf16.msra.mxu0 %v3212_v4  ;;  %2818 = vmatprep.subr.bf16.mxu1 %v3213_v5  ;;  %vm2406_vm3 = vmpackc.low %vm3403_vm2, %vm352_vm0  ;;  %v339_v21 = vunpack.c.l.bf16 %v335_v17  ;;  %v3227_v39 = vld [vmem:[%s3924_s1 + $0xc0] sm:$0xff]   ;;  %v2668_v41 = vcombine.low %v335_v17, %v335_v17  ;;  %v3230_v48 = vld [vmem:[%s3924_s1 + $0xc8] sm:$0xff]  }
  0x34   : > { %2858 = vmatprep.subr.bf16.mxu0 %v3214_v7  ;;  %vm358_vm1 = vcmp.lt.s32.totalorder %v350_v13, 16  ;;  %v3563_v22 = vsel %vm352_vm0, %v337_v19, 0.0  ;;  %2830 = vmatprep.mubr.msk.bf16.mxu1 %vm2406_vm3, %v3555_v16  ;;  %v3231_v53 = vld [vmem:[%s3924_s1 + $0x50] sm:$0xff]   ;;  %v3233_v56 = vld [vmem:[%s3924_s1 + $0x58] sm:$0xff]   ;;  %v3235_v60 = vld [vmem:[%s3924_s1 + $0x60] sm:$0xff]  }
  0x35   : > { %v3566_v23 = vsel %vm358_vm1, %v339_v21, 0.0  ;;  %v3575_v25 = vpack.c.bf16 %v338_v20, %v3563_v22  ;;  %vm2409_vm6 = vmpackc.low %vm358_vm1, %vm358_vm1  ;;  %v3232_v54 = vld [vmem:[%s3924_s1 + $0xd0] sm:$0xff]   ;;  %v3234_v57 = vld [vmem:[%s3924_s1 + $0xd8] sm:$0xff]  }
  0x36   : > { %2819 = vmatpush3.bf16.msra.mxu1 %v3213_v5  ;;  %v3579_v27 = vpack.c.bf16 %v3404_v26, %v3566_v23  ;;  %v3236_v61 = vld [vmem:[%s3924_s1 + $0xe0] sm:$0xff]   ;;  %v3237_v62 = vld [vmem:[%s3924_s1 + $0x68] sm:$0xff]   ;;  %v3239_v0 = vld [vmem:[%s3924_s1 + $0x70] sm:$0xff]  }
  0x37   : > { %2859 = vmatpush3.bf16.msra.mxu0 %v3214_v7  ;;  %2820 = vmatprep.subr.bf16.mxu1 %v3215_v8  ;;  %v656_v29 = vrot.slane %v3575_v25, 1  ;;  %v523_v34 = vshll.u32 %v3575_v25, 16  ;;  %v521_v35 = vshrl.u32 %v3575_v25, 16  ;;  %v904_v58 = vrot.slane %v3575_v25, 2  ;;  %v3238_v63 = vld [vmem:[%s3924_s1 + $0xe8] sm:$0xff]   ;;  %v3240_v1 = vld [vmem:[%s3924_s1 + $0xf0] sm:$0xff]  }
  0x38   : > { %2860 = vmatprep.subr.bf16.mxu0 %v3216_v10  ;;  %v657_v30 = vrot.slane %v3579_v27, 1  ;;  %v528_v36 = vshll.u32 %v3579_v27, 16  ;;  %v532_v40 = vshrl.u32 %v3579_v27, 16  ;;  %v905_v59 = vrot.slane %v3579_v27, 2  ;;  %v3241_v2 = vld [vmem:[%s3924_s1 + $0x78] sm:$0xff]   ;;  %v3243_v4 = vld [vmem:[%s3924_s1 + $0x100] sm:$0xff]  }
  0x39   : > { %v525_v37 = vrot.slane %v523_v34, 1  ;;  %v778_v44 = vrot.slane %v521_v35, 1  ;;  %v779_v45 = vrot.slane %v523_v34, 2  ;;  %v3242_v3 = vld [vmem:[%s3924_s1 + $0xf8] sm:$0xff]   ;;  %v3244_v7 = vld [vmem:[%s3924_s1 + $0x108] sm:$0xff]   ;;  %v3251_v17 = vld [vmem:[%s3926_s3] sm:$0xff]  }
  0x3a   : > { %2821 = vmatpush3.bf16.msra.mxu1 %v3215_v8  ;;  %v658_v32 = vsel %vm655_vm4, %v656_v29, %v657_v30  ;;  %v3603_v43 = vrot.slane %v528_v36, 1  ;;  %v781_v47 = vrot.slane %v532_v40, 1  ;;  %v782_v50 = vrot.slane %v528_v36, 2  ;;  %v3246_v11 = vld [vmem:[%s3924_s1 + $0x118] sm:$0xff]   ;;  %v3248_v13 = vld [vmem:[%s3924_s1 + $0x128] sm:$0xff]   ;;  %v3253_v19 = vld [vmem:[%s3926_s3 + $0x10] sm:$0xff]  }
  0x3b   : > { %2861 = vmatpush3.bf16.msra.mxu0 %v3216_v10  ;;  %2822 = vmatprep.subr.bf16.mxu1 %v3217_v12  ;;  %v526_v42 = vor.u32 %v525_v37, %v521_v35  ;;  %v780_v49 = vor.u32 %v779_v45, %v778_v44  ;;  %v906_v8 = vsel %vm903_vm8, %v904_v58, %v905_v59  ;;  %v3245_v10 = vld [vmem:[%s3924_s1 + $0x110] sm:$0xff]   ;;  %v3254_v21 = vld [vmem:[%s3926_s3 + $0x18] sm:$0xff]   ;;  %v3256_v25 = vld [vmem:[%s3926_s3 + $0x28] sm:$0xff]   ;;  %v1015_v45 = vadd.s32 4294967292, %v3533_v9 }
  0x3c   : > { %2862 = vmatprep.subr.bf16.mxu0 %v3218_v14  ;;  %2870 = vmatprep.mubr.bf16.mxu0 %v658_v32  ;;  %v783_v52 = vor.u32 %v782_v50, %v781_v47  ;;  %v534_v5 = vor.u32 %v532_v40, %v3603_v43  ;;  %v3257_v27 = vld [vmem:[%s3926_s3 + $0x30] sm:$0xff]   ;;  %v3259_v29 = vld [vmem:[%s3926_s3 + $0x40] sm:$0xff]   ;;  %v3260_v58 = vld [vmem:[%s3926_s3 + $0x48] sm:$0xff]  }
  0x3d   : > { %v531_v51 = vsel %vm519_vm5, %v526_v42, %v3603_v43  ;;  %v2397_v34 = vld [vmem:[%s3925_s2] ss:$0 sm:$0xff]  ;;  %vm1021_vm9 = vcmp.lt.s32.totalorder %v1015_v45, 16  ;;  %v3280_v45 = vld [vmem:[%s3926_s3 + $0xe8] sm:$0xff]  }
  0x3e   : > { %2823 = vmatpush3.bf16.msra.mxu1 %v3217_v12  ;;  %v784_v55 = vsel %vm777_vm7, %v780_v49, %v783_v52  ;;  %v3247_v12 = vld [vmem:[%s3924_s1 + $0x120] sm:$0xff]   ;;  %vm2520_vm12 = vmpackc.low %vm1021_vm9, %vm1021_vm9 }
  0x3f   : > { %2863 = vmatpush3.bf16.msra.mxu0 %v3218_v14  ;;  %2824 = vmatprep.subr.bf16.mxu1 %v3219_v15  ;;  %v3249_v14 = vld [vmem:[%s3924_s1 + $0x130] sm:$0xff]  }
  0x40   : > { %2864 = vmatprep.subr.bf16.mxu0 %v3220_v18 }
  0x42   : > { %2825 = vmatpush3.bf16.msra.mxu1 %v3219_v15  ;;  %v3250_v15 = vld [vmem:[%s3924_s1 + $0x138] sm:$0xff]  }
  0x43   : > { %2865 = vmatpush3.bf16.msra.mxu0 %v3220_v18  ;;  %2826 = vmatprep.subr.bf16.mxu1 %v3221_v24  ;;  %v3252_v18 = vld [vmem:[%s3926_s3 + $0x8] sm:$0xff]  }
  0x44   : > { %2866 = vmatprep.subr.bf16.mxu0 %v3222_v28 }
  0x46   : > { %2827 = vmatpush3.bf16.msra.mxu1 %v3221_v24  ;;  %v3255_v24 = vld [vmem:[%s3926_s3 + $0x20] sm:$0xff]  }
  0x47   : > { %2867 = vmatpush3.bf16.msra.mxu0 %v3222_v28  ;;  %2828 = vmatprep.subr.bf16.mxu1 %v3223_v31  ;;  %v3258_v28 = vld [vmem:[%s3926_s3 + $0x38] sm:$0xff]  }
  0x48   : > { %2868 = vmatprep.subr.bf16.mxu0 %v3224_v33 }
  0x4a   : > { %2829 = vmatpush3.bf16.msra.mxu1 %v3223_v31 }
  0x4b   : > { %2869 = vmatpush3.bf16.msra.mxu0 %v3224_v33  ;;  %2834 = vmatprep.subr.bf16.mxu1 %v3226_v38 }
  0x4c   : > { %2874 = vmatprep.subr.bf16.mxu0 %v3227_v39 }
  0x4d   : > { %2831 = vmatmul.mubr.msk.bf16.vlgmr.msra.gmra.mrb[0].mxu1 %vm2409_vm6, %v2668_v41 }
  0x4e   : > { %2835 = vmatpush3.bf16.msra.mxu1 %v3226_v38  ;;  %2871 = vmatmul.mubr.bf16.vlgmr.msra.gmra.mrb[0].mxu0 %v657_v30 }
  0x4f   : > { %2875 = vmatpush3.bf16.msra.mxu0 %v3227_v39  ;;  %2836 = vmatprep.subr.bf16.mxu1 %v3229_v46 }
  0x50   : > { %2876 = vmatprep.subr.bf16.mxu0 %v3230_v48  ;;  %2850 = vmatprep.mubr.bf16.mxu1 %v531_v51 }
  0x51   : > { %2890 = vmatprep.mubr.bf16.mxu0 %v784_v55 }
  0x52   : > { %2837 = vmatpush3.bf16.msra.mxu1 %v3229_v46  ;;  %v1013_v46 = vadd.s32 4294967292, %v3521_v6 }
  0x53   : > { %2877 = vmatpush3.bf16.msra.mxu0 %v3230_v48  ;;  %2838 = vmatprep.subr.bf16.mxu1 %v3231_v53 }
  0x54   : > { %2878 = vmatprep.subr.bf16.mxu0 %v3232_v54  ;;  %vm1016_vm10 = vcmp.ge.s32.totalorder %v1013_v46, 0  ;;  %v3281_v46 = vld [vmem:[%s3926_s3 + $0xf0] sm:$0xff]  }
  0x55   : > { %vm2517_vm11 = vmpackc.low %vm3403_vm2, %vm1016_vm10 }
  0x56   : > { %2839 = vmatpush3.bf16.msra.mxu1 %v3231_v53 }
  0x57   : > { %2879 = vmatpush3.bf16.msra.mxu0 %v3232_v54  ;;  %2840 = vmatprep.subr.bf16.mxu1 %v3233_v56 }
  0x58   : > { %2880 = vmatprep.subr.bf16.mxu0 %v3234_v57 }
  0x5a   : > { %2841 = vmatpush3.bf16.msra.mxu1 %v3233_v56 }
  0x5b   : > { %2881 = vmatpush3.bf16.msra.mxu0 %v3234_v57  ;;  %2842 = vmatprep.subr.bf16.mxu1 %v3235_v60 }
  0x5c   : > { %2882 = vmatprep.subr.bf16.mxu0 %v3236_v61 }
  0x5e   : > { %2843 = vmatpush3.bf16.msra.mxu1 %v3235_v60 }
  0x5f   : > { %2883 = vmatpush3.bf16.msra.mxu0 %v3236_v61  ;;  %2844 = vmatprep.subr.bf16.mxu1 %v3237_v62 }
  0x60   : > { %2884 = vmatprep.subr.bf16.mxu0 %v3238_v63 }
  0x62   : > { %2845 = vmatpush3.bf16.msra.mxu1 %v3237_v62 }
  0x63   : > { %2885 = vmatpush3.bf16.msra.mxu0 %v3238_v63  ;;  %2846 = vmatprep.subr.bf16.mxu1 %v3239_v0 }
  0x64   : > { %2886 = vmatprep.subr.bf16.mxu0 %v3240_v1 }
  0x66   : > { %2847 = vmatpush3.bf16.msra.mxu1 %v3239_v0 }
  0x67   : > { %2887 = vmatpush3.bf16.msra.mxu0 %v3240_v1  ;;  %2848 = vmatprep.subr.bf16.mxu1 %v3241_v2 }
  0x68   : > { %2888 = vmatprep.subr.bf16.mxu0 %v3242_v3 }
  0x6a   : > { %2849 = vmatpush3.bf16.msra.mxu1 %v3241_v2 }
  0x6b   : > { %2889 = vmatpush3.bf16.msra.mxu0 %v3242_v3  ;;  %2914 = vmatprep.subr.bf16.mxu1 %v3251_v17  ;;  %v3291_v3 = vld [vmem:[#allocation2] sm:$0xff]  }
  0x6c   : > { %2894 = vmatprep.subr.bf16.mxu0 %v3243_v4 }
  0x6d   : > { %2851 = vmatmul.mubr.bf16.vlgmr.msra.gmra.mrb[0].mxu1 %v534_v5 }
  0x6e   : > { %2891 = vmatmul.mubr.bf16.vlgmr.msra.gmra.mrb[0].mxu0 %v783_v52  ;;  %2915 = vmatpush3.bf16.msra.mxu1 %v3251_v17 }
  0x6f   : > { %2895 = vmatpush3.bf16.msra.mxu0 %v3243_v4  ;;  %2910 = vmatprep.mubr.bf16.mxu0 %v906_v8  ;;  %v3261_v8 = vld [vmem:[%s3926_s3 + $0x50] sm:$0xff]  }
  0x70   : > { %2896 = vmatprep.subr.bf16.mxu0 %v3244_v7  ;;  %2916 = vmatprep.subr.bf16.mxu1 %v3252_v18 }
  0x72   : > { %2917 = vmatpush3.bf16.msra.mxu1 %v3252_v18 }
  0x73   : > { %2897 = vmatpush3.bf16.msra.mxu0 %v3244_v7  ;;  %2918 = vmatprep.subr.bf16.mxu1 %v3253_v19 }
  0x74   : > { %2898 = vmatprep.subr.bf16.mxu0 %v3245_v10 }
  0x76   : > { %2919 = vmatpush3.bf16.msra.mxu1 %v3253_v19  ;;  %v3262_v19 = vld [vmem:[%s3926_s3 + $0x58] sm:$0xff]  }
  0x77   : > { %2899 = vmatpush3.bf16.msra.mxu0 %v3245_v10  ;;  %2920 = vmatprep.subr.bf16.mxu1 %v3254_v21 }
  0x78   : > { %2900 = vmatprep.subr.bf16.mxu0 %v3246_v11 }
  0x7a   : > { %2921 = vmatpush3.bf16.msra.mxu1 %v3254_v21 }
  0x7b   : > { %2901 = vmatpush3.bf16.msra.mxu0 %v3246_v11  ;;  %2922 = vmatprep.subr.bf16.mxu1 %v3255_v24 }
  0x7c   : > { %2902 = vmatprep.subr.bf16.mxu0 %v3247_v12 }
  0x7e   : > { %2923 = vmatpush3.bf16.msra.mxu1 %v3255_v24  ;;  %v3293_v24 = vld [vmem:[#allocation2 + $0x10] sm:$0xff]  }
  0x7f   : > { %2903 = vmatpush3.bf16.msra.mxu0 %v3247_v12  ;;  %2924 = vmatprep.subr.bf16.mxu1 %v3256_v25 }
  0x80   : > { %2904 = vmatprep.subr.bf16.mxu0 %v3248_v13 }
  0x82   : > { %2925 = vmatpush3.bf16.msra.mxu1 %v3256_v25  ;;  %v3263_v25 = vld [vmem:[%s3926_s3 + $0x60] sm:$0xff]  }
  0x83   : > { %2905 = vmatpush3.bf16.msra.mxu0 %v3248_v13  ;;  %2926 = vmatprep.subr.bf16.mxu1 %v3257_v27 }
  0x84   : > { %2906 = vmatprep.subr.bf16.mxu0 %v3249_v14 }
  0x86   : > { %2927 = vmatpush3.bf16.msra.mxu1 %v3257_v27  ;;  %v3294_v27 = vld [vmem:[#allocation2 + $0x18] sm:$0xff]  }
  0x87   : > { %2907 = vmatpush3.bf16.msra.mxu0 %v3249_v14  ;;  %2928 = vmatprep.subr.bf16.mxu1 %v3258_v28  ;;  %v3292_v14 = vld [vmem:[#allocation2 + $0x8] sm:$0xff]  }
  0x88   : > { %2908 = vmatprep.subr.bf16.mxu0 %v3250_v15 }
  0x8a   : > { %2929 = vmatpush3.bf16.msra.mxu1 %v3258_v28  ;;  %v3264_v28 = vld [vmem:[%s3926_s3 + $0x68] sm:$0xff]  }
  0x8b   : > { %2909 = vmatpush3.bf16.msra.mxu0 %v3250_v15  ;;  %2934 = vmatprep.subr.bf16.mxu1 %v3259_v29 }
  0x8c   : > { %3014 = vmatprep.subr.bf16.mxu0 %v3404_v26 }
  0x8e   : > { %2911 = vmatmul.mubr.bf16.vlgmr.msra.gmra.mrb[0].mxu0 %v905_v59 }
  0x8f   : > { %3015 = vmatpush3.bf16.msra.mxu0 %v3291_v3  ;;  %3030 = vmatprep.mubr.msk.bf16.mxu0 %vm3405_vm13, %v3404_v26 }
  0x90   : > { %3016 = vmatprep.subr.bf16.mxu0 %v3404_v26 }
  0x93   : > { %3017 = vmatpush3.bf16.msra.mxu0 %v3292_v14  ;;  %v3299_v14 = vld [vmem:[#allocation2 + $0x40] sm:$0xff]  }
  0x94   : > { %3018 = vmatprep.subr.bf16.mxu0 %v3404_v26 }
  0x97   : > { %3019 = vmatpush3.bf16.msra.mxu0 %v3293_v24 }
  0x98   : > { %3020 = vmatprep.subr.bf16.mxu0 %v3404_v26 }
  0x9b   : > { %3021 = vmatpush3.bf16.msra.mxu0 %v3294_v27 }
  0x9c   : > { %3022 = vmatprep.subr.bf16.mxu0 %v3404_v26 }
 0x140   : > { %v2852_v30 = vpop.f32.mrb[0].mxu1 }
 0x141   : > { %v619_v31 = vpop.f32.mrb[1].mxu1  ;;  %v3114_v35 = vadd.f32 %v2852_v30, %v2397_v34  ;;  %v3266_v30 = vld [vmem:[%s3926_s3 + $0x78] sm:$0xff]  }
 0x142   : > { %v2853_v32 = vpop.f32.mrb[2].mxu1  ;;  %v3116_v36 = vadd.f32 %v2397_v34, %v619_v31  ;;  %v3267_v31 = vld [vmem:[%s3926_s3 + $0x80] sm:$0xff]  }
 0x143   : > { %v622_v33 = vpop.f32.mrb[3].mxu1 }
 0x144   : > { %v3118_v40 = vadd.f32 %v2397_v34, %v622_v33  ;;  %v3268_v33 = vld [vmem:[%s3926_s3 + $0x88] sm:$0xff]   ;;  %v3269_v34 = vld [vmem:[%s3926_s3 + $0x90] sm:$0xff]  }
 0x161   : > { %v2912_v37 = vpop.f32.mrb[0].mxu0 }
 0x162   : > { %v3115_v38 = vadd.f32 %v3114_v35, %v2912_v37  ;;  %v991_v39 = vpop.f32.mrb[1].mxu0  ;;  %v3270_v35 = vld [vmem:[%s3926_s3 + $0x98] sm:$0xff]   ;;  %v3272_v37 = vld [vmem:[%s3926_s3 + $0xa8] sm:$0xff]  }
 0x163   : > { %v3117_v41 = vadd.f32 %v3116_v36, %v991_v39  ;;  %v2913_v42 = vpop.f32.mrb[2].mxu0  ;;  %v3271_v36 = vld [vmem:[%s3926_s3 + $0xa0] sm:$0xff]   ;;  %v3274_v39 = vld [vmem:[%s3926_s3 + $0xb8] sm:$0xff]  }
 0x164   : > { %3332 = vtanh.f32 %v3115_v38  ;;  %v994_v43 = vpop.f32.mrb[3].mxu0  ;;  %v3273_v38 = vld [vmem:[%s3926_s3 + $0xb0] sm:$0xff]  }
 0x165   : > { %3334 = vtanh.f32 %v3117_v41  ;;  %v3119_v44 = vadd.f32 %v3118_v40, %v994_v43  ;;  %v3275_v40 = vld [vmem:[%s3926_s3 + $0xc0] sm:$0xff]   ;;  %v3276_v41 = vld [vmem:[%s3926_s3 + $0xc8] sm:$0xff]   ;;  %v3277_v42 = vld [vmem:[%s3926_s3 + $0xd0] sm:$0xff]  }
 0x166   : > { %v3278_v43 = vld [vmem:[%s3926_s3 + $0xd8] sm:$0xff]  }
 0x167   : > { %3336 = vtanh.f32 %v3119_v44  ;;  %v3279_v44 = vld [vmem:[%s3926_s3 + $0xe0] sm:$0xff]  }
 0x16e   : > { %v3333_v47 = vpop.eup %3332 }
 0x16f   : > { %v3335_v48 = vpop.eup %3334  ;;  %v1033_v49 = vsel %vm1021_vm9, %v3333_v47, 0.0  ;;  %v2521_v57 = vpack.c.bf16 %v3333_v47, %v3333_v47  ;;  %v3282_v47 = vld [vmem:[%s3926_s3 + $0xf8] sm:$0xff]  }
 0x170   : > { %v1031_v50 = vsel %vm1016_vm10, %v3335_v48, 0.0  ;;  %v3717_v51 = vpack.c.bf16 %v1033_v49, %v1033_v49  ;;  %v3284_v49 = vld [vmem:[%s3926_s3 + $0x108] sm:$0xff]  }
 0x171   : > { %v3337_v52 = vpop.eup %3336 }
 0x172   : > { %v1042_v53 = vpack.c.bf16 %v3337_v52, %v1031_v50  ;;  %v2518_v54 = vpack.c.bf16 %v3337_v52, %v3335_v48  ;;  %v1184_v55 = vshll.u32 %v3717_v51, 16  ;;  %v1188_v56 = vshrl.u32 %v3717_v51, 16  ;;  %v3283_v48 = vld [vmem:[%s3926_s3 + $0x100] sm:$0xff]   ;;  %v3285_v50 = vld [vmem:[%s3926_s3 + $0x110] sm:$0xff]   ;;  %v3286_v52 = vld [vmem:[%s3926_s3 + $0x118] sm:$0xff]  }
 0x173   : > { %v1312_v62 = vrot.slane %v3717_v51, 1  ;;  %v1558_v2 = vrot.slane %v3717_v51, 2  ;;  %v2508_v51 = vld [vmem:[%s3927_s4] ss:$0 sm:$0xff] }
 0x174   : > { %2930 = vmatprep.mubr.msk.bf16.mxu1 %vm2517_vm11, %v2518_v54  ;;  %v1177_v59 = vshrl.u32 %v1042_v53, 16  ;;  %v1179_v60 = vshll.u32 %v1042_v53, 16  ;;  %v1311_v61 = vrot.slane %v1042_v53, 1  ;;  %v1435_v63 = vrot.slane %v1188_v56, 1  ;;  %v3288_v54 = vld [vmem:[%s3926_s3 + $0x128] sm:$0xff]  }
 0x175   : > { %2931 = vmatmul.mubr.msk.bf16.vlgmr.msra.gmra.mrb[4].mxu1 %vm2520_vm12, %v2521_v57  ;;  %v1436_v0 = vrot.slane %v1184_v55, 2  ;;  %v1557_v1 = vrot.slane %v1042_v53, 2  ;;  %v1186_v13 = vrot.slane %v1184_v55, 1  ;;  %v3287_v53 = vld [vmem:[%s3926_s3 + $0x120] sm:$0xff]   ;;  %v3289_v55 = vld [vmem:[%s3926_s3 + $0x130] sm:$0xff]  }
 0x176   : > { %2935 = vmatpush3.bf16.msra.mxu1 %v3259_v29  ;;  %v1181_v4 = vrot.slane %v1179_v60, 1  ;;  %v1313_v5 = vsel %vm655_vm4, %v1311_v61, %v1312_v62  ;;  %v1432_v7 = vrot.slane %v1177_v59, 1  ;;  %v1433_v10 = vrot.slane %v1179_v60, 2  ;;  %v3265_v29 = vld [vmem:[%s3926_s3 + $0x70] sm:$0xff]   ;;  %v3295_v57 = vld [vmem:[#allocation2 + $0x20] sm:$0xff]   ;;  %v3298_v60 = vld [vmem:[#allocation2 + $0x38] sm:$0xff]  }
 0x177   : > { %2936 = vmatprep.subr.bf16.mxu1 %v3260_v58  ;;  %v3736_v11 = vsel %vm903_vm8, %v1557_v1, %v1558_v2  ;;  %v3739_v17 = vor.u32 %v1436_v0, %v1435_v63  ;;  %v1190_v32 = vor.u32 %v1188_v56, %v1186_v13  ;;  %v3290_v56 = vld [vmem:[%s3926_s3 + $0x138] sm:$0xff]   ;;  %3023 = vmatpush3.bf16.msra.mxu0 %v3295_v57  ;;  %v3315_v57 = vld [vmem:[#allocation2 + $0xc0] sm:$0xff]  }
 0x178   : > { %v1182_v12 = vor.u32 %v1181_v4, %v1177_v59  ;;  %v1434_v15 = vor.u32 %v1433_v10, %v1432_v7  ;;  %3024 = vmatprep.subr.bf16.mxu0 %v3404_v26  ;;  %v3297_v59 = vld [vmem:[#allocation2 + $0x30] sm:$0xff]   ;;  %v1668_v4 = vadd.s32 4294967294, %v3533_v9 }
 0x17a   : > { %2937 = vmatpush3.bf16.msra.mxu1 %v3260_v58  ;;  %v1187_v18 = vsel %vm519_vm5, %v1182_v12, %v1186_v13  ;;  %v1438_v21 = vsel %vm777_vm7, %v1434_v15, %v3739_v17  ;;  %v3296_v58 = vld [vmem:[#allocation2 + $0x28] sm:$0xff]   ;;  %vm1674_vm14 = vcmp.lt.s32.totalorder %v1668_v4, 16  ;;  %v3327_v4 = vld [vmem:[#allocation2 + $0x120] sm:$0xff]  }
 0x17b   : > { %2950 = vmatprep.mubr.bf16.mxu1 %v1187_v18  ;;  %2938 = vmatprep.subr.bf16.mxu1 %v3261_v8 }
 0x17c   : > { %3025 = vmatpush3.bf16.msra.mxu0 %v3296_v58  ;;  %v3316_v58 = vld [vmem:[#allocation2 + $0xc8] sm:$0xff]  }
 0x17d   : > { %3026 = vmatprep.subr.bf16.mxu0 %v3404_v26 }
 0x17e   : > { %2939 = vmatpush3.bf16.msra.mxu1 %v3261_v8 }
 0x17f   : > { %2940 = vmatprep.subr.bf16.mxu1 %v3262_v19 }
 0x180   : > { %3027 = vmatpush3.bf16.msra.mxu0 %v3297_v59  ;;  %v3317_v59 = vld [vmem:[#allocation2 + $0xd0] sm:$0xff]  }
 0x181   : > { %3028 = vmatprep.subr.bf16.mxu0 %v3404_v26 }
 0x182   : > { %2941 = vmatpush3.bf16.msra.mxu1 %v3262_v19 }
 0x183   : > { %2942 = vmatprep.subr.bf16.mxu1 %v3263_v25 }
 0x184   : > { %3029 = vmatpush3.bf16.msra.mxu0 %v3298_v60  ;;  %v3318_v60 = vld [vmem:[#allocation2 + $0xd8] sm:$0xff]  }
 0x185   : > { %3034 = vmatprep.subr.bf16.mxu0 %v3404_v26 }
 0x186   : > { %2943 = vmatpush3.bf16.msra.mxu1 %v3263_v25  ;;  %v3300_v25 = vld [vmem:[#allocation2 + $0x48] sm:$0xff]  }
 0x187   : > { %2944 = vmatprep.subr.bf16.mxu1 %v3264_v28 }
 0x18a   : > { %2945 = vmatpush3.bf16.msra.mxu1 %v3264_v28 }
 0x18b   : > { %2946 = vmatprep.subr.bf16.mxu1 %v3265_v29 }
 0x18e   : > { %2947 = vmatpush3.bf16.msra.mxu1 %v3265_v29 }
 0x18f   : > { %2948 = vmatprep.subr.bf16.mxu1 %v3266_v30 }
 0x192   : > { %2949 = vmatpush3.bf16.msra.mxu1 %v3266_v30 }
 0x193   : > { %2954 = vmatprep.subr.bf16.mxu1 %v3267_v31 }
 0x195   : > { %2951 = vmatmul.mubr.bf16.vlgmr.msra.gmra.mrb[4].mxu1 %v1190_v32 }
 0x196   : > { %2955 = vmatpush3.bf16.msra.mxu1 %v3267_v31  ;;  %2970 = vmatprep.mubr.bf16.mxu1 %v1313_v5  ;;  %v1666_v5 = vadd.s32 4294967294, %v3521_v6 }
 0x197   : > { %2956 = vmatprep.subr.bf16.mxu1 %v3268_v33 }
 0x198   : > { %vm1669_vm15 = vcmp.ge.s32.totalorder %v1666_v5, 0  ;;  %v3328_v5 = vld [vmem:[#allocation2 + $0x128] sm:$0xff]  }
 0x199   : > { %vm2628_vm0 = vmpackc.low %vm3403_vm2, %vm1669_vm15 }
 0x19a   : > { %2957 = vmatpush3.bf16.msra.mxu1 %v3268_v33 }
 0x19b   : > { %2958 = vmatprep.subr.bf16.mxu1 %v3269_v34 }
 0x19e   : > { %2959 = vmatpush3.bf16.msra.mxu1 %v3269_v34 }
 0x19f   : > { %2960 = vmatprep.subr.bf16.mxu1 %v3270_v35 }
 0x1a2   : > { %2961 = vmatpush3.bf16.msra.mxu1 %v3270_v35 }
 0x1a3   : > { %2962 = vmatprep.subr.bf16.mxu1 %v3271_v36 }
 0x1a6   : > { %2963 = vmatpush3.bf16.msra.mxu1 %v3271_v36 }
 0x1a7   : > { %2964 = vmatprep.subr.bf16.mxu1 %v3272_v37 }
 0x1aa   : > { %2965 = vmatpush3.bf16.msra.mxu1 %v3272_v37 }
 0x1ab   : > { %2966 = vmatprep.subr.bf16.mxu1 %v3273_v38 }
 0x1ae   : > { %2967 = vmatpush3.bf16.msra.mxu1 %v3273_v38 }
 0x1af   : > { %2968 = vmatprep.subr.bf16.mxu1 %v3274_v39 }
 0x1b2   : > { %2969 = vmatpush3.bf16.msra.mxu1 %v3274_v39 }
 0x1b3   : > { %2974 = vmatprep.subr.bf16.mxu1 %v3275_v40 }
 0x1b5   : > { %2971 = vmatmul.mubr.bf16.vlgmr.msra.gmra.mrb[4].mxu1 %v1312_v62 }
 0x1b6   : > { %2975 = vmatpush3.bf16.msra.mxu1 %v3275_v40  ;;  %2990 = vmatprep.mubr.bf16.mxu1 %v1438_v21  ;;  %v3301_v40 = vld [vmem:[#allocation2 + $0x50] sm:$0xff]  }
 0x1b7   : > { %2976 = vmatprep.subr.bf16.mxu1 %v3276_v41 }
 0x1ba   : > { %2977 = vmatpush3.bf16.msra.mxu1 %v3276_v41 }
 0x1bb   : > { %2978 = vmatprep.subr.bf16.mxu1 %v3277_v42 }
 0x1be   : > { %2979 = vmatpush3.bf16.msra.mxu1 %v3277_v42 }
 0x1bf   : > { %2980 = vmatprep.subr.bf16.mxu1 %v3278_v43 }
 0x1c2   : > { %2981 = vmatpush3.bf16.msra.mxu1 %v3278_v43  ;;  %v3302_v43 = vld [vmem:[#allocation2 + $0x58] sm:$0xff]  }
 0x1c3   : > { %2982 = vmatprep.subr.bf16.mxu1 %v3279_v44 }
 0x1c6   : > { %2983 = vmatpush3.bf16.msra.mxu1 %v3279_v44  ;;  %v3303_v44 = vld [vmem:[#allocation2 + $0x60] sm:$0xff]  }
 0x1c7   : > { %2984 = vmatprep.subr.bf16.mxu1 %v3280_v45 }
 0x1ca   : > { %2985 = vmatpush3.bf16.msra.mxu1 %v3280_v45  ;;  %v3304_v45 = vld [vmem:[#allocation2 + $0x68] sm:$0xff]  }
 0x1cb   : > { %2986 = vmatprep.subr.bf16.mxu1 %v3281_v46 }
 0x1ce   : > { %2987 = vmatpush3.bf16.msra.mxu1 %v3281_v46  ;;  %v3305_v46 = vld [vmem:[#allocation2 + $0x70] sm:$0xff]  }
 0x1cf   : > { %2988 = vmatprep.subr.bf16.mxu1 %v3282_v47 }
 0x1d2   : > { %2989 = vmatpush3.bf16.msra.mxu1 %v3282_v47  ;;  %v3306_v47 = vld [vmem:[#allocation2 + $0x78] sm:$0xff]  }
 0x1d3   : > { %2994 = vmatprep.subr.bf16.mxu1 %v3283_v48 }
 0x1d5   : > { %2991 = vmatmul.mubr.bf16.vlgmr.msra.gmra.mrb[4].mxu1 %v3739_v17 }
 0x1d6   : > { %2995 = vmatpush3.bf16.msra.mxu1 %v3283_v48  ;;  %3010 = vmatprep.mubr.bf16.mxu1 %v3736_v11  ;;  %v3307_v48 = vld [vmem:[#allocation2 + $0x80] sm:$0xff]  }
 0x1d7   : > { %2996 = vmatprep.subr.bf16.mxu1 %v3284_v49 }
 0x1da   : > { %2997 = vmatpush3.bf16.msra.mxu1 %v3284_v49  ;;  %v3308_v49 = vld [vmem:[#allocation2 + $0x88] sm:$0xff]  }
 0x1db   : > { %2998 = vmatprep.subr.bf16.mxu1 %v3285_v50 }
 0x1de   : > { %2999 = vmatpush3.bf16.msra.mxu1 %v3285_v50  ;;  %v3309_v50 = vld [vmem:[#allocation2 + $0x90] sm:$0xff]  }
 0x1df   : > { %3000 = vmatprep.subr.bf16.mxu1 %v3286_v52 }
 0x1e2   : > { %3001 = vmatpush3.bf16.msra.mxu1 %v3286_v52  ;;  %v3310_v52 = vld [vmem:[#allocation2 + $0x98] sm:$0xff]  }
 0x1e3   : > { %3002 = vmatprep.subr.bf16.mxu1 %v3287_v53 }
 0x1e6   : > { %3003 = vmatpush3.bf16.msra.mxu1 %v3287_v53  ;;  %v3311_v53 = vld [vmem:[#allocation2 + $0xa0] sm:$0xff]  }
 0x1e7   : > { %3004 = vmatprep.subr.bf16.mxu1 %v3288_v54 }
 0x1ea   : > { %3005 = vmatpush3.bf16.msra.mxu1 %v3288_v54  ;;  %v3312_v54 = vld [vmem:[#allocation2 + $0xa8] sm:$0xff]  }
 0x1eb   : > { %3006 = vmatprep.subr.bf16.mxu1 %v3289_v55 }
 0x1ee   : > { %3007 = vmatpush3.bf16.msra.mxu1 %v3289_v55  ;;  %v3313_v55 = vld [vmem:[#allocation2 + $0xb0] sm:$0xff]  }
 0x1ef   : > { %3008 = vmatprep.subr.bf16.mxu1 %v3290_v56 }
 0x1f2   : > { %3009 = vmatpush3.bf16.msra.mxu1 %v3290_v56  ;;  %v3314_v56 = vld [vmem:[#allocation2 + $0xb8] sm:$0xff]  }
 0x1f5   : > { %3011 = vmatmul.mubr.bf16.vlgmr.msra.gmra.mrb[4].mxu1 %v1558_v2 }
 0x2c8   : > { %v3012_v61 = vpop.f32.mrb[4].mxu1 }
 0x2c9   : > { %v3120_v62 = vadd.f32 %v3012_v61, %v2508_v51  ;;  %v1644_v63 = vpop.f32.mrb[5].mxu1  ;;  %v3320_v61 = vld [vmem:[#allocation2 + $0xe8] sm:$0xff]  }
 0x2ca   : > { %v3121_v0 = vadd.f32 %v2508_v51, %v1644_v63  ;;  %v3013_v1 = vpop.f32.mrb[6].mxu1  ;;  %v3322_v63 = vld [vmem:[#allocation2 + $0xf8] sm:$0xff]  }
 0x2cb   : > { %3338 = vtanh.f32 %v3120_v62  ;;  %v1647_v2 = vpop.f32.mrb[7].mxu1  ;;  %v3321_v62 = vld [vmem:[#allocation2 + $0xf0] sm:$0xff]   ;;  %v3324_v1 = vld [vmem:[#allocation2 + $0x108] sm:$0xff]  }
 0x2cc   : > { %3340 = vtanh.f32 %v3121_v0  ;;  %v3122_v3 = vadd.f32 %v2508_v51, %v1647_v2  ;;  %v3319_v51 = vld [vmem:[#allocation2 + $0xe0] sm:$0xff]   ;;  %v3325_v2 = vld [vmem:[#allocation2 + $0x110] sm:$0xff]  }
 0x2cd   : > { %v3323_v0 = vld [vmem:[#allocation2 + $0x100] sm:$0xff]  }
 0x2ce   : > { %3342 = vtanh.f32 %v3122_v3  ;;  %v3326_v3 = vld [vmem:[#allocation2 + $0x118] sm:$0xff]  }
 0x2d5   : > { %v3339_v7 = vpop.eup %3338 }
 0x2d6   : > { %v3341_v8 = vpop.eup %3340  ;;  %v1686_v10 = vsel %vm1674_vm14, %v3339_v7, 0.0  ;;  %v3329_v7 = vld [vmem:[#allocation2 + $0x130] sm:$0xff]  }
 0x2d7   : > { %v1803_v11 = vpack.c.bf16 %v1686_v10, %v1686_v10  ;;  %v1684_v12 = vsel %vm1669_vm15, %v3341_v8, 0.0  ;;  %v2619_v10 = vld [vmem:[%s3929_s6] ss:$0 sm:$0xff] }
 0x2d8   : > { %v3343_v13 = vpop.eup %3342 }
 0x2d9   : > { %v1695_v15 = vpack.c.bf16 %v3343_v13, %v1684_v12  ;;  %v2629_v17 = vpack.c.bf16 %v3343_v13, %v3341_v8  ;;  %v1829_v18 = vshll.u32 %v1803_v11, 16  ;;  %v2059_v19 = vshrl.u32 %v1803_v11, 16  ;;  %v3330_v8 = vld [vmem:[#allocation2 + $0x138] sm:$0xff]  }
 0x2da   : > { %v1945_v6 = vrot.slane %v1803_v11, 1  ;;  %v2175_v30 = vrot.slane %v1803_v11, 2 }
 0x2db   : > { %3031 = vmatmul.mubr.msk.bf16.vlgmr.msra.gmra.mrb[4].mxu0 %vm2628_vm0, %v2629_v17  ;;  %v1822_v21 = vshrl.u32 %v1695_v15, 16  ;;  %v1824_v9 = vshll.u32 %v1695_v15, 16  ;;  %v1944_v24 = vrot.slane %v1695_v15, 1  ;;  %v2061_v27 = vrot.slane %v2059_v19, 1 }
 0x2dc   : > { %3035 = vmatpush3.bf16.msra.mxu0 %v3299_v14  ;;  %3050 = vmatprep.mubr.msk.bf16.mxu0 %vm3405_vm13, %v3404_v26  ;;  %v2062_v28 = vrot.slane %v1829_v18, 2  ;;  %v2174_v29 = vrot.slane %v1695_v15, 2  ;;  %v1831_v37 = vrot.slane %v1829_v18, 1 }
 0x2dd   : > { %3036 = vmatprep.subr.bf16.mxu0 %v3404_v26  ;;  %v1826_v31 = vrot.slane %v1824_v9, 1  ;;  %v1946_v32 = vsel %vm655_vm4, %v1944_v24, %v1945_v6  ;;  %v2056_v33 = vrot.slane %v1822_v21, 1  ;;  %v2057_v34 = vrot.slane %v1824_v9, 2 }
 0x2de   : > { %v3857_v35 = vsel %vm903_vm8, %v2174_v29, %v2175_v30  ;;  %v2063_v39 = vor.u32 %v2062_v28, %v2061_v27 }
 0x2df   : > { %v1827_v36 = vor.u32 %v1826_v31, %v1822_v21  ;;  %v2058_v38 = vor.u32 %v2057_v34, %v2056_v33 }
 0x2e0   : > { %3037 = vmatpush3.bf16.msra.mxu0 %v3300_v25 }
 0x2e1   : > { %3038 = vmatprep.subr.bf16.mxu0 %v3404_v26  ;;  %v1832_v41 = vsel %vm519_vm5, %v1827_v36, %v1831_v37  ;;  %v3862_v42 = vsel %vm777_vm7, %v2058_v38, %v2063_v39 }
 0x2e4   : > { %3039 = vmatpush3.bf16.msra.mxu0 %v3301_v40 }
 0x2e5   : > { %3040 = vmatprep.subr.bf16.mxu0 %v3404_v26 }
 0x2e8   : > { %3041 = vmatpush3.bf16.msra.mxu0 %v3302_v43 }
 0x2e9   : > { %3042 = vmatprep.subr.bf16.mxu0 %v3404_v26 }
 0x2ec   : > { %3043 = vmatpush3.bf16.msra.mxu0 %v3303_v44 }
 0x2ed   : > { %3044 = vmatprep.subr.bf16.mxu0 %v3404_v26 }
 0x2f0   : > { %3045 = vmatpush3.bf16.msra.mxu0 %v3304_v45 }
 0x2f1   : > { %3046 = vmatprep.subr.bf16.mxu0 %v3404_v26 }
 0x2f4   : > { %3047 = vmatpush3.bf16.msra.mxu0 %v3305_v46 }
 0x2f5   : > { %3048 = vmatprep.subr.bf16.mxu0 %v3404_v26 }
 0x2f8   : > { %3049 = vmatpush3.bf16.msra.mxu0 %v3306_v47 }
 0x2f9   : > { %3054 = vmatprep.subr.bf16.mxu0 %v3404_v26 }
 0x2fb   : > { %3051 = vmatmul.mubr.bf16.vlgmr.msra.gmra.mrb[4].mxu0 %v1832_v41 }
 0x2fc   : > { %3055 = vmatpush3.bf16.msra.mxu0 %v3307_v48  ;;  %3070 = vmatprep.mubr.msk.bf16.mxu0 %vm3405_vm13, %v3404_v26 }
 0x2fd   : > { %3056 = vmatprep.subr.bf16.mxu0 %v3404_v26 }
 0x300   : > { %3057 = vmatpush3.bf16.msra.mxu0 %v3308_v49 }
 0x301   : > { %3058 = vmatprep.subr.bf16.mxu0 %v3404_v26 }
 0x304   : > { %3059 = vmatpush3.bf16.msra.mxu0 %v3309_v50 }
 0x305   : > { %3060 = vmatprep.subr.bf16.mxu0 %v3404_v26 }
 0x308   : > { %3061 = vmatpush3.bf16.msra.mxu0 %v3310_v52 }
 0x309   : > { %3062 = vmatprep.subr.bf16.mxu0 %v3404_v26 }
 0x30c   : > { %3063 = vmatpush3.bf16.msra.mxu0 %v3311_v53 }
 0x30d   : > { %3064 = vmatprep.subr.bf16.mxu0 %v3404_v26 }
 0x310   : > { %3065 = vmatpush3.bf16.msra.mxu0 %v3312_v54 }
 0x311   : > { %3066 = vmatprep.subr.bf16.mxu0 %v3404_v26 }
 0x314   : > { %3067 = vmatpush3.bf16.msra.mxu0 %v3313_v55 }
 0x315   : > { %3068 = vmatprep.subr.bf16.mxu0 %v3404_v26 }
 0x318   : > { %3069 = vmatpush3.bf16.msra.mxu0 %v3314_v56 }
 0x319   : > { %3074 = vmatprep.subr.bf16.mxu0 %v3404_v26 }
 0x31b   : > { %3071 = vmatmul.mubr.bf16.vlgmr.msra.gmra.mrb[4].mxu0 %v1946_v32 }
 0x31c   : > { %3075 = vmatpush3.bf16.msra.mxu0 %v3315_v57  ;;  %3090 = vmatprep.mubr.msk.bf16.mxu0 %vm3405_vm13, %v3404_v26 }
 0x31d   : > { %3076 = vmatprep.subr.bf16.mxu0 %v3404_v26 }
 0x320   : > { %3077 = vmatpush3.bf16.msra.mxu0 %v3316_v58 }
 0x321   : > { %3078 = vmatprep.subr.bf16.mxu0 %v3404_v26 }
 0x324   : > { %3079 = vmatpush3.bf16.msra.mxu0 %v3317_v59 }
 0x325   : > { %3080 = vmatprep.subr.bf16.mxu0 %v3404_v26 }
 0x328   : > { %3081 = vmatpush3.bf16.msra.mxu0 %v3318_v60 }
 0x329   : > { %3082 = vmatprep.subr.bf16.mxu0 %v3404_v26 }
 0x32c   : > { %3083 = vmatpush3.bf16.msra.mxu0 %v3319_v51 }
 0x32d   : > { %3084 = vmatprep.subr.bf16.mxu0 %v3404_v26 }
 0x330   : > { %3085 = vmatpush3.bf16.msra.mxu0 %v3320_v61 }
 0x331   : > { %3086 = vmatprep.subr.bf16.mxu0 %v3404_v26 }
 0x334   : > { %3087 = vmatpush3.bf16.msra.mxu0 %v3321_v62 }
 0x335   : > { %3088 = vmatprep.subr.bf16.mxu0 %v3404_v26 }
 0x338   : > { %3089 = vmatpush3.bf16.msra.mxu0 %v3322_v63 }
 0x339   : > { %3094 = vmatprep.subr.bf16.mxu0 %v3404_v26 }
 0x33b   : > { %3091 = vmatmul.mubr.bf16.vlgmr.msra.gmra.mrb[4].mxu0 %v3862_v42 }
 0x33c   : > { %3095 = vmatpush3.bf16.msra.mxu0 %v3323_v0  ;;  %3110 = vmatprep.mubr.msk.bf16.mxu0 %vm3405_vm13, %v3404_v26 }
 0x33d   : > { %3096 = vmatprep.subr.bf16.mxu0 %v3404_v26 }
 0x340   : > { %3097 = vmatpush3.bf16.msra.mxu0 %v3324_v1 }
 0x341   : > { %3098 = vmatprep.subr.bf16.mxu0 %v3404_v26 }
 0x344   : > { %3099 = vmatpush3.bf16.msra.mxu0 %v3325_v2 }
 0x345   : > { %3100 = vmatprep.subr.bf16.mxu0 %v3404_v26 }
 0x348   : > { %3101 = vmatpush3.bf16.msra.mxu0 %v3326_v3 }
 0x349   : > { %3102 = vmatprep.subr.bf16.mxu0 %v3404_v26 }
 0x34c   : > { %3103 = vmatpush3.bf16.msra.mxu0 %v3327_v4 }
 0x34d   : > { %3104 = vmatprep.subr.bf16.mxu0 %v3404_v26 }
 0x350   : > { %3105 = vmatpush3.bf16.msra.mxu0 %v3328_v5 }
 0x351   : > { %3106 = vmatprep.subr.bf16.mxu0 %v3404_v26 }
 0x354   : > { %3107 = vmatpush3.bf16.msra.mxu0 %v3329_v7 }
 0x355   : > { %3108 = vmatprep.subr.bf16.mxu0 %v3404_v26 }
 0x358   : > { %3109 = vmatpush3.bf16.msra.mxu0 %v3330_v8 }
 0x35b   : > { %3111 = vmatmul.mubr.bf16.vlgmr.msra.gmra.mrb[4].mxu0 %v3857_v35 }
 0x42e   : > { %v2260_v11 = vpop.f32.mrb[4].mxu0 }
 0x42f   : > { %v3123_v12 = vadd.f32 %v2619_v10, %v2260_v11  ;;  %v3112_v13 = vpop.f32.mrb[5].mxu0 }
 0x430   : > { %v2263_v14 = vpop.f32.mrb[6].mxu0 }
 0x431   : > { %v2272_v15 = vrot.slane %v3123_v12, 2  ;;  %v3124_v17 = vadd.f32 %v2619_v10, %v2263_v14  ;;  %v3113_v18 = vpop.f32.mrb[7].mxu0 }
 0x433   : > { %v2278_v26 = vadd.f32 %v2272_v15, %v3563_v22  ;;  %v2273_v19 = vrot.slane %v3124_v17, 2 }
 0x435   : > { %2281 = vst [vmem:[%s329_s13 - $0x6] sm:$0xc0] %v2278_v26  ;;  %v2274_v21 = vsel %vm903_vm8, %v2272_v15, %v2273_v19  ;;  %v2280_v9 = vadd.f32 %v2273_v19, %v3566_v23 }
 0x436   : > { %v2279_v24 = vadd.f32 %v2274_v21, %v338_v20 }
 0x437   : > { %2283 = vst [vmem:[%s329_s13 + $0xa] sm:$0x3f] %v2280_v9 }
 0x438   : > { %2282 = vst [vmem:[%s329_s13 + $0x2] sm:$0xff] %v2279_v24 }
 0x439 PF: > { %s18_s26 = sadd.s32 1, %s3398_s26   ;;  %s3939_s24 = smov %s3394_s25 }
 0x43a   : > { %p15_p4 = scmp.ge.s32.totalorder %s18_s26, 4   ;;  %s3940_s25 = smov %s3942_s28 }
 0x43c   :  { %17 = sbr.rel (!%p15_p4) target bundleno = 2 (0x2), region = 95 }
 0x443   :  { %2314 = vsyncpa [#allocation3], 1 }
 0x444   :  { %2316 = vsyncpa [#allocation3 + $0x1], 1 }

</bundles_post_ra>
